<compile_context>
chip_gen: v7x
topology: tpu7x:2x2x1
jax: 0.10.0
libtpu: 0.0.40
codegen_flags: <defaults>
</compile_context>

<pallas_src>
import math
from functools import partial

import numpy as np
import jax
import jax.numpy as jnp
from jax.experimental import pallas as pl
from jax.experimental.pallas import tpu as pltpu


def _round_up(x, m):
    return (x + m - 1) // m * m


# ----------------------------------------------------------------------------
# VMEM budgeting (generation aware)
# ----------------------------------------------------------------------------
def _vmem_budget():
    cap = 64 * 1024 * 1024          # conservative default (v7x per-TC VMEM)
    try:
        info = pltpu.get_tpu_info()
        cap = int(getattr(info, "vmem_capacity_bytes", cap))
    except Exception:
        pass
    limit = min(int(cap * 0.85), 100 * 1024 * 1024)
    budget = int(limit * 0.9)
    return budget, limit


def _pad_to(x, m):
    return (x + m - 1) // m * m


def _seq_layer_vmem(bt, s_pad, e, dk, n_seq, plan_widths, emit_scores, sc_bytes):
    """Per-step VMEM estimate for the sequence-query layer (double-buffered
    blocks + scratch + live in-kernel temporaries)."""
    n = bt * s_pad
    total = 0
    total += 2 * n_seq * bt * s_pad * e * 4                       # seq inputs
    total += 2 * sum(e * _pad_to(w * dk, 128) * 4 +
                     8 * _pad_to(w * dk, 128) * 4 for w in plan_widths)
    total += 2 * _pad_to(dk, 8) * e * 4                           # wo_h
    total += 2 * 3 * 8 * e * 4                                    # bo / ln_w / ln_b
    total += 2 * bt * s_pad * e * 4                               # out block
    if emit_scores:
        total += 2 * bt * s_pad * s_pad * sc_bytes                # per-head scores block
    total += n * e * 4                                            # acc scratch
    total += 5 * bt * s_pad * s_pad * 4                           # (bt,S,S) temporaries
    total += 3 * n * e * 4                                        # (N,E) temporaries
    return total


def _know_layer_vmem(btk, s_pad, e, dk, n_heads, mm_bytes, sc_bytes):
    n = btk * s_pad
    total = 0
    total += 2 * _pad_to(btk, 8) * e * 4                          # know block
    total += 2 * 2 * s_pad * e * 4                                # key / value blocks
    total += 2 * (3 * e * _pad_to(dk, 128) + _pad_to(dk, 8) * e +
                  3 * 8 * _pad_to(dk, 128) + 3 * 8 * e) * 4       # weights / biases
    total += 2 * n * e * 4                                        # z block
    total += 2 * btk * s_pad * s_pad * sc_bytes                   # scores block
    total += n_heads * s_pad * _pad_to(dk, 128) * mm_bytes        # kh cache
    total += n_heads * s_pad * e * mm_bytes                       # (v @ Wo) cache
    total += n * e * 4                                            # acc scratch
    total += 5 * btk * s_pad * s_pad * 4                          # temporaries
    total += 3 * n * e * 4
    return total


def _pick_bt(n_batch, vmem_fn, budget):
    divisors = sorted(d for d in range(1, n_batch + 1) if n_batch % d == 0)
    # keep the "parallel" batch axis >= 2 steps when possible (v7x dual TC)
    preferred = [d for d in divisors if n_batch // d >= 2] or divisors
    fitting = [d for d in preferred if vmem_fn(d) <= budget]
    return max(fitting) if fitting else preferred[0]


def _pick_know_bt(n_know, vmem_fn, budget):
    divisors = sorted(d for d in range(1, n_know + 1) if n_know % d == 0)
    fitting = [d for d in divisors if vmem_fn(d) <= budget]
    if fitting:
        return max(fitting)
    # TODO(synk): for very large H * S_pad^2 also tile the score q-axis as an
    # extra grid axis instead of only shrinking the know tile (needed to stay
    # inside v7x's 64 MiB VMEM at S_pad >= ~2048).
    return divisors[0]


# ----------------------------------------------------------------------------
# Projection plan (which distinct input feeds which of q / k / v)
# ----------------------------------------------------------------------------
def _build_proj_plan(k_slot, v_slot, kq_same):
    plan = []                      # list of [slot, [tags]]
    slot_to_idx = {}

    def add(slot, tag):
        if slot not in slot_to_idx:
            slot_to_idx[slot] = len(plan)
            plan.append([slot, []])
        i = slot_to_idx[slot]
        plan[i][1].append(tag)
        return (i, len(plan[i][1]) - 1)

    loc = {"q": add(0, "q")}
    if kq_same and k_slot == 0:
        loc["k"] = loc["q"]        # k projection reuses the q projection
    else:
        loc["k"] = add(k_slot, "k")
    loc["v"] = add(v_slot, "v")
    return plan, loc


def _pack_headwise(ws, bs, n_heads, dk):
    """Pack per-head column slices of several (E,E) weights -> (H, E, m*dk)."""
    E = ws[0].shape[0]
    wp = jnp.concatenate([w.reshape(E, n_heads, dk) for w in ws], axis=-1)
    wp = jnp.transpose(wp, (1, 0, 2))                              # (H, E, m*dk)
    bp = jnp.concatenate([b.reshape(n_heads, dk) for b in bs], axis=-1)
    return wp, bp.reshape(n_heads, 1, -1)                          # (H, 1, m*dk)


# ----------------------------------------------------------------------------
# Fused DTransformerLayer kernel, sequence-query mode (blocks 1-3)
# grid = (batch_tiles, heads); head axis accumulates into a VMEM scratch.
# ----------------------------------------------------------------------------
def _dtl_seq_kernel(*refs, n_heads, peek_cur, emit_scores, n_seq, plan_slots,
                    loc_q, loc_k, loc_v, matmul_dtype):
    refs = list(refs)
    idx = 0
    seq_refs = refs[idx:idx + n_seq]; idx += n_seq
    n_plan = len(plan_slots)
    wb_refs = [(refs[idx + 2 * i], refs[idx + 2 * i + 1]) for i in range(n_plan)]
    idx += 2 * n_plan
    wo_ref, bo_ref, gam_ref, lnw_ref, lnb_ref = refs[idx:idx + 5]; idx += 5
    out_ref = refs[idx]; idx += 1
    scores_ref = None
    if emit_scores:
        scores_ref = refs[idx]; idx += 1
    acc_ref = refs[idx]

    h = pl.program_id(1)
    H = n_heads
    Bt, S_pad, E = seq_refs[0].shape
    dk = E // H
    N = Bt * S_pad
    inv_sqrt_dk = 1.0 / math.sqrt(dk)
    neg_big = jnp.float32(-1e32)
    maxout = not peek_cur

    def cast(x):
        return x.astype(matmul_dtype)

    # --- per-head Q/K/V projections: one fused (N,E)@(E,m*dk) per distinct input
    slot_res = []
    for slot, (w_ref, b_ref) in zip(plan_slots, wb_refs):
        x = seq_refs[slot][...].reshape(N, E)
        slot_res.append(
            jnp.dot(cast(x), cast(w_ref[0]), preferred_element_type=jnp.float32)
            + b_ref[0])

    def head_slice(loc):
        pi, pj = loc
        return slot_res[pi][:, pj * dk:(pj + 1) * dk]

    qh = head_slice(loc_q).reshape(Bt, S_pad, dk)
    kh = qh if loc_k == loc_q else head_slice(loc_k).reshape(Bt, S_pad, dk)
    vh = head_slice(loc_v).reshape(Bt, S_pad, dk)

    scores = jnp.einsum('bqd,bkd->bqk', cast(qh), cast(kh),
                        preferred_element_type=jnp.float32) * inv_sqrt_dk

    row = jax.lax.broadcasted_iota(jnp.int32, (S_pad, S_pad), 0)
    col = jax.lax.broadcasted_iota(jnp.int32, (S_pad, S_pad), 1)
    mask = (row >= col) if peek_cur else (row > col)
    pos_eff = jnp.abs(row - col).astype(jnp.float32)
    # sm @ op_gt == sum_{k > j} sm[:, k]  (== disttotal - cumsum, exactly),
    # keeping the bf16 matmul error relative instead of absolute.
    op_gt = (row > col).astype(jnp.float32)

    # --- distance-decay factor (the torch.no_grad branch) ---
    sm = jnp.where(mask, scores, neg_big)
    sm = jnp.exp(sm - jnp.max(sm, axis=-1, keepdims=True))
    sm = sm * pl.reciprocal(jnp.sum(sm, axis=-1, keepdims=True), approx=True)
    tail = jnp.dot(cast(sm.reshape(N, S_pad)), cast(op_gt),
                   preferred_element_type=jnp.float32).reshape(Bt, S_pad, S_pad)
    dist = jnp.sqrt(jnp.maximum(tail * pos_eff, 0.0))
    gamma_h = -jnp.abs(gam_ref[h])
    effect = jnp.clip(jnp.exp(dist * gamma_h), 1e-5, 1e5)
    scores = scores * effect

    # --- masked softmax (+ maxout rescale when peek_cur=False) ---
    scores = jnp.where(mask, scores, neg_big)
    scores = jnp.exp(scores - jnp.max(scores, axis=-1, keepdims=True))
    scores = scores * pl.reciprocal(jnp.sum(scores, axis=-1, keepdims=True),
                                    approx=True)
    scores = jnp.where(mask, scores, 0.0)
    if maxout:
        scale = jnp.minimum(
            pl.reciprocal(jnp.max(scores, axis=-1, keepdims=True) + 1e-8,
                          approx=True), 5.0)
        scores = scores * scale
    if emit_scores:
        scores_ref[...] = scores[:, None, :, :].astype(scores_ref.dtype)

    head = jnp.einsum('bqk,bkd->bqd', cast(scores), cast(vh),
                      preferred_element_type=jnp.float32).reshape(N, dk)
    contrib = jnp.dot(cast(head), cast(wo_ref[0]),
                      preferred_element_type=jnp.float32)             # (N, E)

    @pl.when(h == 0)
    def _():
        acc_ref[...] = jnp.zeros_like(acc_ref)

    acc_ref[...] += contrib

    @pl.when(h == H - 1)
    def _():
        attn = acc_ref[...] + bo_ref[...]
        res = seq_refs[0][...].reshape(N, E) + attn     # dropout == identity (eval)
        mu = jnp.mean(res, axis=-1, keepdims=True)
        var = jnp.mean((res - mu) ** 2, axis=-1, keepdims=True)
        normed = (res - mu) * jax.lax.rsqrt(var + 1e-5)
        out = normed * lnw_ref[...] + lnb_ref[...]
        out_ref[...] = out.reshape(Bt, S_pad, E).astype(out_ref.dtype)


# ----------------------------------------------------------------------------
# Fused DTransformerLayer kernel, knowledge-query mode (block 4)
# grid = (batch, know_chunks, heads); K/V projections cached across know chunks.
# ----------------------------------------------------------------------------
def _dtl_know_kernel(*refs, n_heads, matmul_dtype):
    (knowq_ref, k_in_ref, v_in_ref,
     wq_ref, bq_ref, wk_ref, bk_ref, wv_ref, bv_ref,
     wo_ref, bo_ref, gam_ref, lnw_ref, lnb_ref,
     z_ref, scores_ref,
     kcache_ref, vwcache_ref, acc_ref) = refs

    c = pl.program_id(1)
    h = pl.program_id(2)
    H = n_heads
    Bt, _, E = knowq_ref.shape
    S_pad = k_in_ref.shape[1]
    dk = E // H
    N = Bt * S_pad
    inv_sqrt_dk = 1.0 / math.sqrt(dk)
    neg_big = jnp.float32(-1e32)

    def cast(x):
        return x.astype(matmul_dtype)

    # K/V projections depend only on (batch, head): compute at the first know
    # chunk and reuse for the remaining kc - 1 chunks.  The out-projection is
    # folded into the cached values: (scores @ v) @ Wo_h == scores @ (v @ Wo_h).
    @pl.when(c == 0)
    def _():
        k_in = k_in_ref[0]                                         # (S_pad, E)
        v_in = v_in_ref[0]
        kh = jnp.dot(cast(k_in), cast(wk_ref[0]),
                     preferred_element_type=jnp.float32) + bk_ref[0]
        vh = jnp.dot(cast(v_in), cast(wv_ref[0]),
                     preferred_element_type=jnp.float32) + bv_ref[0]
        vw = jnp.dot(cast(vh), cast(wo_ref[0]),
                     preferred_element_type=jnp.float32)
        kcache_ref[h] = kh.astype(kcache_ref.dtype)
        vwcache_ref[h] = vw.astype(vwcache_ref.dtype)

    q_know = knowq_ref[:, 0, :]                                    # (Bt, E)
    qh = jnp.dot(cast(q_know), cast(wq_ref[0]),
                 preferred_element_type=jnp.float32) + bq_ref[0]   # (Bt, dk)
    kh = kcache_ref[h]                                             # (S_pad, dk)
    srow = jax.lax.dot_general(cast(qh), kh, (((1,), (1,)), ((), ())),
                               preferred_element_type=jnp.float32) * inv_sqrt_dk

    row = jax.lax.broadcasted_iota(jnp.int32, (S_pad, S_pad), 0)
    col = jax.lax.broadcasted_iota(jnp.int32, (S_pad, S_pad), 1)
    mask = row > col                                               # peek_cur=False
    pos_eff = jnp.abs(row - col).astype(jnp.float32)
    op_gt = (row > col).astype(jnp.float32)

    scores = srow[:, None, :]                    # identical query row broadcast
    sm = jnp.where(mask, scores, neg_big)        # -> (Bt, S_pad, S_pad)
    sm = jnp.exp(sm - jnp.max(sm, axis=-1, keepdims=True))
    sm = sm * pl.reciprocal(jnp.sum(sm, axis=-1, keepdims=True), approx=True)
    tail = jnp.dot(cast(sm.reshape(N, S_pad)), cast(op_gt),
                   preferred_element_type=jnp.float32).reshape(Bt, S_pad, S_pad)
    dist = jnp.sqrt(jnp.maximum(tail * pos_eff, 0.0))
    gamma_h = -jnp.abs(gam_ref[h])
    effect = jnp.clip(jnp.exp(dist * gamma_h), 1e-5, 1e5)
    scores = scores * effect

    scores = jnp.where(mask, scores, neg_big)
    scores = jnp.exp(scores - jnp.max(scores, axis=-1, keepdims=True))
    scores = scores * pl.reciprocal(jnp.sum(scores, axis=-1, keepdims=True),
                                    approx=True)
    scores = jnp.where(mask, scores, 0.0)
    scale = jnp.minimum(
        pl.reciprocal(jnp.max(scores, axis=-1, keepdims=True) + 1e-8,
                      approx=True), 5.0)
    scores = scores * scale                                        # maxout
    scores_ref[...] = scores[:, None, :, :].astype(scores_ref.dtype)

    contrib = jnp.dot(cast(scores.reshape(N, S_pad)), vwcache_ref[h],
                      preferred_element_type=jnp.float32)          # (N, E)

    @pl.when(h == 0)
    def _():
        acc_ref[...] = jnp.zeros_like(acc_ref)

    acc_ref[...] += contrib

    @pl.when(h == H - 1)
    def _():
        attn = acc_ref[...].reshape(Bt, S_pad, E) + bo_ref[...]
        res = q_know[:, None, :] + attn
        mu = jnp.mean(res, axis=-1, keepdims=True)
        var = jnp.mean((res - mu) ** 2, axis=-1, keepdims=True)
        normed = (res - mu) * jax.lax.rsqrt(var + 1e-5)
        z_ref[...] = (normed * lnw_ref[...] + lnb_ref[...]).astype(z_ref.dtype)


# ----------------------------------------------------------------------------
# Layer wrappers
# ----------------------------------------------------------------------------
def dtransformer_layer(query, key, value, prm, *, n_heads, peek_cur, kq_same,
                       emit_scores=True, matmul_dtype=jnp.bfloat16,
                       scores_dtype=jnp.bfloat16):
    """One DTransformerLayer.forward (eval) as a fused Pallas kernel.
    Inputs are (B, S_pad, E) with S_pad a multiple of 128 (padded in forward)."""
    B, S_pad, E = query.shape
    H = n_heads
    dk = E // H

    # deduplicate identical input arrays (single DMA per distinct tensor)
    seq_inputs = [query]

    def _slot(x):
        for i, t in enumerate(seq_inputs):
            if t is x:
                return i
        seq_inputs.append(x)
        return len(seq_inputs) - 1

    k_slot = _slot(key)
    v_slot = _slot(value)
    n_seq = len(seq_inputs)

    plan, loc = _build_proj_plan(k_slot, v_slot, kq_same)
    w_of = {"q": prm["wq"], "k": (prm["wq"] if kq_same else prm["wk"]),
            "v": prm["wv"]}
    b_of = {"q": prm["bq"], "k": (prm["bq"] if kq_same else prm["bk"]),
            "v": prm["bv"]}
    packed = [_pack_headwise([w_of[t] for t in tags], [b_of[t] for t in tags],
                             H, dk) for _, tags in plan]
    plan_widths = [len(tags) for _, tags in plan]
    wo_h = prm["wo"].reshape(H, dk, E)

    sc_bytes = jnp.dtype(scores_dtype).itemsize
    budget, vmem_limit = _vmem_budget()
    Bt = _pick_bt(
        B,
        lambda bt: _seq_layer_vmem(bt, S_pad, E, dk, n_seq, plan_widths,
                                   emit_scores, sc_bytes),
        budget)
    grid = (B // Bt, H)

    kernel = partial(_dtl_seq_kernel, n_heads=H, peek_cur=peek_cur,
                     emit_scores=emit_scores, n_seq=n_seq,
                     plan_slots=tuple(s for s, _ in plan),
                     loc_q=loc["q"], loc_k=loc["k"], loc_v=loc["v"],
                     matmul_dtype=matmul_dtype)

    seq_spec = pl.BlockSpec((Bt, S_pad, E), lambda b, h: (b, 0, 0))
    vec_spec = pl.BlockSpec((1, E), lambda b, h: (0, 0))
    # TODO(synk): mark the constant-index weight/bias specs single-buffered
    # (pipeline_mode=pl.Buffered(1)) once that path is exercised on all gens.
    in_specs = [seq_spec] * n_seq
    inputs = list(seq_inputs)
    for (wp, bp), m in zip(packed, plan_widths):
        in_specs.append(pl.BlockSpec((1, E, m * dk), lambda b, h: (h, 0, 0)))
        in_specs.append(pl.BlockSpec((1, 1, m * dk), lambda b, h: (h, 0, 0)))
        inputs += [wp, bp]
    in_specs += [pl.BlockSpec((1, dk, E), lambda b, h: (h, 0, 0)),     # wo_h
                 vec_spec,                                             # bo
                 pl.BlockSpec(memory_space=pltpu.MemorySpace.SMEM),    # gammas
                 vec_spec, vec_spec]                                   # ln_w, ln_b
    inputs += [wo_h, prm["bo"], prm["gammas"], prm["ln_w"], prm["ln_b"]]

    out_spec_main = pl.BlockSpec((Bt, S_pad, E), lambda b, h: (b, 0, 0))
    out_shape_main = jax.ShapeDtypeStruct((B, S_pad, E), jnp.float32)
    if emit_scores:
        out_specs = (out_spec_main,
                     pl.BlockSpec((Bt, 1, S_pad, S_pad),
                                  lambda b, h: (b, h, 0, 0)))
        out_shape = (out_shape_main,
                     jax.ShapeDtypeStruct((B, H, S_pad, S_pad), scores_dtype))
    else:
        out_specs = out_spec_main
        out_shape = out_shape_main

    results = pl.pallas_call(
        kernel, grid=grid, in_specs=in_specs, out_specs=out_specs,
        out_shape=out_shape,
        scratch_shapes=[pltpu.VMEM((Bt * S_pad, E), jnp.float32)],
        compiler_params=pltpu.CompilerParams(
            dimension_semantics=("parallel", "arbitrary"),
            vmem_limit_bytes=vmem_limit),
    )(*inputs)

    if emit_scores:
        out, scores = results
        return out, scores
    return results, None


def dtransformer_know_layer(know_params, key, value, prm, *, n_heads, kq_same,
                            matmul_dtype=jnp.bfloat16,
                            scores_dtype=jnp.bfloat16):
    """block4: query = know_params broadcast over every position (peek_cur=False,
    maxout=True).  hq / p are never replicated n_know times in HBM."""
    n_know, E = know_params.shape
    B, S_pad, _ = key.shape
    H = n_heads
    dk = E // H

    know3 = know_params.reshape(n_know, 1, E)
    wq = prm["wq"]; bq = prm["bq"]
    wk = prm["wq"] if kq_same else prm["wk"]
    bk = prm["bq"] if kq_same else prm["bk"]
    wv = prm["wv"]; bv = prm["bv"]

    def head_w(w):
        return jnp.transpose(w.reshape(E, H, dk), (1, 0, 2))       # (H, E, dk)

    def head_b(b):
        return b.reshape(H, 1, dk)

    wq_h, bq_h = head_w(wq), head_b(bq)
    wk_h, bk_h = head_w(wk), head_b(bk)
    wv_h, bv_h = head_w(wv), head_b(bv)
    wo_h = prm["wo"].reshape(H, dk, E)

    mm_bytes = jnp.dtype(matmul_dtype).itemsize
    sc_bytes = jnp.dtype(scores_dtype).itemsize
    budget, vmem_limit = _vmem_budget()
    Bt_k = _pick_know_bt(
        n_know,
        lambda bt: _know_layer_vmem(bt, S_pad, E, dk, H, mm_bytes, sc_bytes),
        budget)
    kc = n_know // Bt_k
    grid = (B, kc, H)

    kernel = partial(_dtl_know_kernel, n_heads=H, matmul_dtype=matmul_dtype)

    know_spec = pl.BlockSpec((Bt_k, 1, E), lambda b, c, h: (c, 0, 0))
    seq_spec = pl.BlockSpec((1, S_pad, E), lambda b, c, h: (b, 0, 0))
    whd_spec = pl.BlockSpec((1, E, dk), lambda b, c, h: (h, 0, 0))
    bhd_spec = pl.BlockSpec((1, 1, dk), lambda b, c, h: (h, 0, 0))
    wo_spec = pl.BlockSpec((1, dk, E), lambda b, c, h: (h, 0, 0))
    vec_spec = pl.BlockSpec((1, E), lambda b, c, h: (0, 0))
    smem_spec = pl.BlockSpec(memory_space=pltpu.MemorySpace.SMEM)

    in_specs = [know_spec, seq_spec, seq_spec,
                whd_spec, bhd_spec, whd_spec, bhd_spec, whd_spec, bhd_spec,
                wo_spec, vec_spec, smem_spec, vec_spec, vec_spec]
    inputs = [know3, key, value, wq_h, bq_h, wk_h, bk_h, wv_h, bv_h,
              wo_h, prm["bo"], prm["gammas"], prm["ln_w"], prm["ln_b"]]

    out_specs = (
        pl.BlockSpec((Bt_k, S_pad, E), lambda b, c, h: (b * kc + c, 0, 0)),
        pl.BlockSpec((Bt_k, 1, S_pad, S_pad),
                     lambda b, c, h: (b * kc + c, h, 0, 0)),
    )
    out_shape = (
        jax.ShapeDtypeStruct((B * n_know, S_pad, E), jnp.float32),
        jax.ShapeDtypeStruct((B * n_know, H, S_pad, S_pad), scores_dtype),
    )
    scratch = [pltpu.VMEM((H, S_pad, dk), matmul_dtype),
               pltpu.VMEM((H, S_pad, E), matmul_dtype),
               pltpu.VMEM((Bt_k * S_pad, E), jnp.float32)]

    z, scores = pl.pallas_call(
        kernel, grid=grid, in_specs=in_specs, out_specs=out_specs,
        out_shape=out_shape, scratch_shapes=scratch,
        compiler_params=pltpu.CompilerParams(
            dimension_semantics=("parallel", "arbitrary", "arbitrary"),
            vmem_limit_bytes=vmem_limit),
    )(*inputs)
    return z, scores


# ----------------------------------------------------------------------------
# DTransformer.forward (default path: n_layers=3, shortcut=False)
# ----------------------------------------------------------------------------
def dtransformer_forward(q_emb, s_emb, lens, params, *, n_heads, n_know,
                         matmul_dtype=jnp.bfloat16, scores_dtype=jnp.bfloat16):
    del lens  # as in the PyTorch forward: masks are purely causal
    B, S, E = q_emb.shape

    # Pad the sequence axis once up to a multiple of 128: every score matrix /
    # seq tile then has a lane-dense minor dim, and the causal mask automatically
    # ignores padded key positions (they lie strictly in the masked future).
    S_pad = _round_up(S, 128)
    if S_pad != S:
        pad = ((0, 0), (0, S_pad - S), (0, 0))
        q_in = jnp.pad(q_emb, pad)
        s_in = jnp.pad(s_emb, pad)
    else:
        q_in, s_in = q_emb, s_emb

    kw = dict(matmul_dtype=matmul_dtype, scores_dtype=scores_dtype)
    hq, _ = dtransformer_layer(q_in, q_in, q_in, params["block1"],
                               n_heads=n_heads, peek_cur=True, kq_same=True,
                               emit_scores=False, **kw)
    hs, _ = dtransformer_layer(s_in, s_in, s_in, params["block2"],
                               n_heads=n_heads, peek_cur=True, kq_same=True,
                               emit_scores=False, **kw)
    p, q_scores = dtransformer_layer(hq, hq, hs, params["block3"],
                                     n_heads=n_heads, peek_cur=True,
                                     kq_same=True, emit_scores=True, **kw)

    z, k_scores = dtransformer_know_layer(
        params["know_params"], hq, p, params["block4"],
        n_heads=n_heads, kq_same=False, **kw)

    # strip sequence padding, restore the PyTorch output layout
    z = z[:, :S, :].reshape(B, n_know, S, E)
    z = z.transpose(0, 2, 1, 3).reshape(B, S, n_know * E)
    q_scores = q_scores[:, :, :S, :S]
    k_scores = k_scores[:, :, :S, :S].reshape(B, n_know, n_heads, S, S)
    k_scores = k_scores.transpose(0, 2, 3, 1, 4)
    return z, q_scores, k_scores


# ----------------------------------------------------------------------------
# Deterministic synthetic parameter initialization
# ----------------------------------------------------------------------------
def init_layer_params(key, E, n_heads, kq_same=True):
    ks = jax.random.split(key, 9)

    def lin(kw, kb):
        w = jax.random.normal(kw, (E, E), jnp.float32) * (1.0 / math.sqrt(E))
        b = jax.random.normal(kb, (1, E), jnp.float32) * 0.01
        return w, b

    prm = {}
    prm["wq"], prm["bq"] = lin(ks[0], ks[1])
    if not kq_same:
        prm["wk"], prm["bk"] = lin(ks[2], ks[3])
    prm["wv"], prm["bv"] = lin(ks[4], ks[5])
    prm["wo"], prm["bo"] = lin(ks[6], ks[7])
    prm["gammas"] = jax.random.uniform(ks[8], (n_heads,), jnp.float32, -0.5, 0.5)
    prm["ln_w"] = jnp.ones((1, E), jnp.float32)
    prm["ln_b"] = jnp.zeros((1, E), jnp.float32)
    return prm


def init_params(key, E, n_heads, n_know):
    ks = jax.random.split(key, 5)
    return dict(
        block1=init_layer_params(ks[0], E, n_heads, kq_same=True),
        block2=init_layer_params(ks[1], E, n_heads, kq_same=True),
        block3=init_layer_params(ks[2], E, n_heads, kq_same=True),
        block4=init_layer_params(ks[3], E, n_heads, kq_same=False),
        know_params=jax.random.uniform(ks[4], (n_know, E), jnp.float32, -1.0, 1.0),
    )


# ----------------------------------------------------------------------------
# Pure-JAX reference (mirrors the PyTorch math) for correctness checking
# ----------------------------------------------------------------------------
def _ref_attention(q, k, v, mask, gammas, maxout):
    d_k = q.shape[-1]
    scores = jnp.einsum('bhid,bhjd->bhij', q, k) / math.sqrt(d_k)
    S = scores.shape[-1]
    x = jnp.arange(S, dtype=jnp.float32)
    pos = jnp.abs(x[None, :] - x[:, None])[None, None]
    sm = jax.nn.softmax(jnp.where(mask, scores, -1e32), axis=-1)
    distcum = jnp.cumsum(sm, axis=-1)
    disttotal = jnp.sum(sm, axis=-1, keepdims=True)
    dist = jnp.sqrt(jnp.maximum((disttotal - distcum) * pos, 0.0))
    gamma = -jnp.abs(gammas)[None, :, None, None]
    total_effect = jnp.clip(jnp.exp(dist * gamma), 1e-5, 1e5)
    scores = scores * total_effect
    scores = jnp.where(mask, scores, -1e32)
    scores = jax.nn.softmax(scores, axis=-1)
    scores = jnp.where(mask, scores, 0.0)
    if maxout:
        scale = jnp.minimum(1.0 / (jnp.max(scores, -1, keepdims=True) + 1e-8), 5.0)
        scores = scores * scale
    return jnp.einsum('bhij,bhjd->bhid', scores, v), scores


def _ref_layer(query, key, value, prm, n_heads, peek_cur):
    B, S, E = query.shape
    d_k = E // n_heads
    wk = prm.get("wk", prm["wq"])
    bk = prm.get("bk", prm["bq"])

    def proj(x, w, b):
        return (x @ w + b).reshape(B, S, n_heads, d_k).transpose(0, 2, 1, 3)

    q = proj(query, prm["wq"], prm["bq"])
    k = proj(key, wk, bk)
    v = proj(value, prm["wv"], prm["bv"])
    row = jnp.arange(S)[:, None]
    col = jnp.arange(S)[None, :]
    mask = ((row >= col) if peek_cur else (row > col))[None, None]
    out, scores = _ref_attention(q, k, v, mask, prm["gammas"], not peek_cur)
    concat = out.transpose(0, 2, 1, 3).reshape(B, S, E)
    attn_out = concat @ prm["wo"] + prm["bo"]
    res = query + attn_out
    mu = res.mean(-1, keepdims=True)
    var = ((res - mu) ** 2).mean(-1, keepdims=True)
    normed = (res - mu) / jnp.sqrt(var + 1e-5)
    return normed * prm["ln_w"] + prm["ln_b"], scores


def reference_forward(q_emb, s_emb, params, *, n_heads, n_know):
    B, S, E = q_emb.shape
    hq, _ = _ref_layer(q_emb, q_emb, q_emb, params["block1"], n_heads, True)
    hs, _ = _ref_layer(s_emb, s_emb, s_emb, params["block2"], n_heads, True)
    p, q_scores = _ref_layer(hq, hq, hs, params["block3"], n_heads, True)
    know = params["know_params"]
    query = jnp.broadcast_to(know[None, :, None, :],
                             (B, n_know, S, E)).reshape(B * n_know, S, E)
    hq_e = jnp.broadcast_to(hq[:, None], (B, n_know, S, E)).reshape(B * n_know, S, E)
    p_e = jnp.broadcast_to(p[:, None], (B, n_know, S, E)).reshape(B * n_know, S, E)
    z, k_scores = _ref_layer(query, hq_e, p_e, params["block4"], n_heads, False)
    z = z.reshape(B, n_know, S, E).transpose(0, 2, 1, 3).reshape(B, S, n_know * E)
    k_scores = k_scores.reshape(B, n_know, n_heads, S, S).transpose(0, 2, 3, 1, 4)
    return z, q_scores, k_scores


# ----------------------------------------------------------------------------
if __name__ == "__main__":
    B, S, E, H, NK = 2, 8, 32, 4, 4        # batch, seq, embedding, heads, n_know
    root = jax.random.PRNGKey(0)
    k1, k2, kparam = jax.random.split(root, 3)
    q_emb = jax.random.normal(k1, (B, S, E), jnp.float32)
    s_emb = jax.random.normal(k2, (B, S, E), jnp.float32)
    lens = jnp.full((B,), S, jnp.int32)
    params = init_params(kparam, E, H, NK)

    # production path: bf16 MXU operands (f32 accumulation), bf16 score emission
    z, q_scores, k_scores = dtransformer_forward(
        q_emb, s_emb, lens, params, n_heads=H, n_know=NK)
    jax.block_until_ready((z, q_scores, k_scores))

    assert z.shape == (B, S, NK * E)
    assert q_scores.shape == (B, H, S, S)
    assert k_scores.shape == (B, H, S, NK, S)

    z_r, qs_r, ks_r = reference_forward(q_emb, s_emb, params, n_heads=H, n_know=NK)
    np.testing.assert_allclose(np.asarray(z), np.asarray(z_r),
                               rtol=1e-1, atol=1e-1)
    np.testing.assert_allclose(np.asarray(q_scores.astype(jnp.float32)),
                               np.asarray(qs_r), rtol=1e-1, atol=1e-1)
    np.testing.assert_allclose(np.asarray(k_scores.astype(jnp.float32)),
                               np.asarray(ks_r), rtol=1e-1, atol=1e-1)

    # full-f32 verification path (tighter tolerance)
    z32, qs32, ks32 = dtransformer_forward(
        q_emb, s_emb, lens, params, n_heads=H, n_know=NK,
        matmul_dtype=jnp.float32, scores_dtype=jnp.float32)
    jax.block_until_ready((z32, qs32, ks32))
    np.testing.assert_allclose(np.asarray(z32), np.asarray(z_r),
                               rtol=2e-2, atol=2e-2)
    np.testing.assert_allclose(np.asarray(qs32), np.asarray(qs_r),
                               rtol=2e-2, atol=2e-2)
    np.testing.assert_allclose(np.asarray(ks32), np.asarray(ks_r),
                               rtol=2e-2, atol=2e-2)

    print("KERNEL_OK")
</pallas_src>

<mosaic_0001>
module attributes {stable_mosaic.version = 11 : i64} {
  func.func @_dtl_seq_kernel(%arg0: i32, %arg1: i32, %arg2: memref<1x128x32xf32, #tpu.memory_space<vmem>>, %arg3: memref<1x32x16xf32, #tpu.memory_space<vmem>>, %arg4: memref<1x1x16xf32, #tpu.memory_space<vmem>>, %arg5: memref<1x8x32xf32, #tpu.memory_space<vmem>>, %arg6: memref<1x32xf32, #tpu.memory_space<vmem>>, %arg7: memref<4xf32, #tpu.memory_space<smem>>, %arg8: memref<1x32xf32, #tpu.memory_space<vmem>>, %arg9: memref<1x32xf32, #tpu.memory_space<vmem>>, %arg10: memref<1x128x32xf32, #tpu.memory_space<vmem>>, %arg11: memref<128x32xf32, #tpu.memory_space<vmem>>) attributes {dimension_semantics = [#tpu.dimension_semantics<parallel>, #tpu.dimension_semantics<arbitrary>], iteration_bounds = array<i64: 2, 4>, scalar_prefetch = 0 : i64, scratch_operands = 1 : i64, tpu.core_type = #tpu.core_type<tc>, window_params = [{transform_indices = @transform_0, window_bounds = array<i64: 1, 128, 32>}, {transform_indices = @transform_1, window_bounds = array<i64: 1, 32, 16>}, {transform_indices = @transform_2, window_bounds = array<i64: 1, 1, 16>}, {transform_indices = @transform_3, window_bounds = array<i64: 1, 8, 32>}, {pipeline_mode = #tpu.pipeline_mode<synchronous>, transform_indices = @transform_4, window_bounds = array<i64: 1, 32>}, {transform_indices = @transform_5, window_bounds = array<i64: 4>}, {pipeline_mode = #tpu.pipeline_mode<synchronous>, transform_indices = @transform_6, window_bounds = array<i64: 1, 32>}, {pipeline_mode = #tpu.pipeline_mode<synchronous>, transform_indices = @transform_7, window_bounds = array<i64: 1, 32>}, {transform_indices = @transform_8, window_bounds = array<i64: 1, 128, 32>}]} {
    %c0 = arith.constant 0 : index
    %c0_0 = arith.constant 0 : index
    %c0_1 = arith.constant 0 : index
    %0 = vector.load %arg2[%c0, %c0_0, %c0_1] : memref<1x128x32xf32, #tpu.memory_space<vmem>>, vector<1x128x32xf32>
    %1 = vector.shape_cast %0 : vector<1x128x32xf32> to vector<128x32xf32>
    %2 = arith.truncf %1 : vector<128x32xf32> to vector<128x32xbf16>
    %c0_2 = arith.constant 0 : index
    %c0_3 = arith.constant 0 : index
    %c0_4 = arith.constant 0 : index
    %3 = vector.load %arg3[%c0_2, %c0_3, %c0_4] : memref<1x32x16xf32, #tpu.memory_space<vmem>>, vector<1x32x16xf32>
    %4 = vector.shape_cast %3 : vector<1x32x16xf32> to vector<32x16xf32>
    %5 = arith.truncf %4 : vector<32x16xf32> to vector<32x16xbf16>
    %cst = arith.constant dense<0.000000e+00> : vector<128x16xf32>
    %6 = tpu.matmul %2, %5, %cst {dimension_numbers = #tpu.dot_dimension_numbers<[1], [0], [0], [1], [0, 0, 1, 1], [], []>} : vector<128x32xbf16>, vector<32x16xbf16>, vector<128x16xf32> -> vector<128x16xf32>
    %c0_5 = arith.constant 0 : index
    %c0_6 = arith.constant 0 : index
    %c0_7 = arith.constant 0 : index
    %7 = vector.load %arg4[%c0_5, %c0_6, %c0_7] : memref<1x1x16xf32, #tpu.memory_space<vmem>>, vector<1x1x16xf32>
    %8 = vector.shape_cast %7 : vector<1x1x16xf32> to vector<1x16xf32>
    %9 = vector.broadcast %8 : vector<1x16xf32> to vector<128x16xf32>
    %10 = arith.addf %6, %9 : vector<128x16xf32>
    %11 = vector.extract_strided_slice %10 {offsets = [0, 0], sizes = [128, 8], strides = [1, 1]} : vector<128x16xf32> to vector<128x8xf32>
    %12 = vector.shape_cast %11 : vector<128x8xf32> to vector<1x128x8xf32>
    %13 = vector.extract_strided_slice %10 {offsets = [0, 8], sizes = [128, 8], strides = [1, 1]} : vector<128x16xf32> to vector<128x8xf32>
    %14 = vector.shape_cast %13 : vector<128x8xf32> to vector<1x128x8xf32>
    %15 = arith.truncf %12 : vector<1x128x8xf32> to vector<1x128x8xbf16>
    %16 = arith.truncf %12 : vector<1x128x8xf32> to vector<1x128x8xbf16>
    "tpu.trace_start"() <{level = 10 : i32, message = "bqd,bkd->bqk"}> : () -> ()
    %cst_8 = arith.constant dense<0.000000e+00> : vector<1x128x128xf32>
    %17 = tpu.matmul %15, %16, %cst_8 {dimension_numbers = #tpu.dot_dimension_numbers<[2], [2], [1], [1], [0, 0, 0, 1, 1, 1], [0], [0]>} : vector<1x128x8xbf16>, vector<1x128x8xbf16>, vector<1x128x128xf32> -> vector<1x128x128xf32>
    "tpu.trace_stop"() : () -> ()
    %cst_9 = arith.constant 0.353553385 : f32
    %18 = vector.broadcast %cst_9 : f32 to vector<1x128x128xf32>
    %19 = arith.mulf %17, %18 : vector<1x128x128xf32>
    %20 = tpu.iota {dimensions = array<i32: 0>} : vector<128x128xi32>
    %21 = tpu.iota {dimensions = array<i32: 1>} : vector<128x128xi32>
    %22 = arith.cmpi sge, %20, %21 : vector<128x128xi32>
    %23 = arith.subi %20, %21 : vector<128x128xi32>
    %24 = math.absi %23 : vector<128x128xi32>
    %25 = arith.sitofp %24 : vector<128x128xi32> to vector<128x128xf32>
    %26 = arith.cmpi sgt, %20, %21 : vector<128x128xi32>
    %27 = arith.extui %26 : vector<128x128xi1> to vector<128x128xi32>
    %28 = arith.sitofp %27 : vector<128x128xi32> to vector<128x128xf32>
    %cst_10 = arith.constant -1.000000e+32 : f32
    %29 = vector.shape_cast %22 : vector<128x128xi1> to vector<1x128x128xi1>
    %30 = vector.broadcast %cst_10 : f32 to vector<1x128x128xf32>
    %31 = arith.select %29, %19, %30 : vector<1x128x128xi1>, vector<1x128x128xf32>
    %cst_11 = arith.constant dense<0xFF800000> : vector<1x128xf32>
    %32 = vector.multi_reduction <maximumf>, %31, %cst_11 [2] : vector<1x128x128xf32> to vector<1x128xf32>
    %33 = vector.shape_cast %32 : vector<1x128xf32> to vector<1x128x1xf32>
    %34 = vector.broadcast %33 : vector<1x128x1xf32> to vector<1x128x128xf32>
    %35 = arith.subf %31, %34 : vector<1x128x128xf32>
    %36 = math.exp %35 : vector<1x128x128xf32>
    %cst_12 = arith.constant dense<0.000000e+00> : vector<1x128xf32>
    %37 = vector.multi_reduction <add>, %36, %cst_12 [2] : vector<1x128x128xf32> to vector<1x128xf32>
    %38 = vector.shape_cast %37 : vector<1x128xf32> to vector<1x128x1xf32>
    %39 = tpu.reciprocal %38 {approx = true} : vector<1x128x1xf32> -> vector<1x128x1xf32>
    %40 = vector.broadcast %39 : vector<1x128x1xf32> to vector<1x128x128xf32>
    %41 = arith.mulf %36, %40 : vector<1x128x128xf32>
    %42 = vector.shape_cast %41 : vector<1x128x128xf32> to vector<128x128xf32>
    %43 = arith.truncf %42 : vector<128x128xf32> to vector<128x128xbf16>
    %44 = arith.truncf %28 : vector<128x128xf32> to vector<128x128xbf16>
    %cst_13 = arith.constant dense<0.000000e+00> : vector<128x128xf32>
    %45 = tpu.matmul %43, %44, %cst_13 {dimension_numbers = #tpu.dot_dimension_numbers<[1], [0], [0], [1], [0, 0, 1, 1], [], []>} : vector<128x128xbf16>, vector<128x128xbf16>, vector<128x128xf32> -> vector<128x128xf32>
    %46 = vector.shape_cast %45 : vector<128x128xf32> to vector<1x128x128xf32>
    %47 = vector.shape_cast %25 : vector<128x128xf32> to vector<1x128x128xf32>
    %48 = arith.mulf %46, %47 : vector<1x128x128xf32>
    %cst_14 = arith.constant 0.000000e+00 : f32
    %49 = vector.broadcast %cst_14 : f32 to vector<1x128x128xf32>
    %50 = arith.maximumf %48, %49 : vector<1x128x128xf32>
    %51 = math.sqrt %50 : vector<1x128x128xf32>
    %52 = arith.index_cast %arg1 : i32 to index
    %53 = memref.load %arg7[%52] : memref<4xf32, #tpu.memory_space<smem>>
    %54 = math.absf %53 : f32
    %cst_15 = arith.constant 0.000000e+00 : f32
    %55 = arith.subf %cst_15, %54 : f32
    %56 = vector.broadcast %55 : f32 to vector<1x128x128xf32>
    %57 = arith.mulf %51, %56 : vector<1x128x128xf32>
    %58 = math.exp %57 : vector<1x128x128xf32>
    %cst_16 = arith.constant 9.99999974E-6 : f32
    %cst_17 = arith.constant 1.000000e+05 : f32
    %59 = vector.broadcast %cst_16 : f32 to vector<1x128x128xf32>
    %60 = arith.maximumf %59, %58 : vector<1x128x128xf32>
    %61 = vector.broadcast %cst_17 : f32 to vector<1x128x128xf32>
    %62 = arith.minimumf %61, %60 : vector<1x128x128xf32>
    %63 = arith.mulf %19, %62 : vector<1x128x128xf32>
    %cst_18 = arith.constant -1.000000e+32 : f32
    %64 = vector.shape_cast %22 : vector<128x128xi1> to vector<1x128x128xi1>
    %65 = vector.broadcast %cst_18 : f32 to vector<1x128x128xf32>
    %66 = arith.select %64, %63, %65 : vector<1x128x128xi1>, vector<1x128x128xf32>
    %cst_19 = arith.constant dense<0xFF800000> : vector<1x128xf32>
    %67 = vector.multi_reduction <maximumf>, %66, %cst_19 [2] : vector<1x128x128xf32> to vector<1x128xf32>
    %68 = vector.shape_cast %67 : vector<1x128xf32> to vector<1x128x1xf32>
    %69 = vector.broadcast %68 : vector<1x128x1xf32> to vector<1x128x128xf32>
    %70 = arith.subf %66, %69 : vector<1x128x128xf32>
    %71 = math.exp %70 : vector<1x128x128xf32>
    %cst_20 = arith.constant dense<0.000000e+00> : vector<1x128xf32>
    %72 = vector.multi_reduction <add>, %71, %cst_20 [2] : vector<1x128x128xf32> to vector<1x128xf32>
    %73 = vector.shape_cast %72 : vector<1x128xf32> to vector<1x128x1xf32>
    %74 = tpu.reciprocal %73 {approx = true} : vector<1x128x1xf32> -> vector<1x128x1xf32>
    %75 = vector.broadcast %74 : vector<1x128x1xf32> to vector<1x128x128xf32>
    %76 = arith.mulf %71, %75 : vector<1x128x128xf32>
    %cst_21 = arith.constant 0.000000e+00 : f32
    %77 = vector.shape_cast %22 : vector<128x128xi1> to vector<1x128x128xi1>
    %78 = vector.broadcast %cst_21 : f32 to vector<1x128x128xf32>
    %79 = arith.select %77, %76, %78 : vector<1x128x128xi1>, vector<1x128x128xf32>
    %80 = arith.truncf %79 : vector<1x128x128xf32> to vector<1x128x128xbf16>
    %81 = arith.truncf %14 : vector<1x128x8xf32> to vector<1x128x8xbf16>
    "tpu.trace_start"() <{level = 10 : i32, message = "bqk,bkd->bqd"}> : () -> ()
    %cst_22 = arith.constant dense<0.000000e+00> : vector<1x128x8xf32>
    %82 = tpu.matmul %80, %81, %cst_22 {dimension_numbers = #tpu.dot_dimension_numbers<[2], [1], [1], [2], [0, 0, 0, 1, 1, 2], [0], [0]>} : vector<1x128x128xbf16>, vector<1x128x8xbf16>, vector<1x128x8xf32> -> vector<1x128x8xf32>
    "tpu.trace_stop"() : () -> ()
    %83 = vector.shape_cast %82 : vector<1x128x8xf32> to vector<128x8xf32>
    %84 = arith.truncf %83 : vector<128x8xf32> to vector<128x8xbf16>
    %c0_23 = arith.constant 0 : index
    %c0_24 = arith.constant 0 : index
    %c0_25 = arith.constant 0 : index
    %85 = vector.load %arg5[%c0_23, %c0_24, %c0_25] : memref<1x8x32xf32, #tpu.memory_space<vmem>>, vector<1x8x32xf32>
    %86 = vector.shape_cast %85 : vector<1x8x32xf32> to vector<8x32xf32>
    %87 = arith.truncf %86 : vector<8x32xf32> to vector<8x32xbf16>
    %cst_26 = arith.constant dense<0.000000e+00> : vector<128x32xf32>
    %88 = tpu.matmul %84, %87, %cst_26 {dimension_numbers = #tpu.dot_dimension_numbers<[1], [0], [0], [1], [0, 0, 1, 1], [], []>} : vector<128x8xbf16>, vector<8x32xbf16>, vector<128x32xf32> -> vector<128x32xf32>
    %c0_i32 = arith.constant 0 : i32
    %89 = arith.cmpi eq, %arg1, %c0_i32 : i32
    %90 = arith.extui %89 : i1 to i32
    %c0_i32_27 = arith.constant 0 : i32
    %91 = arith.cmpi ne, %90, %c0_i32_27 : i32
    scf.if %91 {
      %cst_33 = arith.constant 0.000000e+00 : f32
      %98 = vector.broadcast %cst_33 : f32 to vector<128x32xf32>
      %c0_34 = arith.constant 0 : index
      %c0_35 = arith.constant 0 : index
      %99 = vector.load %arg11[%c0_34, %c0_35] : memref<128x32xf32, #tpu.memory_space<vmem>>, vector<128x32xf32>
      tpu.vector_store %arg11[%c0_34, %c0_35], %98 {strides = array<i32>} : memref<128x32xf32, #tpu.memory_space<vmem>>, vector<128x32xf32>,
    } else {
    }
    %c0_28 = arith.constant 0 : index
    %c0_29 = arith.constant 0 : index
    %92 = vector.load %arg11[%c0_28, %c0_29] : memref<128x32xf32, #tpu.memory_space<vmem>>, vector<128x32xf32>
    %93 = arith.addf %92, %88 : vector<128x32xf32>
    %c0_30 = arith.constant 0 : index
    %c0_31 = arith.constant 0 : index
    %94 = vector.load %arg11[%c0_30, %c0_31] : memref<128x32xf32, #tpu.memory_space<vmem>>, vector<128x32xf32>
    tpu.vector_store %arg11[%c0_30, %c0_31], %93 {strides = array<i32>} : memref<128x32xf32, #tpu.memory_space<vmem>>, vector<128x32xf32>,
    %c3_i32 = arith.constant 3 : i32
    %95 = arith.cmpi eq, %arg1, %c3_i32 : i32
    %96 = arith.extui %95 : i1 to i32
    %c0_i32_32 = arith.constant 0 : i32
    %97 = arith.cmpi ne, %96, %c0_i32_32 : i32
    scf.if %97 {
      %c0_33 = arith.constant 0 : index
      %c0_34 = arith.constant 0 : index
      %98 = vector.load %arg11[%c0_33, %c0_34] : memref<128x32xf32, #tpu.memory_space<vmem>>, vector<128x32xf32>
      %c0_35 = arith.constant 0 : index
      %c0_36 = arith.constant 0 : index
      %99 = vector.load %arg6[%c0_35, %c0_36] : memref<1x32xf32, #tpu.memory_space<vmem>>, vector<1x32xf32>
      %100 = vector.broadcast %99 : vector<1x32xf32> to vector<128x32xf32>
      %101 = arith.addf %98, %100 : vector<128x32xf32>
      %c0_37 = arith.constant 0 : index
      %c0_38 = arith.constant 0 : index
      %c0_39 = arith.constant 0 : index
      %102 = vector.load %arg2[%c0_37, %c0_38, %c0_39] : memref<1x128x32xf32, #tpu.memory_space<vmem>>, vector<1x128x32xf32>
      %103 = vector.shape_cast %102 : vector<1x128x32xf32> to vector<128x32xf32>
      %104 = arith.addf %103, %101 : vector<128x32xf32>
      %cst_40 = arith.constant dense<0.000000e+00> : vector<128xf32>
      %105 = vector.multi_reduction <add>, %104, %cst_40 [1] : vector<128x32xf32> to vector<128xf32>
      %106 = vector.shape_cast %105 : vector<128xf32> to vector<128x1xf32>
      %cst_41 = arith.constant 3.200000e+01 : f32
      %107 = vector.broadcast %cst_41 : f32 to vector<128x1xf32>
      %108 = arith.divf %106, %107 : vector<128x1xf32>
      %109 = vector.broadcast %108 : vector<128x1xf32> to vector<128x32xf32>
      %110 = arith.subf %104, %109 : vector<128x32xf32>
      %111 = arith.mulf %110, %110 : vector<128x32xf32>
      %cst_42 = arith.constant dense<0.000000e+00> : vector<128xf32>
      %112 = vector.multi_reduction <add>, %111, %cst_42 [1] : vector<128x32xf32> to vector<128xf32>
      %113 = vector.shape_cast %112 : vector<128xf32> to vector<128x1xf32>
      %cst_43 = arith.constant 3.200000e+01 : f32
      %114 = vector.broadcast %cst_43 : f32 to vector<128x1xf32>
      %115 = arith.divf %113, %114 : vector<128x1xf32>
      %116 = vector.broadcast %108 : vector<128x1xf32> to vector<128x32xf32>
      %117 = arith.subf %104, %116 : vector<128x32xf32>
      %cst_44 = arith.constant 9.99999974E-6 : f32
      %118 = vector.broadcast %cst_44 : f32 to vector<128x1xf32>
      %119 = arith.addf %115, %118 : vector<128x1xf32>
      %120 = math.rsqrt %119 : vector<128x1xf32>
      %121 = vector.broadcast %120 : vector<128x1xf32> to vector<128x32xf32>
      %122 = arith.mulf %117, %121 : vector<128x32xf32>
      %c0_45 = arith.constant 0 : index
      %c0_46 = arith.constant 0 : index
      %123 = vector.load %arg8[%c0_45, %c0_46] : memref<1x32xf32, #tpu.memory_space<vmem>>, vector<1x32xf32>
      %124 = vector.broadcast %123 : vector<1x32xf32> to vector<128x32xf32>
      %125 = arith.mulf %122, %124 : vector<128x32xf32>
      %c0_47 = arith.constant 0 : index
      %c0_48 = arith.constant 0 : index
      %126 = vector.load %arg9[%c0_47, %c0_48] : memref<1x32xf32, #tpu.memory_space<vmem>>, vector<1x32xf32>
      %127 = vector.broadcast %126 : vector<1x32xf32> to vector<128x32xf32>
      %128 = arith.addf %125, %127 : vector<128x32xf32>
      %129 = vector.shape_cast %128 : vector<128x32xf32> to vector<1x128x32xf32>
      %c0_49 = arith.constant 0 : index
      %c0_50 = arith.constant 0 : index
      %c0_51 = arith.constant 0 : index
      %130 = vector.load %arg10[%c0_49, %c0_50, %c0_51] : memref<1x128x32xf32, #tpu.memory_space<vmem>>, vector<1x128x32xf32>
      tpu.vector_store %arg10[%c0_49, %c0_50, %c0_51], %129 {strides = array<i32>} : memref<1x128x32xf32, #tpu.memory_space<vmem>>, vector<1x128x32xf32>,
    } else {
    }
    return
  }
  func.func @transform_0(%arg0: i32, %arg1: i32) -> (i32, i32, i32) {
    %c0_i32 = arith.constant 0 : i32
    %c0_i32_0 = arith.constant 0 : i32
    %c0_i32_1 = arith.constant 0 : i32
    return %arg0, %c0_i32, %c0_i32_0 : i32, i32, i32
  }
  func.func @transform_1(%arg0: i32, %arg1: i32) -> (i32, i32, i32) {
    %c0_i32 = arith.constant 0 : i32
    %c0_i32_0 = arith.constant 0 : i32
    %c0_i32_1 = arith.constant 0 : i32
    return %arg1, %c0_i32, %c0_i32_0 : i32, i32, i32
  }
  func.func @transform_2(%arg0: i32, %arg1: i32) -> (i32, i32, i32) {
    %c0_i32 = arith.constant 0 : i32
    %c0_i32_0 = arith.constant 0 : i32
    %c0_i32_1 = arith.constant 0 : i32
    return %arg1, %c0_i32, %c0_i32_0 : i32, i32, i32
  }
  func.func @transform_3(%arg0: i32, %arg1: i32) -> (i32, i32, i32) {
    %c0_i32 = arith.constant 0 : i32
    %c0_i32_0 = arith.constant 0 : i32
    %c0_i32_1 = arith.constant 0 : i32
    return %arg1, %c0_i32, %c0_i32_0 : i32, i32, i32
  }
  func.func @transform_4(%arg0: i32, %arg1: i32) -> (i32, i32) {
    %c0_i32 = arith.constant 0 : i32
    %c0_i32_0 = arith.constant 0 : i32
    %c0_i32_1 = arith.constant 0 : i32
    return %c0_i32, %c0_i32_0 : i32, i32
  }
  func.func @transform_5(%arg0: i32, %arg1: i32) -> i32 {
    %c0_i32 = arith.constant 0 : i32
    %c0_i32_0 = arith.constant 0 : i32
    return %c0_i32 : i32
  }
  func.func @transform_6(%arg0: i32, %arg1: i32) -> (i32, i32) {
    %c0_i32 = arith.constant 0 : i32
    %c0_i32_0 = arith.constant 0 : i32
    %c0_i32_1 = arith.constant 0 : i32
    return %c0_i32, %c0_i32_0 : i32, i32
  }
  func.func @transform_7(%arg0: i32, %arg1: i32) -> (i32, i32) {
    %c0_i32 = arith.constant 0 : i32
    %c0_i32_0 = arith.constant 0 : i32
    %c0_i32_1 = arith.constant 0 : i32
    return %c0_i32, %c0_i32_0 : i32, i32
  }
  func.func @transform_8(%arg0: i32, %arg1: i32) -> (i32, i32, i32) {
    %c0_i32 = arith.constant 0 : i32
    %c0_i32_0 = arith.constant 0 : i32
    %c0_i32_1 = arith.constant 0 : i32
    return %arg0, %c0_i32, %c0_i32_0 : i32, i32, i32
  }
}

</mosaic_0001>

<bundles_post_ra>
// kernel: tpu_custom_call.1
= control target key start
LH: loop header
LB: loop body
LE: loop exit
PB: predicated region body
PF: predicated region fallthrough
CT: control target
= control target key end

     0   :  { %13 = vsyncpa [#allocation4], 0  ;;  %s3063_s27 = smov 0   ;;  %s3065_s28 = smov 0   ;;  %s4458_s0 = inlined_call_operand.vmem [shape: f32[2,128,32], index: 0, kind: input, shape index: {}]   ;;  %s4459_s1 = inlined_call_operand.vmem [shape: f32[4,32,16], index: 1, kind: input, shape index: {}]   ;;  %s4460_s2 = inlined_call_operand.vmem [shape: f32[4,1,16], index: 2, kind: input, shape index: {}]   ;;  %s4461_s3 = inlined_call_operand.vmem [shape: f32[4,8,32], index: 3, kind: input, shape index: {}]   ;;  %s4462_s4 = inlined_call_operand.vmem [shape: f32[1,32], index: 4, kind: input, shape index: {}]   ;;  %s4463_s5 = inlined_call_operand.vmem [shape: f32[4], index: 5, kind: input, shape index: {}]   ;;  %s4464_s6 = inlined_call_operand.vmem [shape: f32[1,32], index: 6, kind: input, shape index: {}]   ;;  %s4465_s7 = inlined_call_operand.vmem [shape: f32[1,32], index: 7, kind: input, shape index: {}]   ;;  %s4466_s8 = inlined_call_operand.vmem [shape: f32[2,128,32], index: 8, kind: output, shape index: {}]  }
   0x1   :  { %s3067_s29 = smov 0   ;;  %s3069_s30 = smov 0  }
   0x2   :  { %s3071_s9 = smov 0  }
   0x3 LB: > { %s2343_s10 = sadd.s32 4294967295, %s3012_s9   ;;  %s28_s11 = sadd.s32 1, %s3004_s29  ;;  %s3012_s9 = sphi %s3071_s9, %s19_s9   ;;  %s3008_s30 = sphi %s3069_s30, %s4635_s30   ;;  %s3004_s29 = sphi %s3067_s29, %s4634_s29   ;;  %s3000_s28 = sphi %s3065_s28, %s4633_s28   ;;  %s2996_s27 = sphi %s3063_s27, %s4632_s27  }
   0x4   : > { %p29_p0 = scmp.ge.s32.totalorder %s28_s11, 4  ;;  %s31_s12 = sadd.s32 1, %s3008_s30 }
   0x5   : > { %p2345_p1 = scmp.ge.s32.totalorder %s3012_s9, 1  ;;  %p250_p2 = scmp.lt.s32.totalorder %s3012_s9, 9 }
   0x6   : > { %s4637_s11 = smov (%p29_p0, %s28_s11), 0  ;;  %s4639_s12 = smov (!%p29_p0, %s31_s12), %s3008_s30 }
   0x7   : > { %p3096_p3 = pnand %p2345_p1, %p250_p2  ;;  %p33_p4 = scmp.ge.s32.totalorder %s4639_s12, 2 }
   0x8   : > { %p3100_p5 = scmp.eq.s32.totalorder %s2343_s10, 0  ;;  %s266_s17 = sshll.u32 %s4463_s5, 4  ;;  %s267_s17 = int_to_ptr.vmem [resolvable:$true] %s266_s17 }
   0x9   : > { %p2681_p6 = pneg %p3096_p3  ;;  %s4641_s12 = smov (%p33_p4, %s4639_s12), 0 }
   0xa   : > { %s2955_s18 = scalar_lea.vmem %s267_s17, 16  ;;  %p2963_p12 = scmp.lt.s32.totalorder %s267_s17, %s267_s17 }
   0xb   : > { %p2682_p7 = pnand %p3100_p5, %p2681_p6  ;;  %p2956_p8 = scmp.ne.s32.totalorder %s267_s17, %s2955_s18 }
   0xc   : > { %p2964_p13 = scmp.lt.s32.totalorder %s2955_s18, %s2955_s18 }
   0xd   : > { %p2957_p9 = pneg %p2682_p7 }
   0xe   : > { %p2965_p0 = por %p2964_p13, %p2963_p12 }
   0xf   : > { %p2958_p10 = pnand %p2957_p9, %p2956_p8 }
  0x11   : > { %p2959_p11 = pneg %p2958_p10 }
  0x13   : > { %p2966_p1 = pnand %p2965_p0, %p2959_p11 }
  0x15   : > { %2969 = shalt.err (!%p2966_p1)
}
  0x16   : > { %s3014_s19 = smov [#allocation3]   ;;  %314 = sbr.rel (%p3096_p3) target bundleno = 2325 (0x915), region = 52 }
  0x17   : > { %2684 = dma.vmem_to_smem (!%p2682_p7), %s267_s17, 16, %s3014_s19, [#allocation4]  }
  0x1d   : > { %2991 = dma.done.wait (%p3100_p5), [#allocation4], 16  }
  0x1e   : > { %2993 = vsyncadd (%p3100_p5), [#allocation4], 4294967280 }
  0x1f   : > { %320 = sfence }
  0x20   : > { %p366_p2 = scmp.lt.s32.totalorder %s2996_s27, 3  ;;  %p361_p4 = scmp.lt.s32.totalorder %s3000_s28, 1  ;;  %vm4467_vm0 = vcmask 261120   ;;  %vm4468_vm1 = vcmask 64512  }
  0x21   : > { %s3016_s19 = smov 120   ;;  %p2454_p3 = scmp.ne.s32.totalorder %s2996_s27, 0 }
  0x22   : > { %s3122_s20 = scalar_select %p366_p2, %s2996_s27, 3 }
  0x23   : > { %s4643_s28 = smov (!%p361_p4, %s3000_s28), 1 }
  0x24   : > { %s2462_s21 = sshll.u32 %s3122_s20, 5  ;;  %s2461_s25 = sshll.u32 %s4643_s28, 7 }
  0x25   : > { %s370_s24 = scalar_lea.vmem %s4459_s1, %s2462_s21  ;;  %s3132_s13 = scalar_lea.vmem %s4458_s0, %s2461_s25 }
  0x26   : > { %v408_v0 = vld [vmem:[%s370_s24] sm:$0xff]  ;;  %v409_v1 = vld [vmem:[%s370_s24 + $0x8] sm:$0xff]  ;;  %v410_v2 = vld [vmem:[%s370_s24 + $0x10] sm:$0xff]  ;;  %s3137_s16 = scalar_lea.vmem %s4466_s8, %s2461_s25  ;;  %s373_s18 = scalar_lea.vmem %s4460_s2, %s3122_s20 }
  0x27   : > { %v412_v3 = vpack.c.bf16 %v409_v1, %v408_v0  ;;  %v411_v4 = vld [vmem:[%s370_s24 + $0x18] sm:$0xff]  ;;  %v384_v5 = vld [vmem:[%s3132_s13] sm:$0xff]  ;;  %v385_v6 = vld [vmem:[%s3132_s13 + $0x8] sm:$0xff]  ;;  %s3609_s21 = sld [smem:[#allocation3 + %s2996_s27]]  ;;  %s2354_s24 = sshll.u32 %s3122_s20, 3 }
  0x28   : > { %v413_v7 = vpack.c.bf16 %v411_v4, %v410_v2  ;;  %v400_v8 = vpack.c.bf16 %v385_v6, %v384_v5  ;;  %v386_v9 = vld [vmem:[%s3132_s13 + $0x10] sm:$0xff]  ;;  %v387_v10 = vld [vmem:[%s3132_s13 + $0x18] sm:$0xff]  ;;  %v388_v11 = vld [vmem:[%s3132_s13 + $0x20] sm:$0xff]  ;;  %s377_s10 = scalar_lea.vmem %s4461_s3, %s2354_s24 }
  0x29   : > { %2531 = vmatprep.subr.bf16.mxu0 %v412_v3  ;;  %v389_v12 = vld [vmem:[%s3132_s13 + $0x28] sm:$0xff]  ;;  %v401_v13 = vpack.c.bf16 %v387_v10, %v386_v9  ;;  %v390_v15 = vld [vmem:[%s3132_s13 + $0x30] sm:$0xff]  ;;  %v391_v16 = vld [vmem:[%s3132_s13 + $0x38] sm:$0xff] }
  0x2a   : > { %2532 = vmatpush3.bf16.msra.mxu0 %v412_v3  ;;  %2535 = vmatprep.mubr.msk.bf16.mxu0 %vm4467_vm0, %v400_v8  ;;  %v402_v14 = vpack.c.bf16 %v389_v12, %v388_v11  ;;  %v392_v17 = vld [vmem:[%s3132_s13 + $0x40] sm:$0xff]  ;;  %v393_v18 = vld [vmem:[%s3132_s13 + $0x48] sm:$0xff]  ;;  %v403_v19 = vpack.c.bf16 %v391_v16, %v390_v15  ;;  %v394_v21 = vld [vmem:[%s3132_s13 + $0x50] sm:$0xff]  ;;  %v689_v15 = vlaneseq }
  0x2b   : > { %2533 = vmatprep.subr.bf16.mxu0 %v413_v7  ;;  %v404_v20 = vpack.c.bf16 %v393_v18, %v392_v17  ;;  %v395_v22 = vld [vmem:[%s3132_s13 + $0x58] sm:$0xff]  ;;  %v396_v23 = vld [vmem:[%s3132_s13 + $0x60] sm:$0xff]  ;;  %v397_v24 = vld [vmem:[%s3132_s13 + $0x68] sm:$0xff] }
  0x2c   : > { %v405_v25 = vpack.c.bf16 %v395_v22, %v394_v21  ;;  %v406_v26 = vpack.c.bf16 %v397_v24, %v396_v23  ;;  %v398_v27 = vld [vmem:[%s3132_s13 + $0x70] sm:$0xff]  ;;  %v399_v28 = vld [vmem:[%s3132_s13 + $0x78] sm:$0xff]  ;;  %v2357_v30 = vld [vmem:[%s373_s18] ss:$0 sm:$0xff]  ;;  %v3231_v16 = vshrl.u32 %v689_v15, 7  ;;  %v3236_v18 = vand.u32 127, %v689_v15 }
  0x2d   : > { %v407_v29 = vpack.c.bf16 %v399_v28, %v398_v27  ;;  %s1270_s22 = sand.u32 2147483647, %s3609_s21 }
  0x2e   : > { %2534 = vmatpush3.bf16.msra.mxu0 %v413_v7  ;;  %v3234_v17 = vadd.s32 16, %v3231_v16  ;;  %vm708_vm3 = vcmp.ge.s32.totalorder %v3231_v16, %v3236_v18  ;;  %v3248_v23 = vadd.s32 8, %v3231_v16  ;;  %s1271_s23 = ssub.f32 0.0, %s1270_s22 }
  0x30   : > { %vm710_vm2 = vcmp.ge.s32.totalorder %v3234_v17, %v3236_v18  ;;  %vm709_vm5 = vcmp.ge.s32.totalorder %v3248_v23, %v3236_v18 }
  0x31   : > { %2536 = vmatmul.mubr.msk.bf16.vlgmr.msra.gmra.mrb[0].mxu0 %vm4467_vm0, %v401_v13 }
  0x32   : > { %2539 = vmatprep.mubr.msk.bf16.mxu0 %vm4467_vm0, %v402_v14 }
  0x39   : > { %2540 = vmatmul.mubr.msk.bf16.gmra.mrb[4].mxu0 %vm4467_vm0, %v403_v19 }
  0x3a   : > { %2543 = vmatprep.mubr.msk.bf16.mxu0 %vm4467_vm0, %v404_v20  ;;  %v3241_v20 = vadd.s32 24, %v3231_v16 }
  0x3c   : > { %vm711_vm4 = vcmp.ge.s32.totalorder %v3241_v20, %v3236_v18 }
  0x41   : > { %2544 = vmatmul.mubr.msk.bf16.gmra.mrb[8].mxu0 %vm4467_vm0, %v405_v25 }
  0x42   : > { %2547 = vmatprep.mubr.msk.bf16.mxu0 %vm4467_vm0, %v406_v26 }
  0x49   : > { %2548 = vmatmul.mubr.msk.bf16.gmra.mrb[12].mxu0 %vm4467_vm0, %v407_v29 }
 0x104   : > { %v2537_v31 = vpop.f32.mrb[0].mxu0 }
 0x105   : > { %v480_v32 = vpop.f32.mrb[1].mxu0  ;;  %v489_v34 = vadd.f32 %v2537_v31, %v2357_v30  ;;  %v3275_v31 = vadd.s32 32, %v3231_v16 }
 0x106   : > { %v2538_v33 = vpop.f32.mrb[2].mxu0  ;;  %v481_v37 = vadd.f32 %v2357_v30, %v480_v32 }
 0x107   : > { %v492_v35 = vadd.f32 %v2538_v33, %v2357_v30  ;;  %v483_v36 = vpop.f32.mrb[3].mxu0  ;;  %v3284_v33 = vadd.s32 40, %v3231_v16  ;;  %vm4494_vm6 = vcmp.ge.s32.totalorder %v3275_v31, %v3236_v18 }
 0x108   : > { %v484_v38 = vadd.f32 %v2357_v30, %v483_v36 }
 0x109   : > { %v3167_v39 = vpack.c.bf16 %v492_v35, %v489_v34  ;;  %vm4477_vm7 = vcmp.ge.s32.totalorder %v3284_v33, %v3236_v18 }
 0x10a   : > { %v3169_v40 = vpack.c.bf16 %v484_v38, %v481_v37  ;;  %v3297_v37 = vadd.s32 48, %v3231_v16 }
 0x10b   : > { %v556_v52 = vsel %vm4468_vm1, %v3167_v39, 0 }
 0x10c   : > { %2667 = vmatprep.subr.msk.bf16.mxu1 %vm4468_vm1, %v3169_v40  ;;  %2567 = vmatprep.mubr.msk.bf16.mxu1 %vm4468_vm1, %v3169_v40  ;;  %v553_v41 = vsel %vm4468_vm1, %v3169_v40, 0  ;;  %v2541_v42 = vpop.f32.mrb[4].mxu0  ;;  %vm714_vm8 = vcmp.ge.s32.totalorder %v3297_v37, %v3236_v18 }
 0x10d   : > { %2552 = vmatpush3.bf16.xpose.msra.mxu1 %v553_v41  ;;  %v505_v43 = vadd.f32 %v2541_v42, %v2357_v30  ;;  %v496_v44 = vpop.f32.mrb[5].mxu0 }
 0x10e   : > { %2668 = vmatprep.subr.msk.bf16.mxu1 %vm4468_vm1, %v3167_v39  ;;  %v497_v45 = vadd.f32 %v2357_v30, %v496_v44  ;;  %v2542_v46 = vpop.f32.mrb[6].mxu0 }
 0x10f   : > { %v508_v47 = vadd.f32 %v2542_v46, %v2357_v30  ;;  %v499_v48 = vpop.f32.mrb[7].mxu0 }
 0x110   : > { %v500_v49 = vadd.f32 %v2357_v30, %v499_v48 }
 0x111   : > { %v3179_v50 = vpack.c.bf16 %v508_v47, %v505_v43  ;;  %v3304_v43 = vadd.s32 56, %v3231_v16  ;;  %v3320_v47 = vadd.s32 64, %v3231_v16 }
 0x112   : > { %v3181_v51 = vpack.c.bf16 %v500_v49, %v497_v45 }
 0x113   : > { %4498 = vst [vmem:[#allocation6_spill] sm:$0xff] %v3179_v50  ;;  %v562_v10 = vsel %vm4468_vm1, %v3179_v50, 0  ;;  %vm4495_vm9 = vcmp.ge.s32.totalorder %v3304_v43, %v3236_v18  ;;  %vm4473_vm10 = vcmp.ge.s32.totalorder %v3320_v47, %v3236_v18 }
 0x114   : > { %v2545_v53 = vpop.f32.mrb[8].mxu0  ;;  %v559_v63 = vsel %vm4468_vm1, %v3181_v51, 0 }
 0x115   : > { %2554 = vmatpush3.bf16.xpose.msra.mxu1 %v556_v52  ;;  %v521_v54 = vadd.f32 %v2545_v53, %v2357_v30  ;;  %v512_v55 = vpop.f32.mrb[9].mxu0  ;;  %v3334_v52 = vadd.s32 72, %v3231_v16 }
 0x116   : > { %2669 = vmatprep.subr.msk.bf16.mxu1 %vm4468_vm1, %v3181_v51  ;;  %v513_v56 = vadd.f32 %v2357_v30, %v512_v55  ;;  %v2546_v57 = vpop.f32.mrb[10].mxu0 }
 0x117   : > { %v524_v58 = vadd.f32 %v2546_v57, %v2357_v30  ;;  %v515_v59 = vpop.f32.mrb[11].mxu0  ;;  %vm4472_vm11 = vcmp.ge.s32.totalorder %v3334_v52, %v3236_v18 }
 0x118   : > { %v516_v60 = vadd.f32 %v2357_v30, %v515_v59 }
 0x119   : > { %v3187_v61 = vpack.c.bf16 %v524_v58, %v521_v54 }
 0x11a   : > { %v3189_v62 = vpack.c.bf16 %v516_v60, %v513_v56  ;;  %v3346_v56 = vadd.s32 80, %v3231_v16 }
 0x11b   : > { %4499 = vst [vmem:[#allocation7_spill] sm:$0xff] %v3187_v61  ;;  %v568_v12 = vsel %vm4468_vm1, %v3187_v61, 0 }
 0x11c   : > { %4500 = vst [vmem:[#allocation8_spill] sm:$0xff] %v3189_v62  ;;  %v2549_v0 = vpop.f32.mrb[12].mxu0  ;;  %v565_v11 = vsel %vm4468_vm1, %v3189_v62, 0  ;;  %vm4476_vm12 = vcmp.ge.s32.totalorder %v3346_v56, %v3236_v18 }
 0x11d   : > { %2556 = vmatpush3.bf16.xpose.msra.mxu1 %v559_v63  ;;  %v537_v1 = vadd.f32 %v2549_v0, %v2357_v30  ;;  %v528_v2 = vpop.f32.mrb[13].mxu0  ;;  %v3360_v63 = vadd.s32 88, %v3231_v16 }
 0x11e   : > { %2670 = vmatprep.subr.msk.bf16.mxu1 %vm4468_vm1, %v3179_v50  ;;  %v529_v3 = vadd.f32 %v2357_v30, %v528_v2  ;;  %v2550_v4 = vpop.f32.mrb[14].mxu0 }
 0x11f   : > { %v540_v5 = vadd.f32 %v2550_v4, %v2357_v30  ;;  %v531_v6 = vpop.f32.mrb[15].mxu0  ;;  %vm4475_vm13 = vcmp.ge.s32.totalorder %v3360_v63, %v3236_v18 }
 0x120   : > { %v532_v7 = vadd.f32 %v2357_v30, %v531_v6  ;;  %v3390_v6 = vadd.s32 104, %v3231_v16 }
 0x121   : > { %v3195_v8 = vpack.c.bf16 %v540_v5, %v537_v1 }
 0x122   : > { %v3197_v9 = vpack.c.bf16 %v532_v7, %v529_v3  ;;  %v3376_v3 = vadd.s32 96, %v3231_v16  ;;  %4504 = vst [vmem:[#allocation12_spill] sm:$0xff] %v3390_v6  ;;  %vm4469_vm15 = vcmp.ge.s32.totalorder %v3390_v6, %v3236_v18 }
 0x123   : > { %4501 = vst [vmem:[#allocation9_spill] sm:$0xff] %v3195_v8  ;;  %v574_v14 = vsel %vm4468_vm1, %v3195_v8, 0 }
 0x124   : > { %4502 = vst [vmem:[#allocation10_spill] sm:$0xff] %v3197_v9  ;;  %v571_v13 = vsel %vm4468_vm1, %v3197_v9, 0  ;;  %4503 = vst [vmem:[#allocation11_spill] sm:$0xff] %v3376_v3  ;;  %vm4470_vm14 = vcmp.ge.s32.totalorder %v3376_v3, %v3236_v18 }
 0x125   : > { %2558 = vmatpush3.bf16.xpose.msra.mxu1 %v562_v10 }
 0x126   : > { %2671 = vmatprep.subr.msk.bf16.mxu1 %vm4468_vm1, %v3189_v62 }
 0x12d   : > { %2560 = vmatpush3.bf16.xpose.msra.mxu1 %v565_v11 }
 0x12e   : > { %2672 = vmatprep.subr.msk.bf16.mxu1 %vm4468_vm1, %v3187_v61 }
 0x135   : > { %2562 = vmatpush3.bf16.xpose.msra.mxu1 %v568_v12  ;;  %v3402_v12 = vadd.s32 112, %v3231_v16 }
 0x136   : > { %2673 = vmatprep.subr.msk.bf16.mxu1 %vm4468_vm1, %v3197_v9 }
 0x137   : > { %vm4471_vm0 = vcmp.ge.s32.totalorder %v3402_v12, %v3236_v18 }
 0x13d   : > { %2564 = vmatpush3.bf16.xpose.msra.mxu1 %v571_v13 }
 0x13e   : > { %2674 = vmatprep.subr.msk.bf16.mxu1 %vm4468_vm1, %v3195_v8 }
 0x145   : > { %2566 = vmatpush3.bf16.xpose.msra.mxu1 %v574_v14 }
 0x14c   : > { %2568 = vmatmul.mubr.msk.bf16.vlgmr.msra.gmra.mrb[0].mxu1 %vm4468_vm1, %v3167_v39 }
 0x14d   : > { %2571 = vmatprep.mubr.msk.bf16.mxu1 %vm4468_vm1, %v3181_v51 }
 0x154   : > { %2572 = vmatmul.mubr.msk.bf16.gmra.mrb[4].mxu1 %vm4468_vm1, %v3179_v50 }
 0x155   : > { %2575 = vmatprep.mubr.msk.bf16.mxu1 %vm4468_vm1, %v3189_v62 }
 0x15c   : > { %2576 = vmatmul.mubr.msk.bf16.gmra.mrb[8].mxu1 %vm4468_vm1, %v3187_v61 }
 0x15d   : > { %2579 = vmatprep.mubr.msk.bf16.mxu1 %vm4468_vm1, %v3197_v9 }
 0x164   : > { %2580 = vmatmul.mubr.msk.bf16.gmra.mrb[12].mxu1 %vm4468_vm1, %v3195_v8 }
 0x21f   : > { %v2569_v19 = vpop.f32.mrb[0].mxu1 }
 0x220   : > { %v3243_v21 = vmul.f32 0.35355338, %v2569_v19  ;;  %v610_v22 = vpop.f32.mrb[1].mxu1 }
 0x221   : > { %v3250_v24 = vmul.f32 0.35355338, %v610_v22  ;;  %v2570_v25 = vpop.f32.mrb[2].mxu1  ;;  %v3416_v22 = vadd.s32 120, %v3231_v16 }
 0x222   : > { %v3252_v26 = vmul.f32 0.35355338, %v2570_v25  ;;  %v613_v27 = vpop.f32.mrb[3].mxu1  ;;  %v3258_v28 = vsel %vm710_vm2, %v3243_v21, -1e+32 }
 0x223   : > { %v3260_v29 = vmul.f32 0.35355338, %v613_v27  ;;  %840 = vmax.xlane.f32.xlu1 %v3258_v28  ;;  %v3267_v30 = vsel %vm708_vm3, %v3250_v24, -1e+32  ;;  %4506 = vst [vmem:[#allocation14_spill] sm:$0xff] %v3416_v22  ;;  %vm4474_vm1 = vcmp.ge.s32.totalorder %v3416_v22, %v3236_v18 }
 0x224   : > { %836 = vmax.xlane.f32.xlu0 %v3267_v30  ;;  %v3281_v32 = vsel %vm711_vm4, %v3252_v26, -1e+32 }
 0x225   : > { %v3291_v35 = vsel %vm709_vm5, %v3260_v29, -1e+32 }
 0x227   : > { %842 = vmax.xlane.f32.xlu1 %v3281_v32  ;;  %v2573_v34 = vpop.f32.mrb[4].mxu1 }
 0x228   : > { %838 = vmax.xlane.f32.xlu0 %v3291_v35  ;;  %v626_v36 = vpop.f32.mrb[5].mxu1  ;;  %v3306_v44 = vmul.f32 0.35355338, %v2573_v34 }
 0x229   : > { %v3299_v38 = vmul.f32 0.35355338, %v626_v36  ;;  %v2574_v41 = vpop.f32.mrb[6].mxu1 }
 0x22a   : > { %v629_v42 = vpop.f32.mrb[7].mxu1  ;;  %v3322_v48 = vmul.f32 0.35355338, %v2574_v41  ;;  %v3340_v54 = vsel %vm714_vm8, %v3306_v44, -1e+32 }
 0x22b   : > { %v3308_v45 = vmul.f32 0.35355338, %v629_v42  ;;  %v3314_v46 = vsel %vm4494_vm6, %v3299_v38, -1e+32 }
 0x22c   : > { %844 = vmax.xlane.f32.xlu0 %v3314_v46  ;;  %v3354_v59 = vsel %vm4495_vm9, %v3322_v48, -1e+32 }
 0x22d   : > { %v3328_v49 = vsel %vm4477_vm7, %v3308_v45, -1e+32 }
 0x22e   : > { %846 = vmax.xlane.f32.xlu1 %v3328_v49 }
 0x22f   : > { %v2577_v53 = vpop.f32.mrb[8].mxu1 }
 0x230   : > { %848 = vmax.xlane.f32.xlu0 %v3340_v54  ;;  %v642_v55 = vpop.f32.mrb[9].mxu1  ;;  %v3362_v0 = vmul.f32 0.35355338, %v2577_v53 }
 0x231   : > { %v3348_v57 = vmul.f32 0.35355338, %v642_v55  ;;  %v2578_v58 = vpop.f32.mrb[10].mxu1  ;;  %v4485_v55 = vmov 1.0|1.0  }
 0x232   : > { %850 = vmax.xlane.f32.xlu1 %v3354_v59  ;;  %v645_v60 = vpop.f32.mrb[11].mxu1  ;;  %v3378_v4 = vmul.f32 0.35355338, %v2578_v58  ;;  %v3396_v10 = vsel %vm4476_vm12, %v3362_v0, -1e+32  ;;  %vm809_vm12 = vcmp.gt.s32.totalorder %v3284_v33, %v3236_v18 }
 0x233   : > { %v3364_v1 = vmul.f32 0.35355338, %v645_v60  ;;  %v3370_v2 = vsel %vm4473_vm10, %v3348_v57, -1e+32  ;;  %vm807_vm10 = vcmp.gt.s32.totalorder %v3241_v20, %v3236_v18 }
 0x234   : > { %852 = vmax.xlane.f32.xlu0 %v3370_v2  ;;  %v3410_v15 = vsel %vm4475_vm13, %v3378_v4, -1e+32  ;;  %vm808_vm13 = vcmp.gt.s32.totalorder %v3275_v31, %v3236_v18 }
 0x235   : > { %v3384_v5 = vsel %vm4472_vm11, %v3364_v1, -1e+32  ;;  %vm2410_vm7 = vmpackc.low %vm809_vm12, %vm808_vm13  ;;  %vm814_vm13 = vcmp.gt.s32.totalorder %v3346_v56, %v3236_v18 }
 0x236   : > { %854 = vmax.xlane.f32.xlu1 %v3384_v5 }
 0x237   : > { %v2581_v7 = vpop.f32.mrb[12].mxu1 }
 0x238   : > { %856 = vmax.xlane.f32.xlu0 %v3396_v10  ;;  %v658_v11 = vpop.f32.mrb[13].mxu1  ;;  %v3418_v25 = vmul.f32 0.35355338, %v2581_v7 }
 0x239   : > { %v3404_v13 = vmul.f32 0.35355338, %v658_v11  ;;  %v2582_v14 = vpop.f32.mrb[14].mxu1 }
 0x23a   : > { %858 = vmax.xlane.f32.xlu1 %v3410_v15  ;;  %v661_v19 = vpop.f32.mrb[15].mxu1  ;;  %v3431_v36 = vmul.f32 0.35355338, %v2582_v14  ;;  %v3446_v42 = vsel %vm4471_vm0, %v3418_v25, -1e+32  ;;  %vm806_vm0 = vcmp.gt.s32.totalorder %v3234_v17, %v3236_v18 }
 0x23b   : > { %4505 = vst [vmem:[#allocation13_spill] sm:$0xff] %v3404_v13  ;;  %v3420_v27 = vmul.f32 0.35355338, %v661_v19  ;;  %v3426_v34 = vsel %vm4470_vm14, %v3404_v13, -1e+32  ;;  %vm805_vm14 = vcmp.gt.s32.totalorder %v3248_v23, %v3236_v18 }
 0x23c   : > { %860 = vmax.xlane.f32.xlu0 %v3426_v34  ;;  %4508 = vst [vmem:[#allocation16_spill] sm:$0xff] %v3431_v36  ;;  %v3453_v53 = vsel %vm4474_vm1, %v3431_v36, -1e+32  ;;  %vm2408_vm1 = vmpackc.low %vm807_vm10, %vm806_vm0  ;;  %vm810_vm0 = vcmp.gt.s32.totalorder %v3297_v37, %v3236_v18  ;;  %vm812_vm10 = vcmp.gt.s32.totalorder %v3320_v47, %v3236_v18 }
 0x23d   : > { %4507 = vst [vmem:[#allocation15_spill] sm:$0xff] %v3420_v27  ;;  %v3437_v41 = vsel %vm4469_vm15, %v3420_v27, -1e+32  ;;  %vm804_vm15 = vcmp.gt.s32.totalorder %v3231_v16, %v3236_v18 }
 0x23e   : > { %862 = vmax.xlane.f32.xlu1 %v3437_v41  ;;  %vm2406_vm11 = vmpackc.low %vm805_vm14, %vm804_vm15  ;;  %vm815_vm14 = vcmp.gt.s32.totalorder %v3360_v63, %v3236_v18 }
 0x23f   : > { %2583 = vmatprep.subr.msk.bf16.mxu0 %vm2406_vm11, %v4485_v55  ;;  %vm2416_vm15 = vmpackc.low %vm815_vm14, %vm814_vm13 }
 0x240   : > { %864 = vmax.xlane.f32.xlu0 %v3446_v42  ;;  %2584 = vmatpush3.bf16.msk.msra.mxu0 %vm2406_vm11, %v4485_v55  ;;  %vm813_vm11 = vcmp.gt.s32.totalorder %v3334_v52, %v3236_v18 }
 0x241   : > { %2585 = vmatprep.subr.msk.bf16.mxu0 %vm2408_vm1, %v4485_v55  ;;  %vm2414_vm12 = vmpackc.low %vm813_vm11, %vm812_vm10  ;;  %vm818_vm10 = vcmp.gt.s32.totalorder %v3402_v12, %v3236_v18  ;;  %vm819_vm11 = vcmp.gt.s32.totalorder %v3416_v22, %v3236_v18 }
 0x242   : > { %866 = vmax.xlane.f32.xlu1 %v3453_v53 }
 0x244   : > { %2586 = vmatpush3.bf16.msk.msra.mxu0 %vm2408_vm1, %v4485_v55  ;;  %vm811_vm1 = vcmp.gt.s32.totalorder %v3304_v43, %v3236_v18 }
 0x245   : > { %2587 = vmatprep.subr.msk.bf16.mxu0 %vm2410_vm7, %v4485_v55 }
 0x248   : > { %2588 = vmatpush3.bf16.msk.msra.mxu0 %vm2410_vm7, %v4485_v55  ;;  %vm2412_vm7 = vmpackc.low %vm811_vm1, %vm810_vm0  ;;  %vm816_vm0 = vcmp.gt.s32.totalorder %v3376_v3, %v3236_v18  ;;  %vm817_vm1 = vcmp.gt.s32.totalorder %v3390_v6, %v3236_v18 }
 0x2b0   : > { %v841_v58 = vpop.xlane.xlu1 %840 }
 0x2b1   : > { %v870_v60 = vsub.f32 %v3258_v28, %v841_v58  ;;  %v837_v7 = vpop.xlane.xlu0 %836 }
 0x2b2   : > { %v868_v11 = vsub.f32 %v3267_v30, %v837_v7 }
 0x2b3   : > { %v888_v8 = vmul.f32 1.442695, %v870_v60 }
 0x2b4   : > { %v884_v14 = vmul.f32 1.442695, %v868_v11  ;;  %v843_v19 = vpop.xlane.xlu1 %842 }
 0x2b5   : > { %v871_v9 = vsub.f32 %v3281_v32, %v843_v19  ;;  %v839_v61 = vpop.xlane.xlu0 %838 }
 0x2b6   : > { %2731 = vpow2.f32 %v884_v14  ;;  %v869_v27 = vsub.f32 %v3291_v35, %v839_v61 }
 0x2b7   : > { %2733 = vpow2.f32 %v888_v8  ;;  %v890_v50 = vmul.f32 1.442695, %v871_v9 }
 0x2b8   : > { %v886_v36 = vmul.f32 1.442695, %v869_v27 }
 0x2b9   : > { %v845_v62 = vpop.xlane.xlu0 %844 }
 0x2ba   : > { %2735 = vpow2.f32 %v886_v36  ;;  %v872_v55 = vsub.f32 %v3314_v46, %v845_v62 }
 0x2bb   : > { %v847_v28 = vpop.xlane.xlu1 %846  ;;  %2737 = vpow2.f32 %v890_v50 }
 0x2bc   : > { %v892_v58 = vmul.f32 1.442695, %v872_v55  ;;  %v873_v30 = vsub.f32 %v3328_v49, %v847_v28 }
 0x2bd   : > { %v849_v7 = vpop.xlane.xlu0 %848 }
 0x2be   : > { %2739 = vpow2.f32 %v892_v58  ;;  %v894_v60 = vmul.f32 1.442695, %v873_v30  ;;  %v874_v32 = vsub.f32 %v3340_v54, %v849_v7 }
 0x2bf   : > { %v851_v11 = vpop.xlane.xlu1 %850 }
 0x2c0   : > { %v3481_v14 = vpop.eup %2731  ;;  %v896_v61 = vmul.f32 1.442695, %v874_v32  ;;  %v875_v8 = vsub.f32 %v3354_v59, %v851_v11  ;;  %2741 = vpow2.f32 %v894_v60 }
 0x2c1   : > { %v853_v9 = vpop.xlane.xlu0 %852  ;;  %916 = vadd.xlane.f32.xlu0 %v3481_v14  ;;  %v3486_v50 = vpop.eup %2733 }
 0x2c2   : > { %2743 = vpow2.f32 %v896_v61  ;;  %v898_v62 = vmul.f32 1.442695, %v875_v8  ;;  %v876_v35 = vsub.f32 %v3370_v2, %v853_v9 }
 0x2c3   : > { %v855_v46 = vpop.xlane.xlu1 %854 }
 0x2c4   : > { %v3488_v49 = vpop.eup %2735  ;;  %v900_v54 = vmul.f32 1.442695, %v876_v35  ;;  %v877_v27 = vsub.f32 %v3384_v5, %v855_v46  ;;  %2745 = vpow2.f32 %v898_v62 }
 0x2c5   : > { %v857_v36 = vpop.xlane.xlu0 %856  ;;  %920 = vadd.xlane.f32.xlu0 %v3486_v50  ;;  %918 = vadd.xlane.f32.xlu1 %v3488_v49  ;;  %v3494_v19 = vpop.eup %2737 }
 0x2c6   : > { %2747 = vpow2.f32 %v900_v54  ;;  %v902_v59 = vmul.f32 1.442695, %v877_v27  ;;  %v878_v55 = vsub.f32 %v3396_v10, %v857_v36  ;;  %v4509_v27 = vmov 1.0|1.0  }
 0x2c7   : > { %v859_v2 = vpop.xlane.xlu1 %858  ;;  %2589 = vmatprep.subr.msk.bf16.mxu0 %vm2412_vm7, %v4509_v27 }
 0x2c8   : > { %v3496_v28 = vpop.eup %2739  ;;  %v904_v58 = vmul.f32 1.442695, %v878_v55  ;;  %v879_v30 = vsub.f32 %v3410_v15, %v859_v2  ;;  %2749 = vpow2.f32 %v902_v59  ;;  %2590 = vmatpush3.bf16.msk.msra.mxu0 %vm2412_vm7, %v4509_v27  ;;  %vm2418_vm7 = vmpackc.low %vm817_vm1, %vm816_vm0 }
 0x2c9   : > { %924 = vadd.xlane.f32.xlu0 %v3496_v28  ;;  %v861_v5 = vpop.xlane.xlu0 %860  ;;  %922 = vadd.xlane.f32.xlu1 %v3494_v19 }
 0x2ca   : > { %2751 = vpow2.f32 %v904_v58  ;;  %v906_v7 = vmul.f32 1.442695, %v879_v30  ;;  %v880_v60 = vsub.f32 %v3426_v34, %v861_v5  ;;  %v3502_v32 = vpop.eup %2741  ;;  %2591 = vmatprep.subr.msk.bf16.mxu0 %vm2414_vm12, %v4509_v27 }
 0x2cb   : > { %v863_v10 = vpop.xlane.xlu1 %862 }
 0x2cc   : > { %v3504_v11 = vpop.eup %2743  ;;  %v908_v61 = vmul.f32 1.442695, %v880_v60  ;;  %v881_v8 = vsub.f32 %v3437_v41, %v863_v10  ;;  %2753 = vpow2.f32 %v906_v7  ;;  %2592 = vmatpush3.bf16.msk.msra.mxu0 %vm2414_vm12, %v4509_v27  ;;  %vm2420_vm12 = vmpackc.low %vm819_vm11, %vm818_vm10 }
 0x2cd   : > { %928 = vadd.xlane.f32.xlu0 %v3504_v11  ;;  %v865_v15 = vpop.xlane.xlu0 %864  ;;  %926 = vadd.xlane.f32.xlu1 %v3502_v32 }
 0x2ce   : > { %2755 = vpow2.f32 %v908_v61  ;;  %v910_v9 = vmul.f32 1.442695, %v881_v8  ;;  %v882_v62 = vsub.f32 %v3446_v42, %v865_v15  ;;  %v3510_v35 = vpop.eup %2745  ;;  %2593 = vmatprep.subr.msk.bf16.mxu0 %vm2416_vm15, %v4509_v27 }
 0x2cf   : > { %v867_v34 = vpop.xlane.xlu1 %866 }
 0x2d0   : > { %v3516_v41 = vpop.eup %2747  ;;  %v912_v46 = vmul.f32 1.442695, %v882_v62  ;;  %v883_v54 = vsub.f32 %v3453_v53, %v867_v34  ;;  %2757 = vpow2.f32 %v910_v9  ;;  %2594 = vmatpush3.bf16.msk.msra.mxu0 %vm2416_vm15, %v4509_v27 }
 0x2d1   : > { %932 = vadd.xlane.f32.xlu0 %v3516_v41  ;;  %930 = vadd.xlane.f32.xlu1 %v3510_v35 }
 0x2d2   : > { %2759 = vpow2.f32 %v912_v46  ;;  %v914_v42 = vmul.f32 1.442695, %v883_v54  ;;  %v3522_v36 = vpop.eup %2749  ;;  %2595 = vmatprep.subr.msk.bf16.mxu0 %vm2418_vm7, %v4509_v27 }
 0x2d4   : > { %v3525_v59 = vpop.eup %2751  ;;  %2761 = vpow2.f32 %v914_v42  ;;  %2596 = vmatpush3.bf16.msk.msra.mxu0 %vm2418_vm7, %v4509_v27 }
 0x2d5   : > { %936 = vadd.xlane.f32.xlu0 %v3525_v59  ;;  %934 = vadd.xlane.f32.xlu1 %v3522_v36 }
 0x2d6   : > { %v3533_v53 = vpop.eup %2753  ;;  %2597 = vmatprep.subr.msk.bf16.mxu0 %vm2420_vm12, %v4509_v27 }
 0x2d8   : > { %v3536_v55 = vpop.eup %2755  ;;  %2598 = vmatpush3.bf16.msk.msra.mxu0 %vm2420_vm12, %v4509_v27 }
 0x2d9   : > { %940 = vadd.xlane.f32.xlu0 %v3536_v55  ;;  %938 = vadd.xlane.f32.xlu1 %v3533_v53 }
 0x2da   : > { %v3545_v2 = vpop.eup %2757 }
 0x2dc   : > { %v3548_v58 = vpop.eup %2759 }
 0x2dd   : > { %944 = vadd.xlane.f32.xlu0 %v3548_v58  ;;  %942 = vadd.xlane.f32.xlu1 %v3545_v2 }
 0x2de   : > { %v3558_v30 = vpop.eup %2761 }
 0x2e1   : > { %946 = vadd.xlane.f32.xlu1 %v3558_v30 }
 0x2f2   : > { %1563 = vrot.lane.b32.xlu1 %v3167_v39, %s3016_s19 }
 0x2f3   : > { %1561 = vrot.lane.b32.xlu0 %v3169_v40, %s3016_s19 }
 0x2f7   : > { %1565 = vrot.lane.b32.xlu0 %v3181_v51, %s3016_s19 }
 0x34e   : > { %v917_v5 = vpop.xlane.xlu0 %916 }
 0x34f   : > { %2763 = vrcp.f32 %v917_v5 }
 0x352   : > { %v921_v7 = vpop.xlane.xlu0 %920  ;;  %v919_v60 = vpop.xlane.xlu1 %918 }
 0x353   : > { %2765 = vrcp.f32 %v919_v60 }
 0x354   : > { %2767 = vrcp.f32 %v921_v7 }
 0x356   : > { %v925_v10 = vpop.xlane.xlu0 %924  ;;  %v923_v61 = vpop.xlane.xlu1 %922 }
 0x357   : > { %2769 = vrcp.f32 %v923_v61 }
 0x358   : > { %2771 = vrcp.f32 %v925_v10 }
 0x359   : > { %v2764_v9 = vpop.eup %2763 }
 0x35a   : > { %v929_v8 = vpop.xlane.xlu0 %928  ;;  %v927_v15 = vpop.xlane.xlu1 %926  ;;  %v964_v51 = vmul.f32 %v2764_v9, %v3481_v14 }
 0x35b   : > { %2773 = vrcp.f32 %v927_v15 }
 0x35c   : > { %2775 = vrcp.f32 %v929_v8 }
 0x35d   : > { %v2766_v39 = vpop.eup %2765 }
 0x35e   : > { %v933_v40 = vpop.xlane.xlu0 %932  ;;  %v931_v62 = vpop.xlane.xlu1 %930  ;;  %v965_v34 = vmul.f32 %v2766_v39, %v3488_v49 }
 0x35f   : > { %v2768_v46 = vpop.eup %2767  ;;  %2777 = vrcp.f32 %v931_v62 }
 0x360   : > { %v980_v54 = vpack.c.bf16 %v965_v34, %v964_v51  ;;  %2779 = vrcp.f32 %v933_v40  ;;  %v966_v7 = vmul.f32 %v2768_v46, %v3486_v50 }
 0x361   : > { %v2770_v42 = vpop.eup %2769 }
 0x362   : > { %v937_v27 = vpop.xlane.xlu0 %936  ;;  %v935_v5 = vpop.xlane.xlu1 %934  ;;  %v967_v60 = vmul.f32 %v2770_v42, %v3494_v19  ;;  %2599 = vmatprep.mubr.bf16.mxu0 %v980_v54 }
 0x363   : > { %v2772_v10 = vpop.eup %2771  ;;  %2781 = vrcp.f32 %v935_v5 }
 0x364   : > { %v981_v61 = vpack.c.bf16 %v967_v60, %v966_v7  ;;  %2783 = vrcp.f32 %v937_v27  ;;  %v968_v49 = vmul.f32 %v2772_v10, %v3496_v28 }
 0x365   : > { %v2774_v8 = vpop.eup %2773 }
 0x366   : > { %v941_v14 = vpop.xlane.xlu0 %940  ;;  %v939_v15 = vpop.xlane.xlu1 %938  ;;  %2600 = vmatmul.mubr.bf16.vlgmr.msra.gmra.mrb[16].mxu0 %v981_v61  ;;  %v969_v9 = vmul.f32 %v2774_v8, %v3502_v32 }
 0x367   : > { %v2776_v39 = vpop.eup %2775  ;;  %2785 = vrcp.f32 %v939_v15 }
 0x368   : > { %v982_v40 = vpack.c.bf16 %v969_v9, %v968_v49  ;;  %2787 = vrcp.f32 %v941_v14  ;;  %v970_v51 = vmul.f32 %v2776_v39, %v3504_v11 }
 0x369   : > { %v2778_v62 = vpop.eup %2777 }
 0x36a   : > { %v945_v50 = vpop.xlane.xlu0 %944  ;;  %v943_v19 = vpop.xlane.xlu1 %942  ;;  %2603 = vmatprep.mubr.bf16.mxu0 %v982_v40  ;;  %v971_v34 = vmul.f32 %v2778_v62, %v3510_v35 }
 0x36b   : > { %v2780_v46 = vpop.eup %2779  ;;  %2789 = vrcp.f32 %v943_v19  ;;  %v724_v19 = vsub.s32 %v3231_v16, %v3236_v18 }
 0x36c   : > { %2791 = vrcp.f32 %v945_v50  ;;  %v983_v54 = vpack.c.bf16 %v971_v34, %v970_v51  ;;  %v972_v32 = vmul.f32 %v2780_v46, %v3516_v41  ;;  %v726_v50 = vsub.s32 %v3234_v17, %v3236_v18 }
 0x36d   : > { %v2782_v42 = vpop.eup %2781  ;;  %v741_v51 = vsub.s32 0, %v724_v19 }
 0x36e   : > { %v1562_v28 = vpop.permute.xlu0 %1561  ;;  %v947_v27 = vpop.xlane.xlu1 %946  ;;  %2604 = vmatmul.mubr.bf16.gmra.mrb[20].mxu0 %v983_v54  ;;  %v973_v5 = vmul.f32 %v2782_v42, %v3522_v36  ;;  %v728_v42 = vsub.s32 %v3275_v31, %v3236_v18 }
 0x36f   : > { %2793 = vrcp.f32 %v947_v27  ;;  %2615 = vmatprep.subr.bf16.mxu0 %v1562_v28  ;;  %v2784_v7 = vpop.eup %2783  ;;  %v731_v27 = vsub.s32 %v3304_v43, %v3236_v18 }
 0x370   : > { %2616 = vmatpush3.bf16.msra.mxu0 %v1562_v28  ;;  %v984_v60 = vpack.c.bf16 %v973_v5, %v972_v32  ;;  %v974_v35 = vmul.f32 %v2784_v7, %v3525_v59  ;;  %v2374_v32 = vmin.u32 %v741_v51, %v724_v19  ;;  %v729_v5 = vsub.s32 %v3284_v33, %v3236_v18 }
 0x371   : > { %v2786_v11 = vpop.eup %2785  ;;  %v734_v7 = vsub.s32 %v3346_v56, %v3236_v18 }
 0x372   : > { %v1564_v10 = vpop.permute.xlu1 %1563  ;;  %2607 = vmatprep.mubr.bf16.mxu0 %v984_v60  ;;  %v975_v61 = vmul.f32 %v2786_v11, %v3533_v53  ;;  %v2788_v8 = vpop.eup %2787 }
 0x373   : > { %2617 = vmatprep.subr.bf16.mxu0 %v1564_v10  ;;  %v1566_v14 = vpop.permute.xlu0 %1565  ;;  %v976_v36 = vmul.f32 %v2788_v8, %v3536_v55  ;;  %v727_v55 = vsub.s32 %v3241_v20, %v3236_v18 }
 0x374   : > { %2618 = vmatpush3.bf16.msra.mxu0 %v1564_v10  ;;  %v985_v15 = vpack.c.bf16 %v975_v61, %v974_v35  ;;  %v753_v35 = vsub.s32 0, %v728_v42  ;;  %v732_v61 = vsub.s32 %v3320_v47, %v3236_v18 }
 0x375   : > { %2619 = vmatprep.subr.bf16.mxu0 %v1566_v14  ;;  %v2790_v49 = vpop.eup %2789  ;;  %v750_v34 = vsub.s32 0, %v727_v55 }
 0x376   : > { %v2792_v41 = vpop.eup %2791  ;;  %2608 = vmatmul.mubr.bf16.gmra.mrb[24].mxu0 %v985_v15  ;;  %v977_v9 = vmul.f32 %v2790_v49, %v3545_v2  ;;  %v725_v2 = vsub.s32 %v3248_v23, %v3236_v18  ;;  %v735_v15 = vsub.s32 %v3360_v63, %v3236_v18  ;;  %v733_v49 = vsub.s32 %v3334_v52, %v3236_v18 }
 0x377   : > { %v978_v62 = vmul.f32 %v2792_v41, %v3548_v58  ;;  %v730_v58 = vsub.s32 %v3297_v37, %v3236_v18  ;;  %v2377_v60 = vmin.u32 %v750_v34, %v727_v55  ;;  %v788_v41 = vcvt.s32.f32 %v2374_v32 }
 0x378   : > { %2620 = vmatpush3.bf16.msra.mxu0 %v1566_v14  ;;  %v986_v40 = vpack.c.bf16 %v977_v9, %v976_v36  ;;  %v744_v46 = vsub.s32 0, %v725_v2  ;;  %v762_v14 = vsub.s32 0, %v731_v27  ;;  %v756_v36 = vsub.s32 0, %v729_v5 }
 0x379   : > { %v2794_v39 = vpop.eup %2793  ;;  %v759_v54 = vsub.s32 0, %v730_v58  ;;  %v771_v9 = vsub.s32 0, %v734_v7  ;;  %v2378_v55 = vmin.u32 %v753_v35, %v728_v42 }
 0x37a   : > { %v979_v59 = vmul.f32 %v2794_v39, %v3558_v30  ;;  %2611 = vmatprep.mubr.bf16.mxu0 %v986_v40  ;;  %v747_v30 = vsub.s32 0, %v726_v50  ;;  %v2375_v11 = vmin.u32 %v744_v46, %v725_v2  ;;  %v738_v39 = vsub.s32 %v3402_v12, %v3236_v18 }
 0x37b   : > { %v2380_v10 = vmin.u32 %v759_v54, %v730_v58  ;;  %v791_v40 = vcvt.s32.f32 %v2377_v60  ;;  %v765_v2 = vsub.s32 0, %v732_v61  ;;  %v737_v58 = vsub.s32 %v3390_v6, %v3236_v18 }
 0x37c   : > { %v987_v53 = vpack.c.bf16 %v979_v59, %v978_v62  ;;  %v2376_v28 = vmin.u32 %v747_v30, %v726_v50  ;;  %v789_v62 = vcvt.s32.f32 %v2375_v11  ;;  %v736_v59 = vsub.s32 %v3376_v3, %v3236_v18 }
 0x37d   : > { %v794_v19 = vcvt.s32.f32 %v2380_v10  ;;  %v2381_v34 = vmin.u32 %v762_v14, %v731_v27  ;;  %v774_v46 = vsub.s32 0, %v735_v15  ;;  %v768_v54 = vsub.s32 0, %v733_v49 }
 0x37e   : > { %2612 = vmatmul.mubr.bf16.gmra.mrb[28].mxu0 %v987_v53  ;;  %v790_v8 = vcvt.s32.f32 %v2376_v28  ;;  %v739_v53 = vsub.s32 %v3416_v22, %v3236_v18  ;;  %v2379_v60 = vmin.u32 %v756_v36, %v729_v5  ;;  %v3625_v11 = vmin.u32 %v771_v9, %v734_v7 }
 0x37f   : > { %v783_v3 = vsub.s32 0, %v738_v39  ;;  %v777_v35 = vsub.s32 0, %v736_v59  ;;  %v780_v27 = vsub.s32 0, %v737_v58  ;;  %v3637_v5 = vmin.u32 %v774_v46, %v735_v15 }
 0x380   : > { %v786_v13 = vsub.s32 0, %v739_v53  ;;  %v3639_v7 = vmin.u32 %v768_v54, %v733_v49  ;;  %v792_v36 = vcvt.s32.f32 %v2378_v55  ;;  %v793_v15 = vcvt.s32.f32 %v2379_v60 }
 0x381   : > { %v3644_v9 = vmin.u32 %v783_v3, %v738_v39  ;;  %v798_v49 = vcvt.s32.f32 %v3625_v11  ;;  %v799_v3 = vcvt.s32.f32 %v3637_v5 }
 0x382   : > { %v797_v39 = vcvt.s32.f32 %v3639_v7 }
 0x439   : > { %v2601_v50 = vpop.f32.mrb[16].mxu0 }
 0x43a   : > { %v1127_v30 = vmul.f32 %v2601_v50, %v790_v8  ;;  %v1062_v51 = vpop.f32.mrb[17].mxu0  ;;  %v3632_v50 = vmin.u32 %v765_v2, %v732_v61  ;;  %v795_v61 = vcvt.s32.f32 %v2381_v34 }
 0x43b   : > { %v1125_v28 = vmul.f32 %v1062_v51, %v788_v41  ;;  %v2602_v32 = vpop.f32.mrb[18].mxu0 }
 0x43c   : > { %v3627_v22 = vmax.f32 %v1127_v30, 0.0  ;;  %v1128_v10 = vmul.f32 %v2602_v32, %v791_v40  ;;  %v1065_v42 = vpop.f32.mrb[19].mxu0  ;;  %v3647_v40 = vmin.u32 %v777_v35, %v736_v59  ;;  %v3652_v30 = vmin.u32 %v780_v27, %v737_v58 }
 0x43d   : > { %v3630_v6 = vmax.f32 %v1125_v28, 0.0  ;;  %v1126_v8 = vmul.f32 %v1065_v42, %v789_v62  ;;  %v3649_v62 = vmin.u32 %v786_v13, %v739_v53  ;;  %v796_v55 = vcvt.s32.f32 %v3632_v50 }
 0x43e   : > { %2795 = vrsqrt.f32 %v3627_v22  ;;  %v3635_v14 = vmax.f32 %v1128_v10, 0.0  ;;  %v802_v13 = vcvt.s32.f32 %v3644_v9  ;;  %v3659_v53 = vstv %s1271_s23 }
 0x43f   : > { %2797 = vrsqrt.f32 %v3630_v6  ;;  %v3642_v41 = vmax.f32 %v1126_v8, 0.0  ;;  %vm1173_vm13 = vcmp.eq.f32.partialorder %v3627_v22, inf  ;;  %vm1175_vm14 = vcmp.eq.f32.partialorder %v3627_v22, 0.0 }
 0x440   : > { %2799 = vrsqrt.f32 %v3635_v14  ;;  %v1176_v35 = vand.u32 2147483648, %v3627_v22  ;;  %vm1180_vm15 = vcmp.eq.f32.partialorder %v3635_v14, inf  ;;  %vm1182_vm0 = vcmp.eq.f32.partialorder %v3635_v14, 0.0 }
 0x441   : > { %v2605_v2 = vpop.f32.mrb[20].mxu0  ;;  %2801 = vrsqrt.f32 %v3642_v41  ;;  %vm1159_vm1 = vcmp.eq.f32.partialorder %v3630_v6, inf  ;;  %v1183_v27 = vand.u32 2147483648, %v3635_v14  ;;  %vm1161_vm7 = vcmp.eq.f32.partialorder %v3630_v6, 0.0 }
 0x442   : > { %v1131_v51 = vmul.f32 %v2605_v2, %v794_v19  ;;  %v1078_v46 = vpop.f32.mrb[21].mxu0  ;;  %v800_v19 = vcvt.s32.f32 %v3647_v40  ;;  %v1162_v5 = vand.u32 2147483648, %v3630_v6  ;;  %vm1166_vm10 = vcmp.eq.f32.partialorder %v3642_v41, inf }
 0x443   : > { %v1129_v59 = vmul.f32 %v1078_v46, %v792_v36  ;;  %v2606_v34 = vpop.f32.mrb[22].mxu0  ;;  %v1169_v2 = vand.u32 2147483648, %v3642_v41  ;;  %vm1168_vm11 = vcmp.eq.f32.partialorder %v3642_v41, 0.0 }
 0x444   : > { %v3661_v54 = vmax.f32 %v1131_v51, 0.0  ;;  %v1132_v58 = vmul.f32 %v2606_v34, %v795_v61  ;;  %v1081_v28 = vpop.f32.mrb[23].mxu0 }
 0x445   : > { %v3665_v60 = vmax.f32 %v1129_v59, 0.0  ;;  %v1130_v11 = vmul.f32 %v1081_v28, %v793_v15 }
 0x446   : > { %2803 = vrsqrt.f32 %v3661_v54  ;;  %v3670_v42 = vmax.f32 %v1132_v58, 0.0  ;;  %vm1201_vm12 = vcmp.eq.f32.partialorder %v3661_v54, inf  ;;  %vm1203_vm6 = vcmp.eq.f32.partialorder %v3661_v54, 0.0 }
 0x447   : > { %v3674_v8 = vmax.f32 %v1130_v11, 0.0 }
 0x448   : > { %v2796_v50 = vpop.eup %2795  ;;  %2805 = vrsqrt.f32 %v3670_v42 }
 0x449   : > { %v2798_v7 = vpop.eup %2797  ;;  %2807 = vrsqrt.f32 %v3665_v60  ;;  %v2609_v36 = vpop.f32.mrb[24].mxu0  ;;  %v1172_v61 = vmul.f32 %v2796_v50, %v3627_v22 }
 0x44a   : > { %v2800_v15 = vpop.eup %2799  ;;  %v1135_v51 = vmul.f32 %v2609_v36, %v798_v49  ;;  %v1094_v46 = vpop.f32.mrb[25].mxu0  ;;  %v1158_v59 = vmul.f32 %v2798_v7, %v3630_v6  ;;  %2809 = vrsqrt.f32 %v3674_v8 }
 0x44b   : > { %v1133_v28 = vmul.f32 %v1094_v46, %v796_v55  ;;  %v2610_v11 = vpop.f32.mrb[26].mxu0  ;;  %v1174_v50 = vsel %vm1173_vm13, %v3627_v22, %v1172_v61  ;;  %v1179_v49 = vmul.f32 %v2800_v15, %v3635_v14  ;;  %v2802_v55 = vpop.eup %2801  ;;  %vm1208_vm13 = vcmp.eq.f32.partialorder %v3670_v42, inf }
 0x44c   : > { %v3697_v36 = vmax.f32 %v1135_v51, 0.0  ;;  %v1136_v7 = vmul.f32 %v2610_v11, %v799_v3  ;;  %v1097_v10 = vpop.f32.mrb[27].mxu0  ;;  %v1177_v32 = vsel %vm1175_vm14, %v1176_v35, %v1174_v50  ;;  %v1160_v58 = vsel %vm1159_vm1, %v3630_v6, %v1158_v59 }
 0x44d   : > { %v3705_v46 = vmax.f32 %v1133_v28, 0.0  ;;  %v1134_v34 = vmul.f32 %v1097_v10, %v797_v39  ;;  %v1275_v61 = vmul.f32 %v3659_v53, %v1177_v32  ;;  %v1181_v3 = vsel %vm1180_vm15, %v3635_v14, %v1179_v49 }
 0x44e   : > { %2811 = vrsqrt.f32 %v3697_v36  ;;  %v3712_v22 = vmax.f32 %v1136_v7, 0.0  ;;  %v1184_v35 = vsel %vm1182_vm0, %v1183_v27, %v1181_v3  ;;  %v1163_v15 = vsel %vm1161_vm7, %v1162_v5, %v1160_v58 }
 0x44f   : > { %2813 = vrsqrt.f32 %v3705_v46  ;;  %v3720_v39 = vmax.f32 %v1134_v34, 0.0  ;;  %v1293_v32 = vmul.f32 1.442695, %v1275_v61  ;;  %v1276_v10 = vmul.f32 %v3659_v53, %v1184_v35 }
 0x450   : > { %vm1210_vm14 = vcmp.eq.f32.partialorder %v3670_v42, 0.0  ;;  %v2804_v51 = vpop.eup %2803  ;;  %2815 = vrsqrt.f32 %v3712_v22  ;;  %v1273_v14 = vmul.f32 %v3659_v53, %v1163_v15  ;;  %v1165_v27 = vmul.f32 %v2802_v55, %v3642_v41 }
 0x451   : > { %vm1187_vm15 = vcmp.eq.f32.partialorder %v3665_v60, inf  ;;  %v1190_v6 = vand.u32 2147483648, %v3665_v60  ;;  %2817 = vrsqrt.f32 %v3720_v39  ;;  %v2613_v5 = vpop.f32.mrb[28].mxu0  ;;  %v1295_v59 = vmul.f32 1.442695, %v1276_v10 }
 0x452   : > { %v1200_v34 = vmul.f32 %v2804_v51, %v3661_v54  ;;  %vm1189_vm0 = vcmp.eq.f32.partialorder %v3665_v60, 0.0  ;;  %vm1194_vm1 = vcmp.eq.f32.partialorder %v3674_v8, inf  ;;  %v1197_v58 = vand.u32 2147483648, %v3674_v8  ;;  %v2806_v28 = vpop.eup %2805  ;;  %v1110_v50 = vpop.f32.mrb[29].mxu0 }
 0x453   : > { %v1139_v11 = vmul.f32 %v2613_v5, %v802_v13  ;;  %2819 = vpow2.f32 %v1293_v32  ;;  %v1289_v49 = vmul.f32 1.442695, %v1273_v14  ;;  %v1167_v7 = vsel %vm1166_vm10, %v3642_v41, %v1165_v27  ;;  %v2808_v55 = vpop.eup %2807  ;;  %v2614_v3 = vpop.f32.mrb[30].mxu0 }
 0x454   : > { %vm1196_vm7 = vcmp.eq.f32.partialorder %v3674_v8, 0.0  ;;  %v1137_v61 = vmul.f32 %v1110_v50, %v800_v19  ;;  %2821 = vpow2.f32 %v1295_v59  ;;  %v1170_v35 = vsel %vm1168_vm11, %v1169_v2, %v1167_v7  ;;  %v1113_v10 = vpop.f32.mrb[31].mxu0  ;;  %v2810_v19 = vpop.eup %2809 }
 0x455   : > { %v1202_v9 = vsel %vm1201_vm12, %v3661_v54, %v1200_v34  ;;  %vm1229_vm9 = vcmp.eq.f32.partialorder %v3697_v36, inf  ;;  %v3748_v13 = vmax.f32 %v1139_v11, 0.0  ;;  %v4510_v15 = vcvt.s32.f32 %v3649_v62 }
 0x456   : > { %2823 = vpow2.f32 %v1289_v49  ;;  %v1274_v40 = vmul.f32 %v3659_v53, %v1170_v35  ;;  %vm1231_vm10 = vcmp.eq.f32.partialorder %v3697_v36, 0.0  ;;  %v3754_v41 = vmax.f32 %v1137_v61, 0.0 }
 0x457   : > { %v1140_v32 = vmul.f32 %v2614_v3, %v4510_v15  ;;  %v4511_v2 = vcvt.s32.f32 %v3652_v30  ;;  %v4512_v14 = vand.u32 2147483648, %v3661_v54  ;;  %v1207_v62 = vmul.f32 %v2806_v28, %v3670_v42 }
 0x458   : > { %2825 = vrsqrt.f32 %v3748_v13  ;;  %v1291_v59 = vmul.f32 1.442695, %v1274_v40  ;;  %v1186_v54 = vmul.f32 %v2808_v55, %v3665_v60  ;;  %v2812_v50 = vpop.eup %2811  ;;  %v4513_v49 = vand.u32 2147483648, %v3670_v42 }
 0x459   : > { %v1138_v51 = vmul.f32 %v1113_v10, %v4511_v2  ;;  %v1205_v27 = vsel %vm1203_vm6, %v4512_v14, %v1202_v9  ;;  %v3764_v5 = vmax.f32 %v1140_v32, 0.0  ;;  %2827 = vrsqrt.f32 %v3754_v41  ;;  %v2814_v3 = vpop.eup %2813 }
 0x45a   : > { %v1279_v34 = vmul.f32 %v3659_v53, %v1205_v27  ;;  %v1209_v30 = vsel %vm1208_vm13, %v3670_v42, %v1207_v62  ;;  %v1193_v61 = vmul.f32 %v2810_v19, %v3674_v8  ;;  %v1188_v55 = vsel %vm1187_vm15, %v3665_v60, %v1186_v54  ;;  %v2816_v15 = vpop.eup %2815 }
 0x45b   : > { %v3768_v11 = vmax.f32 %v1138_v51, 0.0  ;;  %2829 = vrsqrt.f32 %v3764_v5  ;;  %v1212_v7 = vsel %vm1210_vm14, %v4513_v49, %v1209_v30  ;;  %v1228_v9 = vmul.f32 %v2812_v50, %v3697_v36  ;;  %v2818_v40 = vpop.eup %2817 }
 0x45c   : > { %v1301_v28 = vmul.f32 1.442695, %v1279_v34  ;;  %v1280_v35 = vmul.f32 %v3659_v53, %v1212_v7  ;;  %v1191_v32 = vsel %vm1189_vm0, %v1190_v6, %v1188_v55  ;;  %v1195_v42 = vsel %vm1194_vm1, %v3674_v8, %v1193_v61 }
 0x45d   : > { %2831 = vrsqrt.f32 %v3768_v11  ;;  %v1232_v10 = vand.u32 2147483648, %v3697_v36  ;;  %v1277_v2 = vmul.f32 %v3659_v53, %v1191_v32  ;;  %v1198_v51 = vsel %vm1196_vm7, %v1197_v58, %v1195_v42  ;;  %v2820_v14 = vpop.eup %2819 }
 0x45e   : > { %2833 = vpow2.f32 %v1291_v59  ;;  %v1303_v19 = vmul.f32 1.442695, %v1280_v35  ;;  %v1278_v27 = vmul.f32 %v3659_v53, %v1198_v51  ;;  %v1230_v60 = vsel %vm1229_vm9, %v3697_v36, %v1228_v9  ;;  %v2822_v62 = vpop.eup %2821 }
 0x45f   : > { %2835 = vpow2.f32 %v1301_v28  ;;  %v1235_v6 = vmul.f32 %v2816_v15, %v3712_v22  ;;  %vm1236_vm6 = vcmp.eq.f32.partialorder %v3712_v22, inf  ;;  %v1323_v59 = vmax.f32 %v2820_v14, 1e-05 }
 0x460   : > { %2837 = vpow2.f32 %v1303_v19  ;;  %v1297_v34 = vmul.f32 1.442695, %v1277_v2  ;;  %v1233_v30 = vsel %vm1231_vm10, %v1232_v10, %v1230_v60  ;;  %v2824_v8 = vpop.eup %2823  ;;  %v1324_v58 = vmax.f32 %v2822_v62, 1e-05 }
 0x461   : > { %v1299_v54 = vmul.f32 1.442695, %v1278_v27  ;;  %v1283_v50 = vmul.f32 %v3659_v53, %v1233_v30  ;;  %v1237_v28 = vsel %vm1236_vm6, %v3712_v22, %v1235_v6  ;;  %v1339_v49 = vmin.f32 %v1323_v59, 100000.0 }
 0x462   : > { %v1321_v7 = vmax.f32 %v2824_v8, 1e-05  ;;  %2839 = vpow2.f32 %v1297_v34  ;;  %vm1238_vm9 = vcmp.eq.f32.partialorder %v3712_v22, 0.0  ;;  %v2826_v61 = vpop.eup %2825  ;;  %v1340_v35 = vmin.f32 %v1324_v58, 100000.0 }
 0x463   : > { %2841 = vpow2.f32 %v1299_v54  ;;  %v1309_v55 = vmul.f32 1.442695, %v1283_v50  ;;  %v1239_v9 = vand.u32 2147483648, %v3712_v22  ;;  %v3807_v36 = vpop.eup %2827  ;;  %v1355_v15 = vmul.f32 %v1339_v49, %v3243_v21 }
 0x464   : > { %v1337_v32 = vmin.f32 %v1321_v7, 100000.0  ;;  %v1214_v42 = vmul.f32 %v2814_v3, %v3705_v46  ;;  %vm1215_vm11 = vcmp.eq.f32.partialorder %v3705_v46, inf  ;;  %v1356_v19 = vmul.f32 %v1340_v35, %v3252_v26 }
 0x465   : > { %v3812_v10 = vpop.eup %2829  ;;  %2843 = vpow2.f32 %v1309_v55  ;;  %v1240_v2 = vsel %vm1238_vm9, %v1239_v9, %v1237_v28  ;;  %vm1217_vm12 = vcmp.eq.f32.partialorder %v3705_v46, 0.0  ;;  %v3821_v22 = vsel %vm710_vm2, %v1355_v15, -1e+32 }
 0x466   : > { %v1353_v21 = vmul.f32 %v1337_v32, %v3250_v24  ;;  %v1284_v3 = vmul.f32 %v3659_v53, %v1240_v2  ;;  %v1216_v14 = vsel %vm1215_vm11, %v3705_v46, %v1214_v42  ;;  %1389 = vmax.xlane.f32.xlu0 %v3821_v22  ;;  %v3830_v26 = vsel %vm711_vm4, %v1356_v19, -1e+32 }
 0x467   : > { %v3816_v51 = vpop.eup %2831  ;;  %v1218_v60 = vand.u32 2147483648, %v3705_v46  ;;  %v1221_v6 = vmul.f32 %v2818_v40, %v3720_v39  ;;  %vm1222_vm13 = vcmp.eq.f32.partialorder %v3720_v39, inf  ;;  %1391 = vmax.xlane.f32.xlu1 %v3830_v26  ;;  %v1256_v30 = vmul.f32 %v2826_v61, %v3748_v13 }
 0x468   : > { %v2834_v27 = vpop.eup %2833  ;;  %v3839_v24 = vsel %vm708_vm3, %v1353_v21, -1e+32  ;;  %v1311_v34 = vmul.f32 1.442695, %v1284_v3  ;;  %vm1224_vm14 = vcmp.eq.f32.partialorder %v3720_v39, 0.0  ;;  %v1225_v49 = vand.u32 2147483648, %v3720_v39 }
 0x469   : > { %v2836_v62 = vpop.eup %2835  ;;  %v1322_v59 = vmax.f32 %v2834_v27, 1e-05  ;;  %v1219_v58 = vsel %vm1217_vm12, %v1218_v60, %v1216_v14  ;;  %v1223_v40 = vsel %vm1222_vm13, %v3720_v39, %v1221_v6  ;;  %vm1257_vm15 = vcmp.eq.f32.partialorder %v3748_v13, inf }
 0x46a   : > { %v1327_v8 = vmax.f32 %v2836_v62, 1e-05  ;;  %v2838_v54 = vpop.eup %2837  ;;  %2845 = vpow2.f32 %v1311_v34  ;;  %v1281_v28 = vmul.f32 %v3659_v53, %v1219_v58  ;;  %1385 = vmax.xlane.f32.xlu0 %v3839_v24  ;;  %vm1259_vm0 = vcmp.eq.f32.partialorder %v3748_v13, 0.0 }
 0x46b   : > { %v1338_v50 = vmin.f32 %v1322_v59, 100000.0  ;;  %v1328_v35 = vmax.f32 %v2838_v54, 1e-05  ;;  %v1226_v9 = vsel %vm1224_vm14, %v1225_v49, %v1223_v40  ;;  %v1258_v15 = vsel %vm1257_vm15, %v3748_v13, %v1256_v30 }
 0x46c   : > { %v1343_v7 = vmin.f32 %v1327_v8, 100000.0  ;;  %v2840_v46 = vpop.eup %2839  ;;  %v1305_v55 = vmul.f32 1.442695, %v1281_v28  ;;  %v1282_v2 = vmul.f32 %v3659_v53, %v1226_v9  ;;  %v1242_v30 = vmul.f32 %v3807_v36, %v3754_v41 }
 0x46d   : > { %v1354_v61 = vmul.f32 %v1338_v50, %v3260_v29  ;;  %v2842_v32 = vpop.eup %2841  ;;  %v1344_v19 = vmin.f32 %v1328_v35, 100000.0  ;;  %v1325_v39 = vmax.f32 %v2840_v46, 1e-05  ;;  %v1260_v29 = vand.u32 2147483648, %v3748_v13 }
 0x46e   : > { %v1359_v42 = vmul.f32 %v1343_v7, %v3306_v44  ;;  %v1326_v3 = vmax.f32 %v2842_v32, 1e-05  ;;  %2847 = vpow2.f32 %v1305_v55  ;;  %v1307_v6 = vmul.f32 1.442695, %v1282_v2 }
 0x46f   : > { %v3858_v21 = vsel %vm709_vm5, %v1354_v61, -1e+32  ;;  %v2844_v14 = vpop.eup %2843  ;;  %v1360_v27 = vmul.f32 %v1344_v19, %v3322_v48  ;;  %v1341_v60 = vmin.f32 %v1325_v39, 100000.0  ;;  %v1261_v34 = vsel %vm1259_vm0, %v1260_v29, %v1258_v15 }
 0x470   : > { %1387 = vmax.xlane.f32.xlu1 %v3858_v21  ;;  %v3865_v44 = vsel %vm714_vm8, %v1359_v42, -1e+32  ;;  %v1342_v62 = vmin.f32 %v1326_v3, 100000.0  ;;  %v1331_v59 = vmax.f32 %v2844_v14, 1e-05  ;;  %vm4514_vm1 = vcmp.ge.s32.totalorder %v3304_v43, %v3236_v18 }
 0x471   : > { %1397 = vmax.xlane.f32.xlu0 %v3865_v44  ;;  %v3876_v8 = vsel %vm4514_vm1, %v1360_v27, -1e+32  ;;  %v1357_v58 = vmul.f32 %v1341_v60, %v3299_v38  ;;  %2849 = vpow2.f32 %v1307_v6  ;;  %v1287_v48 = vmul.f32 %v3659_v53, %v1261_v34 }
 0x472   : > { %v1358_v40 = vmul.f32 %v1342_v62, %v3308_v45  ;;  %v1347_v54 = vmin.f32 %v1331_v59, 100000.0  ;;  %vm1243_vm7 = vcmp.eq.f32.partialorder %v3754_v41, inf  ;;  %vm4515_vm10 = vcmp.ge.s32.totalorder %v3275_v31, %v3236_v18 }
 0x473   : > { %v3886_v13 = vsel %vm4515_vm10, %v1357_v58, -1e+32  ;;  %v1317_v36 = vmul.f32 1.442695, %v1287_v48  ;;  %v1244_v50 = vsel %vm1243_vm7, %v3754_v41, %v1242_v30  ;;  %v1246_v38 = vand.u32 2147483648, %v3754_v41 }
 0x474   : > { %1399 = vmax.xlane.f32.xlu1 %v3876_v8  ;;  %v2846_v28 = vpop.eup %2845  ;;  %vm4516_vm6 = vcmp.ge.s32.totalorder %v3284_v33, %v3236_v18  ;;  %v1363_v49 = vmul.f32 %v1347_v54, %v3362_v0  ;;  %vm1245_vm9 = vcmp.eq.f32.partialorder %v3754_v41, 0.0  ;;  %v1263_v7 = vmul.f32 %v3812_v10, %v3764_v5 }
 0x475   : > { %1393 = vmax.xlane.f32.xlu0 %v3886_v13  ;;  %v3894_v45 = vsel %vm4516_vm6, %v1358_v40, -1e+32  ;;  %v1332_v35 = vmax.f32 %v2846_v28, 1e-05  ;;  %2851 = vpow2.f32 %v1317_v36  ;;  %v1247_v46 = vsel %vm1245_vm9, %v1246_v38, %v1244_v50  ;;  %v4522_v36 = vld [vmem:[#allocation13_spill] sm:$0xff]  ;;  %v4523_v38 = vld [vmem:[#allocation11_spill] sm:$0xff] }
 0x476   : > { %vm1264_vm11 = vcmp.eq.f32.partialorder %v3764_v5, inf  ;;  %vm4517_vm12 = vcmp.ge.s32.totalorder %v3346_v56, %v3236_v18  ;;  %v1285_v55 = vmul.f32 %v3659_v53, %v1247_v46  ;;  %v1267_v0 = vand.u32 2147483648, %v3764_v5 }
 0x477   : > { %v3904_v61 = vsel %vm4517_vm12, %v1363_v49, -1e+32  ;;  %v1265_v9 = vsel %vm1264_vm11, %v3764_v5, %v1263_v7  ;;  %v1348_v41 = vmin.f32 %v1332_v35, 100000.0  ;;  %vm1266_vm13 = vcmp.eq.f32.partialorder %v3764_v5, 0.0  ;;  %v4526_v35 = vld [vmem:[#allocation6_spill] sm:$0xff]  ;;  %vm2422_vm12 = vmpackc.low %vm709_vm5, %vm708_vm3 }
 0x478   : > { %1395 = vmax.xlane.f32.xlu1 %v3894_v45  ;;  %v1249_v10 = vmul.f32 %v3816_v51, %v3768_v11  ;;  %vm1250_vm14 = vcmp.eq.f32.partialorder %v3768_v11, inf  ;;  %v2848_v15 = vpop.eup %2847  ;;  %v1313_v32 = vmul.f32 1.442695, %v1285_v55  ;;  %v1268_v42 = vsel %vm1266_vm13, %v1267_v0, %v1265_v9  ;;  %vm2425_vm3 = vmpackc.low %vm711_vm4, %vm710_vm2 }
 0x479   : > { %1405 = vmax.xlane.f32.xlu0 %v3904_v61  ;;  %vm1252_vm15 = vcmp.eq.f32.partialorder %v3768_v11, 0.0  ;;  %v1253_v19 = vand.u32 2147483648, %v3768_v11  ;;  %v1364_v39 = vmul.f32 %v1348_v41, %v3378_v4  ;;  %v1329_v2 = vmax.f32 %v2848_v15, 1e-05 }
 0x47a   : > { %v1288_v3 = vmul.f32 %v3659_v53, %v1268_v42  ;;  %v1251_v5 = vsel %vm1250_vm14, %v3768_v11, %v1249_v10  ;;  %2853 = vpow2.f32 %v1313_v32  ;;  %vm4518_vm0 = vcmp.ge.s32.totalorder %v3360_v63, %v3236_v18  ;;  %v4527_v10 = vld [vmem:[#allocation16_spill] sm:$0xff]  ;;  %v4528_v42 = vld [vmem:[#allocation14_spill] sm:$0xff] }
 0x47b   : > { %v1254_v51 = vsel %vm1252_vm15, %v1253_v19, %v1251_v5  ;;  %v2850_v29 = vpop.eup %2849  ;;  %v3923_v14 = vsel %vm4518_vm0, %v1364_v39, -1e+32  ;;  %v1345_v27 = vmin.f32 %v1329_v2, 100000.0  ;;  %vm4519_vm1 = vcmp.ge.s32.totalorder %v3320_v47, %v3236_v18  ;;  %v4530_v39 = vld [vmem:[#allocation15_spill] sm:$0xff] }
 0x47c   : > { %v1286_v60 = vmul.f32 %v3659_v53, %v1254_v51  ;;  %1407 = vmax.xlane.f32.xlu1 %v3923_v14  ;;  %v1330_v6 = vmax.f32 %v2850_v29, 1e-05  ;;  %vm4520_vm7 = vcmp.ge.s32.totalorder %v3334_v52, %v3236_v18  ;;  %vm4521_vm10 = vcmp.ge.s32.totalorder %v3402_v12, %v3236_v18  ;;  %v4533_v51 = vld [vmem:[#allocation7_spill] sm:$0xff]  ;;  %vm4539_vm15 = vmmov %vm4519_vm1 }
 0x47d   : > { %v1361_v4 = vmul.f32 %v1345_v27, %v3348_v57  ;;  %vm4524_vm6 = vcmp.ge.s32.totalorder %v4523_v38, %v3236_v18  ;;  %v1319_v49 = vmul.f32 1.442695, %v1288_v3  ;;  %vm4529_vm9 = vcmp.ge.s32.totalorder %v4528_v42, %v3236_v18  ;;  %v4531_v3 = vld [vmem:[#allocation12_spill] sm:$0xff]  ;;  %vm4540_vm0 = vmmov %vm4520_vm7  ;;  %v1690_v38 = vld [vmem:[%s377_s10] sm:$0xff] }
 0x47e   : > { %v1346_v62 = vmin.f32 %v1330_v6, 100000.0  ;;  %v1315_v7 = vmul.f32 1.442695, %v1286_v60  ;;  %vm4532_vm11 = vcmp.ge.s32.totalorder %v4531_v3, %v3236_v18  ;;  %vm4536_vm5 = vcmp.ge.s32.totalorder %v3275_v31, %v3236_v18 }
 0x47f   : > { %v2852_v59 = vpop.eup %2851  ;;  %v3931_v11 = vsel %vm4519_vm1, %v1361_v4, -1e+32  ;;  %2855 = vpow2.f32 %v1319_v49  ;;  %vm4537_vm13 = vcmp.ge.s32.totalorder %v3284_v33, %v3236_v18  ;;  %vm4538_vm2 = vcmp.ge.s32.totalorder %v3304_v43, %v3236_v18  ;;  %vm2434_vm1 = vmpackc.low %vm4540_vm0, %vm4539_vm15 }
 0x480   : > { %1401 = vmax.xlane.f32.xlu0 %v3931_v11  ;;  %v1362_v34 = vmul.f32 %v1346_v62, %v3364_v1  ;;  %v1335_v30 = vmax.f32 %v2852_v59, 1e-05  ;;  %2857 = vpow2.f32 %v1315_v7  ;;  %vm2428_vm14 = vmpackc.low %vm4537_vm13, %vm4536_vm5  ;;  %vm1716_vm13 = vcmask 1043456  }
 0x481   : > { %vm2431_vm4 = vmpackc.low %vm4538_vm2, %vm714_vm8  ;;  %vm4541_vm8 = vcmp.ge.s32.totalorder %v3346_v56, %v3236_v18  ;;  %v1691_v3 = vpack.c.bf16 %v1690_v38, %v1690_v38 }
 0x482   : > { %v3938_v53 = vsel %vm4520_vm7, %v1362_v34, -1e+32  ;;  %v1351_v58 = vmin.f32 %v1335_v30, 100000.0  ;;  %vm4542_vm7 = vcmp.ge.s32.totalorder %v3360_v63, %v3236_v18 }
 0x483   : > { %1403 = vmax.xlane.f32.xlu1 %v3938_v53  ;;  %2676 = vmatprep.subr.msk.bf16.mxu1 %vm1716_vm13, %v1691_v3 }
 0x484   : > { %v2854_v57 = vpop.eup %2853  ;;  %v1367_v48 = vmul.f32 %v1351_v58, %v3418_v25  ;;  %v4525_v25 = vld [vmem:[#allocation8_spill] sm:$0xff] }
 0x485   : > { %v1333_v40 = vmax.f32 %v2854_v57, 1e-05 }
 0x486   : > { %v3945_v54 = vsel %vm4521_vm10, %v1367_v48, -1e+32  ;;  %vm2437_vm10 = vmpackc.low %vm4542_vm7, %vm4541_vm8 }
 0x487   : > { %1413 = vmax.xlane.f32.xlu0 %v3945_v54  ;;  %v1349_v1 = vmin.f32 %v1333_v40, 100000.0 }
 0x489   : > { %v1365_v50 = vmul.f32 %v1349_v1, %v4522_v36  ;;  %v2856_v46 = vpop.eup %2855 }
 0x48a   : > { %v1336_v55 = vmax.f32 %v2856_v46, 1e-05  ;;  %v2858_v9 = vpop.eup %2857 }
 0x48b   : > { %v3952_v28 = vsel %vm4524_vm6, %v1365_v50, -1e+32  ;;  %v1334_v41 = vmax.f32 %v2858_v9, 1e-05 }
 0x48c   : > { %1409 = vmax.xlane.f32.xlu0 %v3952_v28  ;;  %v1352_v0 = vmin.f32 %v1336_v55, 100000.0 }
 0x48d   : > { %v1350_v32 = vmin.f32 %v1334_v41, 100000.0 }
 0x48e   : > { %v1368_v15 = vmul.f32 %v1352_v0, %v4527_v10 }
 0x48f   : > { %v1366_v2 = vmul.f32 %v1350_v32, %v4530_v39 }
 0x490   : > { %v3963_v19 = vsel %vm4529_vm9, %v1368_v15, -1e+32  ;;  %vm4543_vm9 = vmmov %vm4532_vm11 }
 0x491   : > { %v3970_v5 = vsel %vm4532_vm11, %v1366_v2, -1e+32  ;;  %vm2440_vm11 = vmpackc.low %vm4543_vm9, %vm4524_vm6 }
 0x494   : > { %1569 = vrot.lane.b32.xlu1 %v4525_v25, %s3016_s19 }
 0x4a2   : > { %1567 = vrot.lane.b32.xlu0 %v4526_v35, %s3016_s19 }
 0x4b8   : > { %1415 = vmax.xlane.f32.xlu1 %v3963_v19 }
 0x4bc   : > { %1411 = vmax.xlane.f32.xlu1 %v3970_v5 }
 0x4cd   : > { %1571 = vrot.lane.b32.xlu1 %v4533_v51, %s3016_s19 }
 0x4f3   : > { %v1390_v29 = vpop.xlane.xlu0 %1389 }
 0x4f4   : > { %v1419_v27 = vsub.f32 %v3821_v22, %v1390_v29  ;;  %v1392_v60 = vpop.xlane.xlu1 %1391 }
 0x4f5   : > { %v1420_v62 = vsub.f32 %v3830_v26, %v1392_v60 }
 0x4f6   : > { %v1437_v6 = vmul.f32 1.442695, %v1419_v27 }
 0x4f7   : > { %v1386_v4 = vpop.xlane.xlu0 %1385  ;;  %v1439_v58 = vmul.f32 1.442695, %v1420_v62 }
 0x4f8   : > { %2859 = vpow2.f32 %v1437_v6  ;;  %v1417_v59 = vsub.f32 %v3839_v24, %v1386_v4 }
 0x4fa   : > { %v1433_v34 = vmul.f32 1.442695, %v1417_v59 }
 0x4fc   : > { %2861 = vpow2.f32 %v1433_v34 }
 0x4fd   : > { %v1388_v30 = vpop.xlane.xlu1 %1387  ;;  %2863 = vpow2.f32 %v1439_v58 }
 0x4fe   : > { %v1418_v57 = vsub.f32 %v3858_v21, %v1388_v30  ;;  %v1398_v48 = vpop.xlane.xlu0 %1397 }
 0x4ff   : > { %v1423_v40 = vsub.f32 %v3865_v44, %v1398_v48 }
 0x500   : > { %v1435_v22 = vmul.f32 1.442695, %v1418_v57 }
 0x501   : > { %v1445_v1 = vmul.f32 1.442695, %v1423_v40  ;;  %v1400_v36 = vpop.xlane.xlu1 %1399 }
 0x502   : > { %v1394_v50 = vpop.xlane.xlu0 %1393  ;;  %v1424_v25 = vsub.f32 %v3876_v8, %v1400_v36  ;;  %v3982_v24 = vpop.eup %2859  ;;  %v4535_v36 = vld [vmem:[#allocation9_spill] sm:$0xff] }
 0x503   : > { %2865 = vpow2.f32 %v1445_v1  ;;  %v1421_v26 = vsub.f32 %v3886_v13, %v1394_v50  ;;  %1469 = vadd.xlane.f32.xlu1 %v3982_v24  ;;  %v4534_v1 = vld [vmem:[#allocation10_spill] sm:$0xff] }
 0x504   : > { %2867 = vpow2.f32 %v1435_v22  ;;  %v1447_v35 = vmul.f32 1.442695, %v1424_v25 }
 0x505   : > { %v1441_v49 = vmul.f32 1.442695, %v1421_v26  ;;  %v1396_v7 = vpop.xlane.xlu1 %1395 }
 0x506   : > { %v1422_v21 = vsub.f32 %v3894_v45, %v1396_v7  ;;  %v1406_v44 = vpop.xlane.xlu0 %1405  ;;  %v3987_v55 = vpop.eup %2861 }
 0x507   : > { %2869 = vpow2.f32 %v1441_v49  ;;  %v1427_v46 = vsub.f32 %v3904_v61, %v1406_v44  ;;  %1465 = vadd.xlane.f32.xlu1 %v3987_v55  ;;  %v3991_v41 = vpop.eup %2863 }
 0x508   : > { %v1443_v9 = vmul.f32 1.442695, %v1422_v21 }
 0x509   : > { %v1408_v8 = vpop.xlane.xlu1 %1407  ;;  %v1453_v13 = vmul.f32 1.442695, %v1427_v46 }
 0x50a   : > { %2871 = vpow2.f32 %v1443_v9  ;;  %v1428_v0 = vsub.f32 %v3923_v14, %v1408_v8 }
 0x50b   : > { %2873 = vpow2.f32 %v1447_v35  ;;  %1471 = vadd.xlane.f32.xlu1 %v3991_v41 }
 0x50c   : > { %v1455_v45 = vmul.f32 1.442695, %v1428_v0  ;;  %2875 = vpow2.f32 %v1453_v13 }
 0x50d   : > { %v3993_v10 = vpop.eup %2865  ;;  %v1402_v15 = vpop.xlane.xlu0 %1401 }
 0x50e   : > { %1477 = vadd.xlane.f32.xlu0 %v3993_v10  ;;  %v1425_v61 = vsub.f32 %v3931_v11, %v1402_v15  ;;  %v3998_v32 = vpop.eup %2867  ;;  %2877 = vpow2.f32 %v1455_v45 }
 0x50f   : > { %1467 = vadd.xlane.f32.xlu1 %v3998_v32 }
 0x510   : > { %v1449_v2 = vmul.f32 1.442695, %v1425_v61  ;;  %v1404_v51 = vpop.xlane.xlu1 %1403 }
 0x511   : > { %v4000_v39 = vpop.eup %2869  ;;  %v1426_v14 = vsub.f32 %v3938_v53, %v1404_v51 }
 0x512   : > { %1473 = vadd.xlane.f32.xlu0 %v4000_v39  ;;  %2879 = vpow2.f32 %v1449_v2 }
 0x513   : > { %v1451_v27 = vmul.f32 1.442695, %v1426_v14 }
 0x514   : > { %v4005_v29 = vpop.eup %2871  ;;  %v1414_v11 = vpop.xlane.xlu0 %1413 }
 0x515   : > { %v4007_v60 = vpop.eup %2873  ;;  %1475 = vadd.xlane.f32.xlu1 %v4005_v29  ;;  %v1431_v6 = vsub.f32 %v3945_v54, %v1414_v11  ;;  %2881 = vpow2.f32 %v1451_v27  ;;  %v1570_v54 = vpop.permute.xlu1 %1569 }
 0x516   : > { %1479 = vadd.xlane.f32.xlu0 %v4007_v60  ;;  %v4012_v62 = vpop.eup %2875 }
 0x517   : > { %v1461_v4 = vmul.f32 1.442695, %v1431_v6 }
 0x518   : > { %v4016_v34 = vpop.eup %2877 }
 0x519   : > { %2883 = vpow2.f32 %v1461_v4  ;;  %v1410_v53 = vpop.xlane.xlu0 %1409 }
 0x51a   : > { %1485 = vadd.xlane.f32.xlu0 %v4012_v62  ;;  %v1429_v59 = vsub.f32 %v3952_v28, %v1410_v53 }
 0x51c   : > { %v4018_v30 = vpop.eup %2879  ;;  %v1457_v58 = vmul.f32 1.442695, %v1429_v59 }
 0x51d   : > { %v1568_v57 = vpop.permute.xlu0 %1567  ;;  %1481 = vadd.xlane.f32.xlu1 %v4018_v30 }
 0x51e   : > { %1487 = vadd.xlane.f32.xlu0 %v4016_v34  ;;  %2885 = vpow2.f32 %v1457_v58  ;;  %2621 = vmatprep.subr.bf16.mxu0 %v1568_v57 }
 0x51f   : > { %2622 = vmatpush3.bf16.msra.mxu0 %v1568_v57  ;;  %v4022_v48 = vpop.eup %2881 }
 0x520   : > { %2623 = vmatprep.subr.bf16.mxu0 %v1570_v54 }
 0x522   : > { %1483 = vadd.xlane.f32.xlu0 %v4022_v48 }
 0x523   : > { %v4025_v28 = vpop.eup %2883  ;;  %2624 = vmatpush3.bf16.msra.mxu0 %v1570_v54 }
 0x524   : > { %1493 = vadd.xlane.f32.xlu1 %v4025_v28 }
 0x528   : > { %v4028_v40 = vpop.eup %2885 }
 0x529   : > { %1489 = vadd.xlane.f32.xlu1 %v4028_v40 }
 0x538   : > { %1573 = vrot.lane.b32.xlu0 %v4534_v1, %s3016_s19 }
 0x53a   : > { %1575 = vrot.lane.b32.xlu1 %v4535_v36, %s3016_s19 }
 0x545   : > { %v1416_v22 = vpop.xlane.xlu1 %1415 }
 0x546   : > { %v1432_v25 = vsub.f32 %v3963_v19, %v1416_v22 }
 0x548   : > { %v1463_v21 = vmul.f32 1.442695, %v1432_v25 }
 0x549   : > { %v1412_v50 = vpop.xlane.xlu1 %1411 }
 0x54a   : > { %v1430_v26 = vsub.f32 %v3970_v5, %v1412_v50 }
 0x54c   : > { %v1459_v49 = vmul.f32 1.442695, %v1430_v26 }
 0x54d   : > { %v1572_v7 = vpop.permute.xlu1 %1571 }
 0x54e   : > { %2887 = vpow2.f32 %v1459_v49  ;;  %2625 = vmatprep.subr.bf16.mxu0 %v1572_v7 }
 0x54f   : > { %2626 = vmatpush3.bf16.msra.mxu0 %v1572_v7  ;;  %2889 = vpow2.f32 %v1463_v21 }
 0x558   : > { %v4037_v44 = vpop.eup %2887 }
 0x559   : > { %1491 = vadd.xlane.f32.xlu0 %v4037_v44  ;;  %v4040_v35 = vpop.eup %2889 }
 0x55d   : > { %1495 = vadd.xlane.f32.xlu0 %v4040_v35 }
 0x590   : > { %v1470_v46 = vpop.xlane.xlu1 %1469 }
 0x594   : > { %v1466_v9 = vpop.xlane.xlu1 %1465 }
 0x595   : > { %2891 = vrcp.f32 %v1466_v9 }
 0x598   : > { %v1472_v19 = vpop.xlane.xlu1 %1471 }
 0x59b   : > { %v1478_v8 = vpop.xlane.xlu0 %1477 }
 0x59c   : > { %v1468_v5 = vpop.xlane.xlu1 %1467 }
 0x59d   : > { %2893 = vrcp.f32 %v1468_v5 }
 0x59e   : > { %2895 = vrcp.f32 %v1472_v19 }
 0x59f   : > { %v1474_v13 = vpop.xlane.xlu0 %1473  ;;  %v2892_v15 = vpop.eup %2891 }
 0x5a0   : > { %v1513_v51 = vmul.f32 %v2892_v15, %v3987_v55 }
 0x5a2   : > { %v1476_v45 = vpop.xlane.xlu1 %1475 }
 0x5a3   : > { %v1480_v0 = vpop.xlane.xlu0 %1479  ;;  %2897 = vrcp.f32 %v1476_v45 }
 0x5a4   : > { %2899 = vrcp.f32 %v1470_v46 }
 0x5a5   : > { %2901 = vrcp.f32 %v1474_v13 }
 0x5a6   : > { %2903 = vrcp.f32 %v1480_v0 }
 0x5a7   : > { %v1486_v61 = vpop.xlane.xlu0 %1485  ;;  %v2894_v2 = vpop.eup %2893 }
 0x5a8   : > { %v1514_v14 = vmul.f32 %v2894_v2, %v3998_v32  ;;  %v2896_v32 = vpop.eup %2895 }
 0x5a9   : > { %v1516_v57 = vmul.f32 %v2896_v32, %v3991_v41 }
 0x5aa   : > { %v1482_v11 = vpop.xlane.xlu1 %1481  ;;  %v2423_v6 = vpack.c.bf16 %v1514_v14, %v1513_v51 }
 0x5ab   : > { %v1488_v27 = vpop.xlane.xlu0 %1487 }
 0x5ac   : > { %2631 = vmatprep.mubr.msk.bf16.mxu0 %vm2422_vm12, %v2423_v6  ;;  %vm4544_vm12 = vcmp.ge.s32.totalorder %v3402_v12, %v3236_v18 }
 0x5ad   : > { %v2898_v59 = vpop.eup %2897 }
 0x5ae   : > { %v2900_v23 = vpop.eup %2899  ;;  %v1518_v1 = vmul.f32 %v2898_v59, %v4005_v29 }
 0x5af   : > { %v1484_v4 = vpop.xlane.xlu0 %1483  ;;  %v2902_v58 = vpop.eup %2901  ;;  %v1515_v36 = vmul.f32 %v2900_v23, %v3982_v24 }
 0x5b0   : > { %2905 = vrcp.f32 %v1484_v4  ;;  %v1517_v22 = vmul.f32 %v2902_v58, %v4000_v39  ;;  %v2904_v24 = vpop.eup %2903 }
 0x5b1   : > { %v1494_v53 = vpop.xlane.xlu1 %1493  ;;  %2907 = vrcp.f32 %v1478_v8  ;;  %v2426_v50 = vpack.c.bf16 %v1516_v57, %v1515_v36  ;;  %v1520_v25 = vmul.f32 %v2904_v24, %v4007_v60 }
 0x5b2   : > { %2909 = vrcp.f32 %v1482_v11  ;;  %v2429_v41 = vpack.c.bf16 %v1518_v1, %v1517_v22 }
 0x5b3   : > { %v1574_v55 = vpop.permute.xlu0 %1573  ;;  %2911 = vrcp.f32 %v1488_v27 }
 0x5b4   : > { %2627 = vmatprep.subr.bf16.mxu0 %v1574_v55  ;;  %2913 = vrcp.f32 %v1486_v61 }
 0x5b5   : > { %2628 = vmatpush3.bf16.msra.mxu0 %v1574_v55 }
 0x5b6   : > { %v1490_v16 = vpop.xlane.xlu1 %1489 }
 0x5b7   : > { %2915 = vrcp.f32 %v1490_v16 }
 0x5ba   : > { %v1576_v54 = vpop.permute.xlu1 %1575  ;;  %v2906_v17 = vpop.eup %2905 }
 0x5bb   : > { %2629 = vmatprep.subr.bf16.mxu0 %v1576_v54  ;;  %v2908_v29 = vpop.eup %2907  ;;  %v1522_v39 = vmul.f32 %v2906_v17, %v4022_v48 }
 0x5bc   : > { %2630 = vmatpush3.bf16.msra.mxu0 %v1576_v54  ;;  %v2910_v20 = vpop.eup %2909  ;;  %v1519_v26 = vmul.f32 %v2908_v29, %v3993_v10 }
 0x5bd   : > { %v1521_v31 = vmul.f32 %v2910_v20, %v4018_v30  ;;  %v2912_v60 = vpop.eup %2911  ;;  %2675 = vmatprep.subr.msk.bf16.mxu0 %vm1716_vm13, %v1691_v3 }
 0x5be   : > { %v2432_v33 = vpack.c.bf16 %v1520_v25, %v1519_v26  ;;  %v2914_v10 = vpop.eup %2913  ;;  %v1524_v37 = vmul.f32 %v2912_v60, %v4016_v34  ;;  %v3017_v26 = vmov (!%p2454_p3), 0.0  }
 0x5bf   : > { %2632 = vmatmul.mubr.msk.bf16.vlgmr.msra.gmra.mrb[32].mxu0 %vm2425_vm3, %v2426_v50  ;;  %v2435_v48 = vpack.c.bf16 %v1522_v39, %v1521_v31  ;;  %v1523_v43 = vmul.f32 %v2914_v10, %v4012_v62  ;;  %vm4545_vm3 = vcmp.ge.s32.totalorder %v4528_v42, %v3236_v18 }
 0x5c0   : > { %2635 = vmatprep.mubr.msk.bf16.mxu0 %vm2428_vm14, %v2429_v41  ;;  %vm2443_vm5 = vmpackc.low %vm4545_vm3, %vm4544_vm12  ;;  %vm4546_vm14 = vcmask 64512  }
 0x5c1   : > { %v2438_v47 = vpack.c.bf16 %v1524_v37, %v1523_v43  ;;  %v2916_v49 = vpop.eup %2915  ;;  %vm4547_vm2 = vmmov %vm4546_vm14 }
 0x5c2   : > { %v1525_v62 = vmul.f32 %v2916_v49, %v4028_v40  ;;  %vm4549_vm15 = vmmov %vm4547_vm2 }
 0x5c3   : > { %vm4550_vm0 = vmmov %vm4547_vm2 }
 0x5c4   : > { %vm4552_vm8 = vmmov %vm4550_vm0 }
 0x5c5   : > { %vm4553_vm7 = vmmov %vm4550_vm0 }
 0x5c7   : > { %2636 = vmatmul.mubr.msk.bf16.gmra.mrb[36].mxu0 %vm2431_vm4, %v2432_v33  ;;  %vm4548_vm4 = vmmov %vm4547_vm2 }
 0x5c8   : > { %2639 = vmatprep.mubr.msk.bf16.mxu0 %vm2434_vm1, %v2435_v48  ;;  %vm4551_vm1 = vmmov %vm4550_vm0 }
 0x5cf   : > { %2640 = vmatmul.mubr.msk.bf16.gmra.mrb[40].mxu0 %vm2437_vm10, %v2438_v47  ;;  %vm4554_vm10 = vcmask (!%p2454_p3), 261120  }
 0x5d0   : > { %1821 = vst.msk [vmem:[#allocation2] sm:$0xff] (!%p2454_p3), %vm4554_vm10, %v3017_v26  ;;  %vm4555_vm6 = vmmov (!%p2454_p3), %vm4554_vm10 }
 0x5d1   : > { %1822 = vst.msk [vmem:[#allocation2 + $0x8] sm:$0xff] (!%p2454_p3), %vm4555_vm6, %v3017_v26  ;;  %vm4556_vm9 = vmmov (!%p2454_p3), %vm4555_vm6 }
 0x5d2   : > { %1823 = vst.msk [vmem:[#allocation2 + $0x10] sm:$0xff] (!%p2454_p3), %vm4556_vm9, %v3017_v26  ;;  %vm4558_vm12 = vmmov (!%p2454_p3), %vm4555_vm6 }
 0x5d3   : > { %1825 = vst.msk [vmem:[#allocation2 + $0x20] sm:$0xff] (!%p2454_p3), %vm4558_vm12, %v3017_v26  ;;  %vm4559_vm3 = vmmov (!%p2454_p3), %vm4555_vm6 }
 0x5d4   : > { %1826 = vst.msk [vmem:[#allocation2 + $0x28] sm:$0xff] (!%p2454_p3), %vm4559_vm3, %v3017_v26 }
 0x5e6   : > { %v1492_v52 = vpop.xlane.xlu0 %1491 }
 0x5e7   : > { %2917 = vrcp.f32 %v1492_v52 }
 0x5e8   : > { %2919 = vrcp.f32 %v1494_v53 }
 0x5ea   : > { %v1496_v30 = vpop.xlane.xlu0 %1495 }
 0x5eb   : > { %2921 = vrcp.f32 %v1496_v30 }
 0x5f1   : > { %v2918_v34 = vpop.eup %2917 }
 0x5f2   : > { %v1526_v7 = vmul.f32 %v2918_v34, %v4037_v44  ;;  %v2920_v56 = vpop.eup %2919 }
 0x5f3   : > { %v1527_v46 = vmul.f32 %v2920_v56, %v4025_v28  ;;  %v1718_v28 = vsel %vm1716_vm13, %v1691_v3, 0  ;;  %vm4561_vm13 = vmmov (!%p2454_p3), %vm4559_vm3 }
 0x5f4   : > { %v2441_v63 = vpack.c.bf16 %v1526_v7, %v1525_v62  ;;  %2648 = vmatpush3.bf16.msra.mxu0 %v1718_v28  ;;  %2666 = vmatpush3.bf16.msra.mxu1 %v1718_v28  ;;  %1828 = vst.msk [vmem:[#allocation2 + $0x38] sm:$0xff] (!%p2454_p3), %vm4561_vm13, %v3017_v26 }
 0x5f5   : > { %v2922_v21 = vpop.eup %2921 }
 0x5f6   : > { %2643 = vmatprep.mubr.msk.bf16.mxu0 %vm2440_vm11, %v2441_v63  ;;  %v1528_v9 = vmul.f32 %v2922_v21, %v4040_v35  ;;  %vm4557_vm11 = vmmov (!%p2454_p3), %vm4555_vm6 }
 0x5f7   : > { %1824 = vst.msk [vmem:[#allocation2 + $0x18] sm:$0xff] (!%p2454_p3), %vm4557_vm11, %v3017_v26 }
 0x5f8   : > { %v2444_v40 = vpack.c.bf16 %v1528_v9, %v1527_v46 }
 0x5fa   : > { %2644 = vmatmul.mubr.msk.bf16.gmra.mrb[44].mxu0 %vm2443_vm5, %v2444_v40  ;;  %vm4560_vm5 = vmmov (!%p2454_p3), %vm4559_vm3 }
 0x5fb   : > { %1827 = vst.msk [vmem:[#allocation2 + $0x30] sm:$0xff] (!%p2454_p3), %vm4560_vm5, %v3017_v26 }
 0x692   : > { %v2633_v12 = vpop.f32.mrb[32].mxu0 }
 0x693   : > { %v1619_v44 = vpop.f32.mrb[33].mxu0 }
 0x694   : > { %v2634_v35 = vpop.f32.mrb[34].mxu0 }
 0x695   : > { %v1683_v18 = vpack.c.bf16 %v2634_v35, %v2633_v12  ;;  %v1622_v42 = vpop.f32.mrb[35].mxu0 }
 0x696   : > { %v1682_v19 = vpack.c.bf16 %v1622_v42, %v1619_v44 }
 0x698   : > { %2649 = vmatprep.mubr.msk.bf16.mxu0 %vm4546_vm14, %v1682_v19  ;;  %vm4562_vm14 = vmmov (!%p2454_p3), %vm4559_vm3 }
 0x699   : > { %2650 = vmatmul.mubr.msk.bf16.vlgmr.msra.gmra.mrb[48].mxu0 %vm4547_vm2, %v1683_v18  ;;  %1829 = vst.msk [vmem:[#allocation2 + $0x40] sm:$0xff] (!%p2454_p3), %vm4562_vm14, %v3017_v26  ;;  %vm4563_vm2 = vmmov (!%p2454_p3), %vm4559_vm3 }
 0x69a   : > { %v2637_v8 = vpop.f32.mrb[36].mxu0  ;;  %1830 = vst.msk [vmem:[#allocation2 + $0x48] sm:$0xff] (!%p2454_p3), %vm4563_vm2, %v3017_v26 }
 0x69b   : > { %v1635_v5 = vpop.f32.mrb[37].mxu0 }
 0x69c   : > { %v2638_v13 = vpop.f32.mrb[38].mxu0 }
 0x69d   : > { %v1685_v0 = vpack.c.bf16 %v2638_v13, %v2637_v8  ;;  %v1638_v45 = vpop.f32.mrb[39].mxu0 }
 0x69e   : > { %v1684_v15 = vpack.c.bf16 %v1638_v45, %v1635_v5 }
 0x6a0   : > { %2653 = vmatprep.mubr.msk.bf16.mxu1 %vm4548_vm4, %v1684_v15  ;;  %vm4564_vm4 = vmmov (!%p2454_p3), %vm4563_vm2 }
 0x6a1   : > { %2654 = vmatmul.mubr.msk.bf16.vlgmr.msra.gmra.mrb[16].mxu1 %vm4549_vm15, %v1685_v0  ;;  %1831 = vst.msk [vmem:[#allocation2 + $0x50] sm:$0xff] (!%p2454_p3), %vm4564_vm4, %v3017_v26  ;;  %vm4565_vm15 = vmmov (!%p2454_p3), %vm4563_vm2 }
 0x6a2   : > { %v2641_v61 = vpop.f32.mrb[40].mxu0  ;;  %1832 = vst.msk [vmem:[#allocation2 + $0x58] sm:$0xff] (!%p2454_p3), %vm4565_vm15, %v3017_v26 }
 0x6a3   : > { %v1651_v2 = vpop.f32.mrb[41].mxu0 }
 0x6a4   : > { %v2642_v51 = vpop.f32.mrb[42].mxu0 }
 0x6a5   : > { %v1687_v14 = vpack.c.bf16 %v2642_v51, %v2641_v61  ;;  %v1654_v27 = vpop.f32.mrb[43].mxu0 }
 0x6a6   : > { %v1686_v11 = vpack.c.bf16 %v1654_v27, %v1651_v2 }
 0x6a8   : > { %2657 = vmatprep.mubr.msk.bf16.mxu1 %vm4550_vm0, %v1686_v11  ;;  %vm4566_vm0 = vmmov (!%p2454_p3), %vm4563_vm2 }
 0x6a9   : > { %2658 = vmatmul.mubr.msk.bf16.gmra.mrb[20].mxu1 %vm4551_vm1, %v1687_v14  ;;  %1833 = vst.msk [vmem:[#allocation2 + $0x60] sm:$0xff] (!%p2454_p3), %vm4566_vm0, %v3017_v26  ;;  %vm4567_vm1 = vmmov (!%p2454_p3), %vm4566_vm0 }
 0x6aa   : > { %1834 = vst.msk [vmem:[#allocation2 + $0x68] sm:$0xff] (!%p2454_p3), %vm4567_vm1, %v3017_v26 }
 0x6cd   : > { %v2645_v6 = vpop.f32.mrb[44].mxu0 }
 0x6ce   : > { %v1667_v4 = vpop.f32.mrb[45].mxu0 }
 0x6cf   : > { %v2646_v53 = vpop.f32.mrb[46].mxu0 }
 0x6d0   : > { %v1689_v55 = vpack.c.bf16 %v2646_v53, %v2645_v6  ;;  %v1670_v32 = vpop.f32.mrb[47].mxu0 }
 0x6d1   : > { %v1688_v16 = vpack.c.bf16 %v1670_v32, %v1667_v4 }
 0x6d3   : > { %2661 = vmatprep.mubr.msk.bf16.mxu1 %vm4552_vm8, %v1688_v16  ;;  %vm4568_vm8 = vmmov (!%p2454_p3), %vm4566_vm0 }
 0x6d4   : > { %2662 = vmatmul.mubr.msk.bf16.gmra.mrb[24].mxu1 %vm4553_vm7, %v1689_v55  ;;  %1835 = vst.msk [vmem:[#allocation2 + $0x70] sm:$0xff] (!%p2454_p3), %vm4568_vm8, %v3017_v26  ;;  %vm4569_vm7 = vmmov (!%p2454_p3), %vm4566_vm0 }
 0x6d5   : > { %1836 = vst.msk [vmem:[#allocation2 + $0x78] sm:$0xff] (!%p2454_p3), %vm4569_vm7, %v3017_v26 }
 0x76c   : > { %v2651_v59 = vpop.f32.mrb[48].mxu0 }
 0x76d   : > { %v1754_v23 = vpop.f32.mrb[49].mxu0 }
 0x76e   : > { %v2652_v58 = vpop.f32.mrb[50].mxu0 }
 0x76f   : > { %v1757_v57 = vpop.f32.mrb[51].mxu0 }
 0x774   : > { %v2655_v54 = vpop.f32.mrb[16].mxu1 }
 0x775   : > { %v1770_v1 = vpop.f32.mrb[17].mxu1 }
 0x776   : > { %v2656_v36 = vpop.f32.mrb[18].mxu1 }
 0x777   : > { %v1773_v22 = vpop.f32.mrb[19].mxu1 }
 0x77c   : > { %v2659_v50 = vpop.f32.mrb[20].mxu1 }
 0x77d   : > { %v1786_v24 = vpop.f32.mrb[21].mxu1 }
 0x77e   : > { %v2660_v41 = vpop.f32.mrb[22].mxu1 }
 0x77f   : > { %v1789_v17 = vpop.f32.mrb[23].mxu1 }
 0x7a4   : > { %1820 = sbr.rel (%p2454_p3) target bundleno = 1963 (0x7ab), region = 60 }
 0x7a7   : > { %v2663_v29 = vpop.f32.mrb[24].mxu1 }
 0x7a8   : > { %v1802_v20 = vpop.f32.mrb[25].mxu1 }
 0x7a9   : > { %v4119_v25 = vpop.f32.mrb[26].mxu1 }
 0x7aa   : > { %v1805_v39 = vpop.f32.mrb[27].mxu1 }
 0x7ab PF: > { %v1837_v31 = vld [vmem:[#allocation2] sm:$0xff]  ;;  %v1838_v33 = vld [vmem:[#allocation2 + $0x8] sm:$0xff]  ;;  %v1839_v60 = vld [vmem:[#allocation2 + $0x10] sm:$0xff]  ;;  %vm4570_vm10 = vcmask 261120   ;;  %p2455_p5 = scmp.ne.s32.totalorder %s2996_s27, 3 }
 0x7ac   : > { %v1853_v48 = vadd.f32 %v1837_v31, %v1754_v23  ;;  %v1854_v10 = vadd.f32 %v1838_v33, %v1757_v57  ;;  %v1855_v37 = vadd.f32 %v2651_v59, %v1839_v60  ;;  %v1840_v43 = vld [vmem:[#allocation2 + $0x18] sm:$0xff]  ;;  %v1841_v47 = vld [vmem:[#allocation2 + $0x20] sm:$0xff]  ;;  %v1842_v52 = vld [vmem:[#allocation2 + $0x28] sm:$0xff] }
 0x7ad   : > { %v1856_v30 = vadd.f32 %v2652_v58, %v1840_v43  ;;  %v1857_v49 = vadd.f32 %v1841_v47, %v1770_v1  ;;  %v1858_v34 = vadd.f32 %v1842_v52, %v1773_v22  ;;  %v1843_v62 = vld [vmem:[#allocation2 + $0x30] sm:$0xff]  ;;  %v1844_v7 = vld [vmem:[#allocation2 + $0x38] sm:$0xff]  ;;  %v1845_v56 = vld [vmem:[#allocation2 + $0x40] sm:$0xff] }
 0x7ae   : > { %1869 = vst.msk [vmem:[#allocation2] sm:$0xff] %vm4570_vm10, %v1853_v48  ;;  %vm4571_vm6 = vmmov %vm4570_vm10  ;;  %v1859_v63 = vadd.f32 %v2655_v54, %v1843_v62  ;;  %v1860_v21 = vadd.f32 %v2656_v36, %v1844_v7  ;;  %v1861_v46 = vadd.f32 %v1845_v56, %v1786_v24  ;;  %v1846_v9 = vld [vmem:[#allocation2 + $0x48] sm:$0xff]  ;;  %v1847_v40 = vld [vmem:[#allocation2 + $0x50] sm:$0xff]  ;;  %vm4586_vm10 = vcmask (!%p2455_p5), 261120  }
 0x7af   : > { %1870 = vst.msk [vmem:[#allocation2 + $0x8] sm:$0xff] %vm4571_vm6, %v1854_v10  ;;  %vm4572_vm9 = vmmov %vm4571_vm6  ;;  %v1848_v38 = vld [vmem:[#allocation2 + $0x58] sm:$0xff]  ;;  %v1862_v3 = vadd.f32 %v1846_v9, %v1789_v17  ;;  %v1863_v28 = vadd.f32 %v2659_v50, %v1847_v40  ;;  %v1849_v44 = vld [vmem:[#allocation2 + $0x60] sm:$0xff] }
 0x7b0   : > { %1871 = vst.msk [vmem:[#allocation2 + $0x10] sm:$0xff] %vm4572_vm9, %v1855_v37  ;;  %vm4573_vm11 = vmmov %vm4571_vm6  ;;  %v1864_v12 = vadd.f32 %v2660_v41, %v1848_v38  ;;  %v1850_v35 = vld [vmem:[#allocation2 + $0x68] sm:$0xff]  ;;  %v1851_v18 = vld [vmem:[#allocation2 + $0x70] sm:$0xff]  ;;  %v1865_v42 = vadd.f32 %v1849_v44, %v1802_v20 }
 0x7b1   : > { %1872 = vst.msk [vmem:[#allocation2 + $0x18] sm:$0xff] %vm4573_vm11, %v1856_v30  ;;  %vm4574_vm12 = vmmov %vm4571_vm6  ;;  %v1866_v19 = vadd.f32 %v1850_v35, %v1805_v39  ;;  %v1867_v8 = vadd.f32 %v2663_v29, %v1851_v18  ;;  %v1852_v5 = vld [vmem:[#allocation2 + $0x78] sm:$0xff]  ;;  %v4159_v45 = vld [vmem:[%s4462_s4] ss:$0 sm:$0xff] (!%p2455_p5) }
 0x7b2   : > { %1873 = vst.msk [vmem:[#allocation2 + $0x20] sm:$0xff] %vm4574_vm12, %v1857_v49  ;;  %vm4575_vm3 = vmmov %vm4571_vm6  ;;  %v1868_v13 = vadd.f32 %v4119_v25, %v1852_v5  ;;  %v1928_v15 = vld [vmem:[%s3132_s13] sm:$0xff] (!%p2455_p5)  ;;  %v1930_v51 = vld [vmem:[%s3132_s13 + $0x10] sm:$0xff] (!%p2455_p5) }
 0x7b3   : > { %1874 = vst.msk [vmem:[#allocation2 + $0x28] sm:$0xff] %vm4575_vm3, %v1858_v34  ;;  %vm4576_vm5 = vmmov %vm4575_vm3  ;;  %v1929_v6 = vld [vmem:[%s3132_s13 + $0x8] sm:$0xff] (!%p2455_p5)  ;;  %v1931_v53 = vld [vmem:[%s3132_s13 + $0x18] sm:$0xff] (!%p2455_p5) }
 0x7b4   : > { %1875 = vst.msk [vmem:[#allocation2 + $0x30] sm:$0xff] %vm4576_vm5, %v1859_v63  ;;  %vm4577_vm13 = vmmov %vm4575_vm3  ;;  %v1932_v54 = vld [vmem:[%s3132_s13 + $0x20] sm:$0xff] (!%p2455_p5)  ;;  %v1933_v24 = vld [vmem:[%s3132_s13 + $0x28] sm:$0xff] (!%p2455_p5) }
 0x7b5   : > { %1876 = vst.msk [vmem:[#allocation2 + $0x38] sm:$0xff] %vm4577_vm13, %v1860_v21  ;;  %vm4578_vm14 = vmmov %vm4575_vm3  ;;  %v1889_v0 = vld [vmem:[#allocation2] sm:$0xff] (!%p2455_p5)  ;;  %v1934_v31 = vld [vmem:[%s3132_s13 + $0x30] sm:$0xff] (!%p2455_p5) }
 0x7b6   : > { %1877 = vst.msk [vmem:[#allocation2 + $0x40] sm:$0xff] %vm4578_vm14, %v1861_v46  ;;  %vm4579_vm2 = vmmov %vm4575_vm3  ;;  %v1912_v61 = vadd.f32 (!%p2455_p5), %v4159_v45, %v1889_v0  ;;  %v1890_v14 = vld [vmem:[#allocation2 + $0x8] sm:$0xff] (!%p2455_p5)  ;;  %v1935_v48 = vld [vmem:[%s3132_s13 + $0x38] sm:$0xff] (!%p2455_p5) }
 0x7b7   : > { %1878 = vst.msk [vmem:[#allocation2 + $0x48] sm:$0xff] %vm4579_vm2, %v1862_v3  ;;  %vm4580_vm4 = vmmov %vm4579_vm2  ;;  %1888 = sbr.rel (%p2455_p5) target bundleno = 2325 (0x915), region = 64  ;;  %v1891_v2 = vld [vmem:[#allocation2 + $0x10] sm:$0xff] (!%p2455_p5)  ;;  %v1913_v11 = vadd.f32 (!%p2455_p5), %v4159_v45, %v1890_v14  ;;  %v1936_v49 = vld [vmem:[%s3132_s13 + $0x40] sm:$0xff] (!%p2455_p5) }
 0x7b8   : > { %1879 = vst.msk [vmem:[#allocation2 + $0x50] sm:$0xff] %vm4580_vm4, %v1863_v28  ;;  %vm4581_vm15 = vmmov %vm4579_vm2  ;;  %v1914_v27 = vadd.f32 (!%p2455_p5), %v4159_v45, %v1891_v2  ;;  %v1892_v4 = vld [vmem:[#allocation2 + $0x18] sm:$0xff] (!%p2455_p5)  ;;  %v4168_v55 = vadd.f32 (!%p2455_p5), %v1928_v15, %v1912_v61  ;;  %v1937_v7 = vld [vmem:[%s3132_s13 + $0x48] sm:$0xff] (!%p2455_p5) }
 0x7b9   : > { %1880 = vst.msk [vmem:[#allocation2 + $0x58] sm:$0xff] %vm4581_vm15, %v1864_v12  ;;  %vm4582_vm0 = vmmov %vm4579_vm2  ;;  %v1915_v32 = vadd.f32 (!%p2455_p5), %v4159_v45, %v1892_v4  ;;  %v1893_v16 = vld [vmem:[#allocation2 + $0x20] sm:$0xff] (!%p2455_p5)  ;;  %v4173_v58 = vadd.f32 (!%p2455_p5), %v1929_v6, %v1913_v11  ;;  %v1938_v38 = vld [vmem:[%s3132_s13 + $0x50] sm:$0xff] (!%p2455_p5) }
 0x7ba   : > { %1881 = vst.msk [vmem:[#allocation2 + $0x60] sm:$0xff] %vm4582_vm0, %v1865_v42  ;;  %vm4583_vm1 = vmmov %vm4582_vm0  ;;  %v1894_v59 = vld [vmem:[#allocation2 + $0x28] sm:$0xff] (!%p2455_p5)  ;;  %v4171_v23 = vadd.f32 (!%p2455_p5), %v1930_v51, %v1914_v27  ;;  %v1916_v57 = vadd.f32 (!%p2455_p5), %v4159_v45, %v1893_v16  ;;  %v1960_v22 = vsel (!%p2455_p5), %vm4586_vm10, %v4168_v55, 0.0  ;;  %v1939_v12 = vld [vmem:[%s3132_s13 + $0x58] sm:$0xff] (!%p2455_p5) }
 0x7bb   : > { %1882 = vst.msk [vmem:[#allocation2 + $0x68] sm:$0xff] %vm4583_vm1, %v1866_v19  ;;  %vm4584_vm8 = vmmov %vm4582_vm0  ;;  %v1917_v1 = vadd.f32 (!%p2455_p5), %v4159_v45, %v1894_v59  ;;  %v1895_v36 = vld [vmem:[#allocation2 + $0x30] sm:$0xff] (!%p2455_p5)  ;;  %v4180_v50 = vadd.f32 (!%p2455_p5), %v1931_v53, %v1915_v32  ;;  %1961 = vadd.xlane.f32.xlu0 (!%p2455_p5), %v1960_v22  ;;  %v1940_v5 = vld [vmem:[%s3132_s13 + $0x60] sm:$0xff] (!%p2455_p5) }
 0x7bc   : > { %1883 = vst.msk [vmem:[#allocation2 + $0x70] sm:$0xff] %vm4584_vm8, %v1867_v8  ;;  %vm4585_vm7 = vmmov %vm4582_vm0  ;;  %v1896_v41 = vld [vmem:[#allocation2 + $0x38] sm:$0xff] (!%p2455_p5)  ;;  %v4187_v20 = vadd.f32 (!%p2455_p5), %v1932_v54, %v1916_v57  ;;  %v1918_v25 = vadd.f32 (!%p2455_p5), %v4159_v45, %v1895_v36  ;;  %v1941_v15 = vld [vmem:[%s3132_s13 + $0x68] sm:$0xff] (!%p2455_p5) }
 0x7bd   : > { %1884 = vst.msk [vmem:[#allocation2 + $0x78] sm:$0xff] %vm4585_vm7, %v1868_v13  ;;  %vm4587_vm6 = vmmov (!%p2455_p5), %vm4586_vm10  ;;  %v4192_v26 = vadd.f32 (!%p2455_p5), %v1933_v24, %v1917_v1  ;;  %v1919_v33 = vadd.f32 (!%p2455_p5), %v4159_v45, %v1896_v41  ;;  %v1897_v60 = vld [vmem:[#allocation2 + $0x40] sm:$0xff] (!%p2455_p5)  ;;  %v1942_v6 = vld [vmem:[%s3132_s13 + $0x70] sm:$0xff] (!%p2455_p5) }
 0x7be   : > { %v1966_v17 = vsel %vm4587_vm6, %v4171_v23, 0.0  ;;  %vm4588_vm9 = vmmov %vm4587_vm6  ;;  %v1898_v10 = vld [vmem:[#allocation2 + $0x48] sm:$0xff]  ;;  %v4199_v43 = vadd.f32 %v1934_v31, %v1918_v25  ;;  %v1920_v47 = vadd.f32 %v4159_v45, %v1897_v60  ;;  %v1943_v53 = vld [vmem:[%s3132_s13 + $0x78] sm:$0xff] }
 0x7bf   : > { %1967 = vadd.xlane.f32.xlu1 %v1966_v17  ;;  %v1963_v29 = vsel %vm4588_vm9, %v4173_v58, 0.0  ;;  %vm4589_vm11 = vmmov %vm4587_vm6  ;;  %v4204_v30 = vadd.f32 %v1935_v48, %v1919_v33  ;;  %v1921_v34 = vadd.f32 %v4159_v45, %v1898_v10  ;;  %v1899_v62 = vld [vmem:[#allocation2 + $0x50] sm:$0xff] }
 0x7c0   : > { %v1969_v39 = vsel %vm4589_vm11, %v4180_v50, 0.0  ;;  %1964 = vadd.xlane.f32.xlu0 %v1963_v29  ;;  %vm4590_vm12 = vmmov %vm4587_vm6  ;;  %v1900_v56 = vld [vmem:[#allocation2 + $0x58] sm:$0xff]  ;;  %v4211_v21 = vadd.f32 %v1936_v49, %v1920_v47  ;;  %v1922_v46 = vadd.f32 %v4159_v45, %v1899_v62 }
 0x7c1   : > { %v1972_v37 = vsel %vm4590_vm12, %v4187_v20, 0.0  ;;  %vm4591_vm3 = vmmov %vm4587_vm6  ;;  %v4216_v40 = vadd.f32 %v1937_v7, %v1921_v34  ;;  %v1923_v3 = vadd.f32 %v4159_v45, %v1900_v56  ;;  %v1901_v28 = vld [vmem:[#allocation2 + $0x60] sm:$0xff] }
 0x7c2   : > { %v1975_v52 = vsel %vm4591_vm3, %v4192_v26, 0.0  ;;  %vm4592_vm5 = vmmov %vm4591_vm3  ;;  %v1902_v44 = vld [vmem:[#allocation2 + $0x68] sm:$0xff]  ;;  %v4223_v18 = vadd.f32 %v1938_v38, %v1922_v46  ;;  %v1924_v42 = vadd.f32 %v4159_v45, %v1901_v28 }
 0x7c3   : > { %1970 = vadd.xlane.f32.xlu1 %v1969_v39  ;;  %v1978_v63 = vsel %vm4592_vm5, %v4199_v43, 0.0  ;;  %vm4593_vm13 = vmmov %vm4591_vm3  ;;  %v4228_v8 = vadd.f32 %v1939_v12, %v1923_v3  ;;  %v1925_v13 = vadd.f32 %v4159_v45, %v1902_v44  ;;  %v1903_v0 = vld [vmem:[#allocation2 + $0x70] sm:$0xff] }
 0x7c4   : > { %1973 = vadd.xlane.f32.xlu0 %v1972_v37  ;;  %v1981_v9 = vsel %vm4593_vm13, %v4204_v30, 0.0  ;;  %vm4594_vm14 = vmmov %vm4591_vm3  ;;  %v1904_v61 = vld [vmem:[#allocation2 + $0x78] sm:$0xff]  ;;  %v4235_v51 = vadd.f32 %v1940_v5, %v1924_v42  ;;  %v1926_v14 = vadd.f32 %v4159_v45, %v1903_v0 }
 0x7c5   : > { %v1984_v35 = vsel %vm4594_vm14, %v4211_v21, 0.0  ;;  %vm4595_vm2 = vmmov %vm4591_vm3  ;;  %v4240_v11 = vadd.f32 %v1941_v15, %v1925_v13  ;;  %v1927_v4 = vadd.f32 %v4159_v45, %v1904_v61 }
 0x7c6   : > { %v1987_v19 = vsel %vm4595_vm2, %v4216_v40, 0.0  ;;  %vm4596_vm4 = vmmov %vm4595_vm2  ;;  %v4247_v16 = vadd.f32 %v1942_v6, %v1926_v14 }
 0x7c7   : > { %1976 = vadd.xlane.f32.xlu1 %v1975_v52  ;;  %v1990_v2 = vsel %vm4596_vm4, %v4223_v18, 0.0  ;;  %vm4597_vm15 = vmmov %vm4595_vm2  ;;  %v4251_v57 = vadd.f32 %v1943_v53, %v1927_v4 }
 0x7c8   : > { %1979 = vadd.xlane.f32.xlu0 %v1978_v63  ;;  %v1993_v27 = vsel %vm4597_vm15, %v4228_v8, 0.0  ;;  %vm4598_vm0 = vmmov %vm4595_vm2 }
 0x7c9   : > { %v1996_v32 = vsel %vm4598_vm0, %v4235_v51, 0.0  ;;  %vm4599_vm1 = vmmov %vm4598_vm0 }
 0x7ca   : > { %v1999_v59 = vsel %vm4599_vm1, %v4240_v11, 0.0  ;;  %vm4600_vm8 = vmmov %vm4598_vm0 }
 0x7cb   : > { %1982 = vadd.xlane.f32.xlu1 %v1981_v9  ;;  %v2002_v54 = vsel %vm4600_vm8, %v4247_v16, 0.0  ;;  %vm4601_vm7 = vmmov %vm4598_vm0 }
 0x7cc   : > { %1985 = vadd.xlane.f32.xlu0 %v1984_v35  ;;  %v2005_v45 = vsel %vm4601_vm7, %v4251_v57, 0.0  ;;  %vm4602_vm10 = vmmov %vm4598_vm0 }
 0x7cd   : > { %vm4603_vm6 = vmmov %vm4598_vm0 }
 0x7ce   : > { %vm4604_vm9 = vmmov %vm4598_vm0 }
 0x7cf   : > { %1988 = vadd.xlane.f32.xlu1 %v1987_v19  ;;  %vm4605_vm11 = vmmov %vm4598_vm0 }
 0x7d0   : > { %1991 = vadd.xlane.f32.xlu0 %v1990_v2  ;;  %vm4606_vm12 = vmmov %vm4598_vm0 }
 0x7d1   : > { %vm4607_vm3 = vmmov %vm4598_vm0 }
 0x7d2   : > { %vm4608_vm5 = vmmov %vm4598_vm0 }
 0x7d3   : > { %1994 = vadd.xlane.f32.xlu1 %v1993_v27  ;;  %vm4609_vm13 = vmmov %vm4598_vm0 }
 0x7d4   : > { %1997 = vadd.xlane.f32.xlu0 %v1996_v32  ;;  %vm4610_vm14 = vmmov %vm4598_vm0 }
 0x7d5   : > { %vm4611_vm2 = vmmov %vm4598_vm0 }
 0x7d6   : > { %vm4612_vm4 = vmmov %vm4598_vm0 }
 0x7d7   : > { %2000 = vadd.xlane.f32.xlu1 %v1999_v59  ;;  %vm4613_vm15 = vmmov %vm4598_vm0 }
 0x7d8   : > { %2003 = vadd.xlane.f32.xlu0 %v2002_v54  ;;  %vm4614_vm1 = vmmov %vm4598_vm0 }
 0x7d9   : > { %vm4615_vm8 = vmmov %vm4598_vm0 }
 0x7da   : > { %vm4616_vm7 = vmmov %vm4598_vm0 }
 0x7db   : > { %2006 = vadd.xlane.f32.xlu1 %v2005_v45 }
 0x848   : > { %v1962_v1 = vpop.xlane.xlu0 %1961 }
 0x849   : > { %v2009_v36 = vmul.f32 0.03125, %v1962_v1 }
 0x84b   : > { %v4258_v41 = vsub.f32 %v4168_v55, %v2009_v36 }
 0x84c   : > { %v1968_v22 = vpop.xlane.xlu1 %1967 }
 0x84d   : > { %v2011_v24 = vmul.f32 0.03125, %v1968_v22  ;;  %v1965_v29 = vpop.xlane.xlu0 %1964  ;;  %v2041_v31 = vmul.f32 %v4258_v41, %v4258_v41 }
 0x84e   : > { %v2010_v25 = vmul.f32 0.03125, %v1965_v29 }
 0x84f   : > { %v4261_v17 = vsub.f32 %v4171_v23, %v2011_v24  ;;  %v2057_v10 = vsel %vm4602_vm10, %v2041_v31, 0.0  ;;  %vm4617_vm10 = vmmov %vm4598_vm0 }
 0x850   : > { %v1971_v39 = vpop.xlane.xlu1 %1970  ;;  %v4268_v48 = vsub.f32 %v4173_v58, %v2010_v25  ;;  %2058 = vadd.xlane.f32.xlu0 %v2057_v10 }
 0x851   : > { %v2012_v33 = vmul.f32 0.03125, %v1971_v39  ;;  %v2043_v60 = vmul.f32 %v4261_v17, %v4261_v17  ;;  %v1974_v23 = vpop.xlane.xlu0 %1973 }
 0x852   : > { %v2013_v37 = vmul.f32 0.03125, %v1974_v23  ;;  %v2042_v49 = vmul.f32 %v4268_v48, %v4268_v48 }
 0x853   : > { %v4272_v55 = vsub.f32 %v4180_v50, %v2012_v33  ;;  %v2063_v52 = vsel %vm4603_vm6, %v2043_v60, 0.0  ;;  %vm4618_vm6 = vmmov %vm4598_vm0 }
 0x854   : > { %v1977_v47 = vpop.xlane.xlu1 %1976  ;;  %v4280_v58 = vsub.f32 %v4187_v20, %v2013_v37  ;;  %v2060_v7 = vsel %vm4604_vm9, %v2042_v49, 0.0  ;;  %2064 = vadd.xlane.f32.xlu0 %v2063_v52  ;;  %vm4619_vm9 = vmmov %vm4598_vm0 }
 0x855   : > { %v2014_v34 = vmul.f32 0.03125, %v1977_v47  ;;  %v2044_v62 = vmul.f32 %v4272_v55, %v4272_v55  ;;  %2061 = vadd.xlane.f32.xlu1 %v2060_v7  ;;  %v1980_v56 = vpop.xlane.xlu0 %1979 }
 0x856   : > { %v2015_v63 = vmul.f32 0.03125, %v1980_v56  ;;  %v2045_v38 = vmul.f32 %v4280_v58, %v4280_v58 }
 0x857   : > { %v4284_v50 = vsub.f32 %v4192_v26, %v2014_v34  ;;  %v2066_v9 = vsel %vm4605_vm11, %v2044_v62, 0.0  ;;  %vm4620_vm11 = vmmov %vm4598_vm0 }
 0x858   : > { %v1983_v46 = vpop.xlane.xlu1 %1982  ;;  %v4292_v28 = vsub.f32 %v4199_v43, %v2015_v63  ;;  %v2069_v26 = vsel %vm4606_vm12, %v2045_v38, 0.0  ;;  %vm4621_vm12 = vmmov %vm4598_vm0 }
 0x859   : > { %v2016_v3 = vmul.f32 0.03125, %v1983_v46  ;;  %v2046_v20 = vmul.f32 %v4284_v50, %v4284_v50  ;;  %2067 = vadd.xlane.f32.xlu1 %v2066_v9  ;;  %2070 = vadd.xlane.f32.xlu0 %v2069_v26  ;;  %v1986_v44 = vpop.xlane.xlu0 %1985 }
 0x85a   : > { %v2017_v35 = vmul.f32 0.03125, %v1986_v44  ;;  %v2047_v5 = vmul.f32 %v4292_v28, %v4292_v28 }
 0x85b   : > { %v4296_v12 = vsub.f32 %v4204_v30, %v2016_v3  ;;  %v2072_v19 = vsel %vm4607_vm3, %v2046_v20, 0.0  ;;  %vm4622_vm3 = vmmov %vm4598_vm0 }
 0x85c   : > { %v1989_v42 = vpop.xlane.xlu1 %1988  ;;  %v4304_v0 = vsub.f32 %v4211_v21, %v2017_v35  ;;  %v2075_v30 = vsel %vm4608_vm5, %v2047_v5, 0.0  ;;  %vm4623_vm5 = vmmov %vm4598_vm0 }
 0x85d   : > { %v2018_v13 = vmul.f32 0.03125, %v1989_v42  ;;  %v2048_v43 = vmul.f32 %v4296_v12, %v4296_v12  ;;  %2073 = vadd.xlane.f32.xlu1 %v2072_v19  ;;  %2076 = vadd.xlane.f32.xlu0 %v2075_v30  ;;  %v1992_v61 = vpop.xlane.xlu0 %1991 }
 0x85e   : > { %v2019_v2 = vmul.f32 0.03125, %v1992_v61  ;;  %v2049_v6 = vmul.f32 %v4304_v0, %v4304_v0 }
 0x85f   : > { %v4308_v15 = vsub.f32 %v4216_v40, %v2018_v13  ;;  %v2078_v27 = vsel %vm4609_vm13, %v2048_v43, 0.0  ;;  %vm4624_vm13 = vmmov %vm4598_vm0 }
 0x860   : > { %v1995_v14 = vpop.xlane.xlu1 %1994  ;;  %v4316_v53 = vsub.f32 %v4223_v18, %v2019_v2  ;;  %v2081_v40 = vsel %vm4610_vm14, %v2049_v6, 0.0  ;;  %v4356_v2 = vld [vmem:[%s4464_s6] ss:$0 sm:$0xff]  ;;  %vm4625_vm14 = vmmov %vm4598_vm0 }
 0x861   : > { %v2020_v4 = vmul.f32 0.03125, %v1995_v14  ;;  %v2050_v21 = vmul.f32 %v4308_v15, %v4308_v15  ;;  %2079 = vadd.xlane.f32.xlu1 %v2078_v27  ;;  %2082 = vadd.xlane.f32.xlu0 %v2081_v40  ;;  %v1998_v59 = vpop.xlane.xlu0 %1997  ;;  %v4362_v40 = vld [vmem:[%s4465_s7] ss:$0 sm:$0xff] }
 0x862   : > { %v2021_v54 = vmul.f32 0.03125, %v1998_v59  ;;  %v2051_v36 = vmul.f32 %v4316_v53, %v4316_v53 }
 0x863   : > { %v4320_v32 = vsub.f32 %v4228_v8, %v2020_v4  ;;  %v2084_v1 = vsel %vm4611_vm2, %v2050_v21, 0.0  ;;  %vm4626_vm2 = vmmov %vm4598_vm0 }
 0x864   : > { %v2001_v45 = vpop.xlane.xlu1 %2000  ;;  %v4328_v24 = vsub.f32 %v4235_v51, %v2021_v54  ;;  %v2087_v8 = vsel %vm4612_vm4, %v2051_v36, 0.0  ;;  %vm4627_vm4 = vmmov %vm4598_vm0 }
 0x865   : > { %v2022_v22 = vmul.f32 0.03125, %v2001_v45  ;;  %v2052_v18 = vmul.f32 %v4320_v32, %v4320_v32  ;;  %2085 = vadd.xlane.f32.xlu1 %v2084_v1  ;;  %2088 = vadd.xlane.f32.xlu0 %v2087_v8  ;;  %v2004_v25 = vpop.xlane.xlu0 %2003 }
 0x866   : > { %v2023_v39 = vmul.f32 0.03125, %v2004_v25  ;;  %v2053_v60 = vmul.f32 %v4328_v24, %v4328_v24 }
 0x867   : > { %v4332_v29 = vsub.f32 %v4240_v11, %v2022_v22  ;;  %v2090_v33 = vsel %vm4613_vm15, %v2052_v18, 0.0  ;;  %vm4628_vm15 = vmmov %vm4598_vm0 }
 0x868   : > { %v2007_v31 = vpop.xlane.xlu1 %2006  ;;  %v4340_v23 = vsub.f32 %v4247_v16, %v2023_v39  ;;  %v2093_v11 = vsel %vm4598_vm0, %v2053_v60, 0.0 }
 0x869   : > { %v2024_v10 = vmul.f32 0.03125, %v2007_v31  ;;  %v2054_v51 = vmul.f32 %v4332_v29, %v4332_v29  ;;  %2091 = vadd.xlane.f32.xlu1 %v2090_v33  ;;  %2094 = vadd.xlane.f32.xlu0 %v2093_v11 }
 0x86a   : > { %v2055_v52 = vmul.f32 %v4340_v23, %v4340_v23 }
 0x86b   : > { %v4344_v37 = vsub.f32 %v4251_v57, %v2024_v10  ;;  %v2096_v47 = vsel %vm4614_vm1, %v2054_v51, 0.0  ;;  %vm4629_vm1 = vmmov %vm4598_vm0 }
 0x86c   : > { %v2099_v34 = vsel %vm4615_vm8, %v2055_v52, 0.0  ;;  %vm4630_vm8 = vmmov %vm4598_vm0 }
 0x86d   : > { %v2056_v49 = vmul.f32 %v4344_v37, %v4344_v37  ;;  %2097 = vadd.xlane.f32.xlu1 %v2096_v47  ;;  %2100 = vadd.xlane.f32.xlu0 %v2099_v34 }
 0x86f   : > { %v2102_v16 = vsel %vm4616_vm7, %v2056_v49, 0.0  ;;  %vm4631_vm7 = vmmov %vm4598_vm0 }
 0x871   : > { %2103 = vadd.xlane.f32.xlu1 %v2102_v16 }
 0x8dd   : > { %v2059_v62 = vpop.xlane.xlu0 %2058 }
 0x8de   : > { %v2105_v57 = vmul.f32 0.03125, %v2059_v62 }
 0x8e0   : > { %v2121_v7 = vadd.f32 1e-05, %v2105_v57 }
 0x8e1   : > { %v2065_v63 = vpop.xlane.xlu0 %2064 }
 0x8e2   : > { %v2062_v56 = vpop.xlane.xlu1 %2061  ;;  %2923 = vrsqrt.f32 %v2121_v7  ;;  %v2107_v9 = vmul.f32 0.03125, %v2065_v63 }
 0x8e3   : > { %v2106_v46 = vmul.f32 0.03125, %v2062_v56 }
 0x8e4   : > { %v2123_v3 = vadd.f32 1e-05, %v2107_v9 }
 0x8e5   : > { %v2122_v38 = vadd.f32 1e-05, %v2106_v46 }
 0x8e6   : > { %v2068_v20 = vpop.xlane.xlu1 %2067  ;;  %v2071_v26 = vpop.xlane.xlu0 %2070 }
 0x8e7   : > { %2925 = vrsqrt.f32 %v2122_v38  ;;  %v2108_v44 = vmul.f32 0.03125, %v2068_v20  ;;  %v2109_v35 = vmul.f32 0.03125, %v2071_v26 }
 0x8e8   : > { %2927 = vrsqrt.f32 %v2123_v3 }
 0x8e9   : > { %v2124_v42 = vadd.f32 1e-05, %v2108_v44  ;;  %v2125_v19 = vadd.f32 1e-05, %v2109_v35 }
 0x8ea   : > { %v2074_v5 = vpop.xlane.xlu1 %2073  ;;  %v2077_v13 = vpop.xlane.xlu0 %2076 }
 0x8eb   : > { %2929 = vrsqrt.f32 %v2124_v42  ;;  %v2110_v43 = vmul.f32 0.03125, %v2074_v5  ;;  %v2111_v30 = vmul.f32 0.03125, %v2077_v13 }
 0x8ec   : > { %2931 = vrsqrt.f32 %v2125_v19  ;;  %v2924_v61 = vpop.eup %2923 }
 0x8ed   : > { %v2126_v14 = vadd.f32 1e-05, %v2110_v43  ;;  %v2127_v27 = vadd.f32 1e-05, %v2111_v30  ;;  %v2153_v6 = vmul.f32 %v2924_v61, %v4258_v41 }
 0x8ee   : > { %v2080_v4 = vpop.xlane.xlu1 %2079  ;;  %v2083_v21 = vpop.xlane.xlu0 %2082 }
 0x8ef   : > { %2933 = vrsqrt.f32 %v2126_v14  ;;  %v2112_v59 = vmul.f32 0.03125, %v2080_v4  ;;  %v2113_v54 = vmul.f32 0.03125, %v2083_v21  ;;  %v2176_v45 = vmul.f32 %v4356_v2, %v2153_v6 }
 0x8f0   : > { %2935 = vrsqrt.f32 %v2127_v27 }
 0x8f1   : > { %v2926_v1 = vpop.eup %2925  ;;  %v2128_v36 = vadd.f32 1e-05, %v2112_v59  ;;  %v2129_v22 = vadd.f32 1e-05, %v2113_v54  ;;  %v2199_v41 = vadd.f32 %v4362_v40, %v2176_v45 }
 0x8f2   : > { %v2928_v18 = vpop.eup %2927  ;;  %v2154_v8 = vmul.f32 %v2926_v1, %v4268_v48  ;;  %v2086_v25 = vpop.xlane.xlu1 %2085 }
 0x8f3   : > { %v2089_v39 = vpop.xlane.xlu0 %2088  ;;  %v2155_v31 = vmul.f32 %v2928_v18, %v4261_v17  ;;  %2937 = vrsqrt.f32 %v2128_v36  ;;  %v2114_v33 = vmul.f32 0.03125, %v2086_v25  ;;  %2215 = vst.msk [vmem:[%s3137_s16] sm:$0xff] %vm4617_vm10, %v2199_v41 }
 0x8f4   : > { %v2115_v60 = vmul.f32 0.03125, %v2089_v39  ;;  %v2177_v10 = vmul.f32 %v4356_v2, %v2154_v8  ;;  %2939 = vrsqrt.f32 %v2129_v22 }
 0x8f5   : > { %v2930_v51 = vpop.eup %2929  ;;  %v2178_v11 = vmul.f32 %v4356_v2, %v2155_v31  ;;  %v2130_v47 = vadd.f32 1e-05, %v2114_v33 }
 0x8f6   : > { %v2131_v52 = vadd.f32 1e-05, %v2115_v60  ;;  %v2932_v48 = vpop.eup %2931  ;;  %v2200_v49 = vadd.f32 %v4362_v40, %v2177_v10  ;;  %v2156_v17 = vmul.f32 %v2930_v51, %v4272_v55  ;;  %v2092_v34 = vpop.xlane.xlu1 %2091 }
 0x8f7   : > { %v2095_v16 = vpop.xlane.xlu0 %2094  ;;  %v2201_v62 = vadd.f32 %v4362_v40, %v2178_v11  ;;  %v2157_v57 = vmul.f32 %v2932_v48, %v4280_v58  ;;  %2941 = vrsqrt.f32 %v2130_v47  ;;  %v2116_v7 = vmul.f32 0.03125, %v2092_v34 }
 0x8f8   : > { %2216 = vst.msk [vmem:[%s3137_s16 + $0x8] sm:$0xff] %vm4618_vm6, %v2200_v49  ;;  %v2179_v56 = vmul.f32 %v4356_v2, %v2156_v17  ;;  %2943 = vrsqrt.f32 %v2131_v52  ;;  %v2117_v63 = vmul.f32 0.03125, %v2095_v16 }
 0x8f9   : > { %v2934_v46 = vpop.eup %2933  ;;  %2217 = vst.msk [vmem:[%s3137_s16 + $0x10] sm:$0xff] %vm4619_vm9, %v2201_v62  ;;  %v2180_v55 = vmul.f32 %v4356_v2, %v2157_v57  ;;  %v2132_v9 = vadd.f32 1e-05, %v2116_v7 }
 0x8fa   : > { %v2936_v38 = vpop.eup %2935  ;;  %v2202_v3 = vadd.f32 %v4362_v40, %v2179_v56  ;;  %v2158_v58 = vmul.f32 %v2934_v46, %v4284_v50  ;;  %v2133_v20 = vadd.f32 1e-05, %v2117_v63  ;;  %v2098_v26 = vpop.xlane.xlu1 %2097 }
 0x8fb   : > { %v2101_v44 = vpop.xlane.xlu0 %2100  ;;  %v2203_v35 = vadd.f32 %v4362_v40, %v2180_v55  ;;  %v2159_v42 = vmul.f32 %v2936_v38, %v4292_v28  ;;  %2945 = vrsqrt.f32 %v2132_v9  ;;  %v2118_v19 = vmul.f32 0.03125, %v2098_v26 }
 0x8fc   : > { %2218 = vst.msk [vmem:[%s3137_s16 + $0x18] sm:$0xff] %vm4620_vm11, %v2202_v3  ;;  %v2181_v5 = vmul.f32 %v4356_v2, %v2158_v58  ;;  %2947 = vrsqrt.f32 %v2133_v20  ;;  %v2119_v13 = vmul.f32 0.03125, %v2101_v44 }
 0x8fd   : > { %v2938_v43 = vpop.eup %2937  ;;  %2219 = vst.msk [vmem:[%s3137_s16 + $0x20] sm:$0xff] %vm4621_vm12, %v2203_v35  ;;  %v2182_v50 = vmul.f32 %v4356_v2, %v2159_v42  ;;  %v2134_v30 = vadd.f32 1e-05, %v2118_v19 }
 0x8fe   : > { %v2940_v61 = vpop.eup %2939  ;;  %v2204_v14 = vadd.f32 %v4362_v40, %v2181_v5  ;;  %v2160_v28 = vmul.f32 %v2938_v43, %v4296_v12  ;;  %v2135_v27 = vadd.f32 1e-05, %v2119_v13  ;;  %v2104_v6 = vpop.xlane.xlu1 %2103 }
 0x8ff   : > { %v2205_v4 = vadd.f32 %v4362_v40, %v2182_v50  ;;  %v2161_v21 = vmul.f32 %v2940_v61, %v4304_v0  ;;  %2949 = vrsqrt.f32 %v2134_v30  ;;  %v2120_v59 = vmul.f32 0.03125, %v2104_v6 }
 0x900   : > { %2220 = vst.msk [vmem:[%s3137_s16 + $0x28] sm:$0xff] %vm4622_vm3, %v2204_v14  ;;  %v2183_v54 = vmul.f32 %v4356_v2, %v2160_v28  ;;  %2951 = vrsqrt.f32 %v2135_v27 }
 0x901   : > { %v2942_v45 = vpop.eup %2941  ;;  %2221 = vst.msk [vmem:[%s3137_s16 + $0x30] sm:$0xff] %vm4623_vm5, %v2205_v4  ;;  %v2184_v12 = vmul.f32 %v4356_v2, %v2161_v21  ;;  %v2136_v1 = vadd.f32 1e-05, %v2120_v59 }
 0x902   : > { %v2944_v36 = vpop.eup %2943  ;;  %v2206_v22 = vadd.f32 %v4362_v40, %v2183_v54  ;;  %v2162_v0 = vmul.f32 %v2942_v45, %v4308_v15 }
 0x903   : > { %v2207_v18 = vadd.f32 %v4362_v40, %v2184_v12  ;;  %v2163_v41 = vmul.f32 %v2944_v36, %v4316_v53  ;;  %2953 = vrsqrt.f32 %v2136_v1 }
 0x904   : > { %2222 = vst.msk [vmem:[%s3137_s16 + $0x38] sm:$0xff] %vm4624_vm13, %v2206_v22  ;;  %v2185_v8 = vmul.f32 %v4356_v2, %v2162_v0 }
 0x905   : > { %v2946_v25 = vpop.eup %2945  ;;  %2223 = vst.msk [vmem:[%s3137_s16 + $0x40] sm:$0xff] %vm4625_vm14, %v2207_v18  ;;  %v2186_v39 = vmul.f32 %v4356_v2, %v2163_v41 }
 0x906   : > { %v2948_v31 = vpop.eup %2947  ;;  %v2208_v33 = vadd.f32 %v4362_v40, %v2185_v8  ;;  %v2164_v15 = vmul.f32 %v2946_v25, %v4320_v32 }
 0x907   : > { %v2209_v60 = vadd.f32 %v4362_v40, %v2186_v39  ;;  %v2165_v53 = vmul.f32 %v2948_v31, %v4328_v24 }
 0x908   : > { %2224 = vst.msk [vmem:[%s3137_s16 + $0x48] sm:$0xff] %vm4626_vm2, %v2208_v33  ;;  %v2187_v10 = vmul.f32 %v4356_v2, %v2164_v15 }
 0x909   : > { %v2950_v51 = vpop.eup %2949  ;;  %2225 = vst.msk [vmem:[%s3137_s16 + $0x50] sm:$0xff] %vm4627_vm4, %v2209_v60  ;;  %v2188_v11 = vmul.f32 %v4356_v2, %v2165_v53 }
 0x90a   : > { %v2952_v47 = vpop.eup %2951  ;;  %v2210_v52 = vadd.f32 %v4362_v40, %v2187_v10  ;;  %v2166_v32 = vmul.f32 %v2950_v51, %v4332_v29 }
 0x90b   : > { %v2211_v48 = vadd.f32 %v4362_v40, %v2188_v11  ;;  %v2167_v24 = vmul.f32 %v2952_v47, %v4340_v23 }
 0x90c   : > { %2226 = vst.msk [vmem:[%s3137_s16 + $0x58] sm:$0xff] %vm4628_vm15, %v2210_v52  ;;  %v2189_v49 = vmul.f32 %v4356_v2, %v2166_v32 }
 0x90d   : > { %v2954_v17 = vpop.eup %2953  ;;  %2227 = vst.msk [vmem:[%s3137_s16 + $0x60] sm:$0xff] %vm4598_vm0, %v2211_v48  ;;  %v2190_v34 = vmul.f32 %v4356_v2, %v2167_v24 }
 0x90e   : > { %v2212_v16 = vadd.f32 %v4362_v40, %v2189_v49  ;;  %v2168_v62 = vmul.f32 %v2954_v17, %v4344_v37 }
 0x90f   : > { %v2213_v57 = vadd.f32 %v4362_v40, %v2190_v34 }
 0x910   : > { %2228 = vst.msk [vmem:[%s3137_s16 + $0x68] sm:$0xff] %vm4629_vm1, %v2212_v16  ;;  %v2191_v29 = vmul.f32 %v4356_v2, %v2168_v62 }
 0x911   : > { %2229 = vst.msk [vmem:[%s3137_s16 + $0x70] sm:$0xff] %vm4630_vm8, %v2213_v57 }
 0x912   : > { %v2214_v23 = vadd.f32 %v4362_v40, %v2191_v29 }
 0x914   : > { %2230 = vst.msk [vmem:[%s3137_s16 + $0x78] sm:$0xff] %vm4631_vm7, %v2214_v23 }
 0x915 PF: > { %s19_s9 = sadd.s32 1, %s3012_s9   ;;  %s4632_s27 = smov %s3004_s29 }
 0x916   : > { %p16_p6 = scmp.ge.s32.totalorder %s19_s9, 10   ;;  %s4633_s28 = smov %s3008_s30 }
 0x917   : > { %s4634_s29 = smov %s4637_s11  ;;  %s4635_s30 = smov %s4641_s12 }
 0x918   :  { %18 = sbr.rel (!%p16_p6) target bundleno = 3 (0x3), region = 104 }
 0x91f   :  { %2252 = vsyncpa [#allocation4], 1 }
 0x920   :  { %2254 = vsyncpa [#allocation4 + $0x1], 1 }

</bundles_post_ra>
